<compile_context>
chip_gen: v7x
topology: tpu7x:2x2x1
jax: 0.10.0
libtpu: 0.0.40
codegen_flags: <defaults>
</compile_context>

<pallas_src>
import math

import numpy as np

import jax
import jax.numpy as jnp
from jax import lax
from jax.experimental import pallas as pl
from jax.experimental.pallas import tpu as pltpu


def _ceil_div(a, b):
    return -(-a // b)


def _round_up(a, m):
    return _ceil_div(a, m) * m


def _pitch_embed_kernel(p_ref, m_ref, o_ref):
    # p_ref: (br, k)   f32 pitch values, k consecutive pitches per row
    # m_ref: (Km8, L)  f32 resident argument matrix (rows: k oct-scales, k semi-scales,
    #                  1 phase, zero padding to a multiple of 8)
    # o_ref: (br, L)   f32 output, L = k * E_out (multiple of 128)
    p = p_ref[...]
    br, k = p.shape

    octv = jnp.floor(p / 12.0)           # (br, k)
    semi = jnp.mod(p, 12.0)              # floored modulo == torch `%` for floats

    pad = m_ref.shape[0] - (2 * k + 1)
    pieces = [octv, semi, jnp.ones((br, 1), jnp.float32)]
    if pad > 0:
        pieces.append(jnp.zeros((br, pad), jnp.float32))
    lhs = jnp.concatenate(pieces, axis=1)          # (br, Km8)

    # All pre-sin arithmetic on the (otherwise idle) MXU. f32 + HIGHEST precision so
    # pi/6*(i+1) and the pi/2 cos phase are not truncated to bf16.
    arg = jnp.dot(lhs, m_ref[...],
                  precision=lax.Precision.HIGHEST,
                  preferred_element_type=jnp.float32)   # (br, L)

    # cos(x) = sin(x + pi/2); tail / padded columns have arg == 0 -> sin(0) = 0.
    o_ref[...] = jnp.sin(arg)


def _build_matrix(E, k, E_out):
    """(Km8, k*E_out) f32 host-built matrix mapping [octave, semitone, 1] -> sin args."""
    L = k * E_out
    j = np.arange(E_out)
    i = j // 4
    r = j % 4
    valid = (j < 4 * (E // 4)) & (j < E)

    a_oct = np.where(valid & (r < 2), np.ldexp(1.0, -i), 0.0)                # 1 / 2**i
    a_semi = np.where(valid & (r >= 2), (math.pi / 6.0) * (i + 1), 0.0)      # pre-folded
    phase = np.where(valid & ((r % 2) == 1), math.pi / 2.0, 0.0)             # cos phase

    Km = 2 * k + 1
    Km8 = _round_up(Km, 8)
    M = np.zeros((Km8, L), np.float64)
    for s in range(k):
        sl = slice(s * E_out, (s + 1) * E_out)
        M[s, sl] = a_oct
        M[k + s, sl] = a_semi
        M[2 * k, sl] = phase
    return jnp.asarray(M.astype(np.float32))


def pitch_embedding(pitch_values, embed_dim, *, block_rows=1024):
    """pitch_values: (N,) any numeric dtype. Returns (N, embed_dim) float32."""
    n = int(pitch_values.shape[0])
    E = int(embed_dim)
    if E <= 0 or n == 0:
        return jnp.zeros((n, max(E, 0)), jnp.float32)

    # Lane-dense output layout: fold k consecutive pitches per kernel row so that the
    # output lane width L = k*E_out is a multiple of 128.  For awkward E (small
    # gcd(E,128)) pad the columns to the next multiple of 128 instead (k = 1).
    k = 128 // math.gcd(E, 128)
    if k <= 8:
        E_out = E
    else:
        k = 1
        E_out = _round_up(E, 128)
    L = k * E_out

    M = _build_matrix(E, k, E_out)
    Km8 = int(M.shape[0])

    rows = _ceil_div(n, k)

    # Generation-aware VMEM budget (v7x: 64 MiB/core; v5e/v6e: 128 MiB).
    try:
        vmem_total = int(pltpu.get_tpu_info().vmem_capacity_bytes)
    except Exception:  # pragma: no cover - conservative fallback
        vmem_total = 64 * 1024 * 1024
    # Double-buffered output tile is the dominant buffer; keep it within ~1/3 of VMEM.
    cap_rows = max(8, ((vmem_total // 3) // (2 * L * 4)) // 8 * 8)

    br = max(8, min(int(block_rows), cap_rows, _round_up(rows, 8)) // 8 * 8)
    grid = _ceil_div(rows, br)
    # v7x megacore: the "parallel" grid is sharded across 2 TensorCores; keep >= 4
    # (and an even number of) steps so each core still double-buffers, load-balanced.
    if rows >= 32:
        grid = max(grid, 4)
    if grid > 1 and grid % 2:
        grid += 1
    br = min(br, max(8, _round_up(_ceil_div(rows, grid), 8)))

    R = grid * br
    n_pad = R * k

    p = jnp.asarray(pitch_values).astype(jnp.float32).reshape(-1)
    p = jnp.pad(p, (0, n_pad - n))
    p2 = p.reshape(R, k)

    # Explicit VMEM limit from the real tile footprint (+ headroom), clamped to chip.
    footprint = 2 * br * L * 4 + 2 * br * k * 4 + 2 * Km8 * L * 4
    vmem_limit = int(min(vmem_total * 3 // 4,
                         max(32 << 20, footprint + (8 << 20))))

    out = pl.pallas_call(
        _pitch_embed_kernel,
        out_shape=jax.ShapeDtypeStruct((R, L), jnp.float32),
        grid_spec=pltpu.PrefetchScalarGridSpec(
            num_scalar_prefetch=0,
            grid=(grid,),
            in_specs=[
                pl.BlockSpec((br, k), lambda g: (g, 0)),       # pitch tile
                pl.BlockSpec((Km8, L), lambda g: (0, 0)),      # resident matrix
            ],
            out_specs=pl.BlockSpec((br, L), lambda g: (g, 0)),
        ),
        compiler_params=pltpu.CompilerParams(
            dimension_semantics=("parallel",),
            vmem_limit_bytes=vmem_limit),
    )(p2, M)

    if E_out == E:
        # (R, k*E) -> (n_pad, E) is a free row-major reshape; crop padded rows.
        return out.reshape(n_pad, E)[:n]
    # Padded-column path (k == 1): crop both padded rows and padded columns.
    return out.reshape(n_pad, E_out)[:n, :E]


def _reference(pitch_values, embed_dim):
    """Pure-JAX reference mirroring the PyTorch loop."""
    p = pitch_values.astype(jnp.float32)
    octave = jnp.floor(p / 12.0)
    semitone = jnp.mod(p, 12.0)
    out = jnp.zeros((p.shape[0], embed_dim), jnp.float32)
    for i in range(embed_dim // 4):
        div_term = 2.0 ** i
        out = out.at[:, i * 4].set(jnp.sin(octave / div_term))
        out = out.at[:, i * 4 + 1].set(jnp.cos(octave / div_term))
        out = out.at[:, i * 4 + 2].set(jnp.sin(semitone * math.pi / 6.0 * (i + 1)))
        out = out.at[:, i * 4 + 3].set(jnp.cos(semitone * math.pi / 6.0 * (i + 1)))
    return out


if __name__ == "__main__":
    key = jax.random.PRNGKey(0)
    N = 2000                 # not a multiple of the block size -> exercises padding
    EMBED_DIM = 32

    # MIDI-like pitch values in [0, 128)
    pitch = jax.random.randint(key, (N,), 0, 128).astype(jnp.float32)

    out = pitch_embedding(pitch, EMBED_DIM)
    out = jax.block_until_ready(out)

    ref = _reference(pitch, EMBED_DIM)
    assert out.shape == (N, EMBED_DIM)
    # cos is evaluated as sin(x + pi/2) and the semitone scale is pre-folded into the
    # host matrix; with f32 HIGHEST-precision matmul the remaining difference from the
    # literal reference is a few ULP of arguments up to ~46 rad.
    err = float(jnp.max(jnp.abs(out - ref)))
    assert jnp.allclose(out, ref, atol=1e-4, rtol=1e-4), err

    print("KERNEL_OK")
</pallas_src>

<mosaic_0001>
module attributes {stable_mosaic.version = 11 : i64} {
  func.func @_pitch_embed_kernel(%arg0: i32, %arg1: memref<128x4xf32, #tpu.memory_space<vmem>>, %arg2: memref<16x128xf32, #tpu.memory_space<vmem>>, %arg3: memref<128x128xf32, #tpu.memory_space<vmem>>) attributes {dimension_semantics = [#tpu.dimension_semantics<parallel>], iteration_bounds = array<i64: 4>, scalar_prefetch = 0 : i64, scratch_operands = 0 : i64, tpu.core_type = #tpu.core_type<tc>, window_params = [{transform_indices = @transform_0, window_bounds = array<i64: 128, 4>}, {pipeline_mode = #tpu.pipeline_mode<synchronous>, transform_indices = @transform_1, window_bounds = array<i64: 16, 128>}, {transform_indices = @transform_2, window_bounds = array<i64: 128, 128>}]} {
    %c0 = arith.constant 0 : index
    %c0_0 = arith.constant 0 : index
    %0 = vector.load %arg1[%c0, %c0_0] : memref<128x4xf32, #tpu.memory_space<vmem>>, vector<128x4xf32>
    %cst = arith.constant 1.200000e+01 : f32
    %1 = vector.broadcast %cst : f32 to vector<128x4xf32>
    %2 = arith.divf %0, %1 : vector<128x4xf32>
    %3 = math.floor %2 : vector<128x4xf32>
    %cst_1 = arith.constant 1.200000e+01 : f32
    %4 = vector.broadcast %cst_1 : f32 to vector<128x4xf32>
    %5 = arith.remf %0, %4 : vector<128x4xf32>
    %cst_2 = arith.constant 0.000000e+00 : f32
    %6 = vector.broadcast %cst_2 : f32 to vector<128x4xf32>
    %7 = arith.cmpf one, %5, %6 : vector<128x4xf32>
    %cst_3 = arith.constant 0.000000e+00 : f32
    %8 = vector.broadcast %cst_3 : f32 to vector<128x4xf32>
    %9 = arith.cmpf olt, %5, %8 : vector<128x4xf32>
    %cst_4 = arith.constant 0.000000e+00 : f32
    %10 = arith.cmpf olt, %cst_1, %cst_4 : f32
    %11 = vector.broadcast %10 : i1 to vector<128x4xi1>
    %12 = vector.broadcast %11 : vector<128x4xi1> to vector<128x4xi1>
    %13 = arith.xori %9, %12 : vector<128x4xi1>
    %14 = arith.andi %13, %7 : vector<128x4xi1>
    %15 = vector.broadcast %cst_1 : f32 to vector<128x4xf32>
    %16 = arith.addf %5, %15 : vector<128x4xf32>
    %17 = arith.select %14, %16, %5 : vector<128x4xi1>, vector<128x4xf32>
    %cst_5 = arith.constant 1.000000e+00 : f32
    %18 = vector.broadcast %cst_5 : f32 to vector<128x1xf32>
    %cst_6 = arith.constant 0.000000e+00 : f32
    %19 = vector.broadcast %cst_6 : f32 to vector<128x7xf32>
    %20 = tpu.concatenate %3, %17, %18, %19 in 1 : vector<128x4xf32>, vector<128x4xf32>, vector<128x1xf32>, vector<128x7xf32> -> vector<128x16xf32>
    %c0_7 = arith.constant 0 : index
    %c0_8 = arith.constant 0 : index
    %21 = vector.load %arg2[%c0_7, %c0_8] : memref<16x128xf32, #tpu.memory_space<vmem>>, vector<16x128xf32>
    %cst_9 = arith.constant dense<0.000000e+00> : vector<128x128xf32>
    %22 = tpu.matmul %20, %21, %cst_9 {dimension_numbers = #tpu.dot_dimension_numbers<[1], [0], [0], [1], [0, 0, 1, 1], [], []>, precision = #tpu.contract_precision<fp32>} : vector<128x16xf32>, vector<16x128xf32>, vector<128x128xf32> -> vector<128x128xf32>
    %23 = math.sin %22 : vector<128x128xf32>
    %c0_10 = arith.constant 0 : index
    %c0_11 = arith.constant 0 : index
    %24 = vector.load %arg3[%c0_10, %c0_11] : memref<128x128xf32, #tpu.memory_space<vmem>>, vector<128x128xf32>
    tpu.vector_store %arg3[%c0_10, %c0_11], %23 {strides = array<i32>} : memref<128x128xf32, #tpu.memory_space<vmem>>, vector<128x128xf32>,
    return
  }
  func.func @transform_0(%arg0: i32) -> (i32, i32) {
    %c0_i32 = arith.constant 0 : i32
    %c0_i32_0 = arith.constant 0 : i32
    return %arg0, %c0_i32 : i32, i32
  }
  func.func @transform_1(%arg0: i32) -> (i32, i32) {
    %c0_i32 = arith.constant 0 : i32
    %c0_i32_0 = arith.constant 0 : i32
    %c0_i32_1 = arith.constant 0 : i32
    return %c0_i32, %c0_i32_0 : i32, i32
  }
  func.func @transform_2(%arg0: i32) -> (i32, i32) {
    %c0_i32 = arith.constant 0 : i32
    %c0_i32_0 = arith.constant 0 : i32
    return %arg0, %c0_i32 : i32, i32
  }
}

</mosaic_0001>

<bundles_post_ra>
// kernel: tpu_custom_call.1
= control target key start
LH: loop header
LB: loop body
LE: loop exit
PB: predicated region body
PF: predicated region fallthrough
CT: control target
= control target key end

     0   :  { %7 = vsyncpa [#allocation3], 0  ;;  %s6010_s0 = inlined_call_operand.vmem [shape: f32[512,4], index: 0, kind: input, shape index: {}]   ;;  %s6011_s1 = inlined_call_operand.vmem [shape: f32[16,128], index: 1, kind: input, shape index: {}]   ;;  %s6012_s2 = inlined_call_operand.hbm [shape: f32[512,128], index: 2, kind: output, shape index: {}]  }
   0x1   :  { %9 = vsyncpa [#allocation3 + $0x1], 0  ;;  %s4198_s9 = smov 0   ;;  %s4200_s10 = smov 0  }
   0x2   :  { %s4202_s11 = smov 0   ;;  %s4204_s12 = smov 0  }
   0x3 LB: > { %s4219_s13 = sadd.s32 4294967295, %s4171_s12   ;;  %s3476_s14 = sadd.s32 4294967294, %s4171_s12   ;;  %s4171_s12 = sphi %s4204_s12, %s6052_s12   ;;  %s4167_s11 = sphi %s4202_s11, %s6051_s11   ;;  %s4163_s10 = sphi %s4200_s10, %s6050_s10   ;;  %s4159_s9 = sphi %s4198_s9, %s6049_s9  }
   0x4   : > { %s4223_s15 = sadd.s32 1, %s4171_s12   ;;  %s69_s16 = sadd.s32 1, %s4167_s11 }
   0x5   : > { %s66_s17 = ssub.s32 %s4171_s12, %s4223_s15  ;;  %p79_p0 = scmp.ne.s32.totalorder %s4167_s11, %s4163_s10 }
   0x6   : > { %p67_p1 = scmp.eq.s32.totalorder %s66_s17, 0  ;;  %p80_p2 = scmp.eq.s32.totalorder %s4219_s13, 3 }
   0x7   : > { %p85_p3 = scmp.ne.s32.totalorder %s4163_s10, %s4159_s9  ;;  %p86_p4 = scmp.eq.s32.totalorder %s3476_s14, 3 }
   0x8   : > { %s4234_s18 = scalar_select %p67_p1, %s4167_s11, %s69_s16  }
   0x9   : > { %p4236_p5 = por %p80_p2, %p79_p0  ;;  %p4240_p6 = por %p86_p4, %p85_p3 }
   0xa   : > { %p3479_p7 = scmp.ge.s32.totalorder %s4171_s12, 1  ;;  %p116_p8 = scmp.lt.s32.totalorder %s4171_s12, 5 }
   0xc   : > { %p117_p9 = pnand %p3479_p7, %p116_p8 }
   0xd   : > { %s3481_s21 = sshll.u32 (!%p117_p9), %s4219_s13, 4  ;;  %s4173_s26 = smov (!%p117_p9), 4  }
   0xe   : > { %120 = sbr.rel (%p117_p9) target bundleno = 916 (0x394), region = 28  ;;  %p139_p10 = scmp.lt.s32.totalorder (!%p117_p9), %s3481_s21, 63 }
   0xf   : > { %s135_s3 = sand.u32 (!%p117_p9), 1, %s4163_s10   ;;  %s3552_s6 = sshll.u32 (!%p117_p9), %s4219_s13, 11 }
  0x10   : > { %s3480_s4 = sshll.u32 (!%p117_p9), %s135_s3, 7  ;;  %s5961_s16 = scalar_lea.hbm (!%p117_p9), %s6012_s2, %s3552_s6 }
  0x11   : > { %s4981_s5 = scalar_lea.vmem (!%p117_p9), [#allocation2], %s3480_s4  ;;  %s5969_s13 = scalar_lea.sflag (!%p117_p9), [#allocation3], %s135_s3 }
  0x12   : > { %s3414_s7 = sshll.u32 (!%p117_p9), %s4981_s5, 4  ;;  %s5963_s7 = int_to_ptr.vmem [resolvable:$true] %s3414_s7 }
  0x13   : > { %s4109_s17 = scalar_lea.vmem (!%p117_p9), %s5963_s7, 2048 }
  0x14   : > { %p4110_p11 = scmp.ne.s32.totalorder (!%p117_p9), %s5963_s7, %s4109_s17 }
  0x15   : > { %s6054_s21 = smov (!%p139_p10, %s3481_s21), 63 }
  0x16   : > { %s3482_s22 = sshll.u32 %s6054_s21, 3  ;;  %p4111_p12 = pnand %p4110_p11, %p4236_p5 }
  0x17   : > { %s4250_s25 = scalar_lea.vmem %s6010_s0, %s3482_s22  ;;  %s4180_s21 = smov [#allocation2]  }
  0x18   : > { %v4253_v0 = vld [vmem:[%s4250_s25 + $0x10] sm:$0xff]  ;;  %v4256_v1 = vld [vmem:[%s4250_s25] sm:$0xff]  ;;  %v4259_v2 = vld [vmem:[%s4250_s25 + $0x18] sm:$0xff]  ;;  %p4112_p13 = pneg %p4111_p12  ;;  %s4113_s22 = sshll.u32 %s4180_s21, 4  ;;  %s4114_s22 = int_to_ptr.vmem [resolvable:$false] %s4113_s22 }
  0x19   : > { %v216_v3 = vand.u32 2147483647, %v4253_v0  ;;  %v225_v4 = vand.u32 2147483648, %v4253_v0  ;;  %v194_v5 = vand.u32 2147483647, %v4256_v1  ;;  %v203_v6 = vand.u32 2147483648, %v4256_v1  ;;  %p4116_p0 = scmp.lt.s32.totalorder %s5963_s7, %s4114_s22 }
  0x1a   : > { %v227_v7 = vand.u32 2147483647, %v4259_v2  ;;  %v4267_v8 = vld [vmem:[%s4250_s25 + $0x8] sm:$0xff]  ;;  %v4273_v10 = vld [vmem:[%s4250_s25 + $0x20] sm:$0xff]  ;;  %v236_v15 = vand.u32 2147483648, %v4259_v2  ;;  %v4281_v22 = vld [vmem:[%s4250_s25 + $0x38] sm:$0xff] }
  0x1b   : > { %v4270_v9 = vld [vmem:[%s4250_s25 + $0x28] sm:$0xff]  ;;  %v218_v11 = vmul.f32 0.083333336, %v216_v3  ;;  %v196_v12 = vmul.f32 0.083333336, %v194_v5  ;;  %v214_v16 = vand.u32 2147483648, %v4267_v8 }
  0x1c   : > { %v205_v13 = vand.u32 2147483647, %v4267_v8  ;;  %v229_v14 = vmul.f32 0.083333336, %v227_v7  ;;  %v249_v17 = vand.u32 2147483647, %v4270_v9 }
  0x1d   : > { %v219_v18 = vfloor.f32 %v218_v11  ;;  %v197_v19 = vfloor.f32 %v196_v12  ;;  %v238_v21 = vand.u32 2147483647, %v4273_v10  ;;  %v258_v25 = vand.u32 2147483648, %v4270_v9  ;;  %v4286_v31 = vld [vmem:[%s4250_s25 + $0x30] sm:$0xff]  ;;  %s4115_s23 = scalar_lea.vmem %s4114_s22, 4096 }
  0x1e   : > { %v207_v20 = vmul.f32 0.083333336, %v205_v13  ;;  %v230_v23 = vfloor.f32 %v229_v14  ;;  %v251_v24 = vmul.f32 0.083333336, %v249_v17  ;;  %v271_v26 = vand.u32 2147483647, %v4281_v22  ;;  %p4117_p1 = scmp.lt.s32.totalorder %s4115_s23, %s4109_s17 }
  0x1f   : > { %v220_v27 = vmul.f32 12.0, %v219_v18  ;;  %v198_v28 = vmul.f32 12.0, %v197_v19  ;;  %v240_v30 = vmul.f32 0.083333336, %v238_v21  ;;  %v247_v34 = vand.u32 2147483648, %v4273_v10 }
  0x20   : > { %v208_v29 = vfloor.f32 %v207_v20  ;;  %v231_v32 = vmul.f32 12.0, %v230_v23  ;;  %v252_v33 = vfloor.f32 %v251_v24  ;;  %v273_v35 = vmul.f32 0.083333336, %v271_v26  ;;  %p4118_p2 = por %p4117_p1, %p4116_p0 }
  0x21   : > { %v221_v36 = vsub.f32 %v216_v3, %v220_v27  ;;  %v199_v37 = vsub.f32 %v194_v5, %v198_v28  ;;  %v241_v39 = vfloor.f32 %v240_v30  ;;  %v260_v43 = vand.u32 2147483647, %v4286_v31 }
  0x22   : > { %v209_v38 = vmul.f32 12.0, %v208_v29  ;;  %v232_v40 = vsub.f32 %v227_v7, %v231_v32  ;;  %v253_v41 = vmul.f32 12.0, %v252_v33  ;;  %v274_v42 = vfloor.f32 %v273_v35  ;;  %p4119_p3 = pnand %p4118_p2, %p4112_p13 }
  0x23   : > { %vm222_vm0 = vcmp.eq.f32.partialorder %v221_v36, 12.0  ;;  %vm200_vm1 = vcmp.eq.f32.partialorder %v199_v37, 12.0  ;;  %v242_v45 = vmul.f32 12.0, %v241_v39  ;;  %v262_v14 = vmul.f32 0.083333336, %v260_v43 }
  0x24   : > { %v210_v44 = vsub.f32 %v205_v13, %v209_v38  ;;  %v223_v46 = vsel %vm222_vm0, 0.0, %v221_v36  ;;  %v201_v47 = vsel %vm200_vm1, 0.0, %v199_v37  ;;  %vm233_vm2 = vcmp.eq.f32.partialorder %v232_v40, 12.0  ;;  %v4330_v37 = vld [vmem:[%s4250_s25 + $0x58] sm:$0xff] }
  0x25   : > { %v254_v48 = vsub.f32 %v249_v17, %v253_v41  ;;  %v224_v49 = vand.u32 2147483647, %v223_v46  ;;  %v202_v50 = vand.u32 2147483647, %v201_v47  ;;  %v234_v51 = vsel %vm233_vm2, 0.0, %v232_v40  ;;  %v4304_v17 = vld [vmem:[%s4250_s25 + $0x48] sm:$0xff] }
  0x26   : > { %vm211_vm3 = vcmp.eq.f32.partialorder %v210_v44, 12.0  ;;  %v235_v52 = vand.u32 2147483647, %v234_v51  ;;  %v243_v54 = vsub.f32 %v238_v21, %v242_v45  ;;  %v275_v61 = vmul.f32 12.0, %v274_v42  ;;  %v4311_v21 = vld [vmem:[%s4250_s25 + $0x40] sm:$0xff] }
  0x27   : > { %v212_v53 = vsel %vm211_vm3, 0.0, %v210_v44  ;;  %vm255_vm4 = vcmp.eq.f32.partialorder %v254_v48, 12.0  ;;  %v226_v55 = vor.u32 %v225_v4, %v224_v49  ;;  %v204_v56 = vor.u32 %v203_v6, %v202_v50 }
  0x28   : > { %v213_v57 = vand.u32 2147483647, %v212_v53  ;;  %v256_v58 = vsel %vm255_vm4, 0.0, %v254_v48  ;;  %v237_v59 = vor.u32 %v236_v15, %v235_v52  ;;  %vm244_vm5 = vcmp.eq.f32.partialorder %v243_v54, 12.0  ;;  %v4339_v48 = vld [vmem:[%s4250_s25 + $0x50] sm:$0xff] }
  0x29   : > { %v257_v60 = vand.u32 2147483647, %v256_v58  ;;  %vm372_vm6 = vcmp.ne.f32.partialorder %v226_v55, 0.0  ;;  %vm388_vm7 = vcmp.lt.f32.partialorder %v226_v55, 0.0  ;;  %v420_v62 = vadd.f32 12.0, %v226_v55 }
  0x2a   : > { %vm370_vm8 = vcmp.ne.f32.partialorder %v204_v56, 0.0  ;;  %vm404_vm9 = vmand %vm388_vm7, %vm372_vm6  ;;  %vm386_vm10 = vcmp.lt.f32.partialorder %v204_v56, 0.0  ;;  %v418_v63 = vadd.f32 12.0, %v204_v56  ;;  %vm373_vm11 = vcmp.ne.f32.partialorder %v237_v59, 0.0 }
  0x2b   : > { %vm389_vm12 = vcmp.lt.f32.partialorder %v237_v59, 0.0  ;;  %v436_v3 = vsel %vm404_vm9, %v420_v62, %v226_v55  ;;  %vm402_vm13 = vmand %vm386_vm10, %vm370_vm8  ;;  %v421_v4 = vadd.f32 12.0, %v237_v59  ;;  %v215_v5 = vor.u32 %v214_v16, %v213_v57 }
  0x2c   : > { %v259_v6 = vor.u32 %v258_v25, %v257_v60  ;;  %470 = vrot.lane.b32.xlu1 %v436_v3, %s4173_s26  ;;  %v434_v7 = vsel %vm402_vm13, %v418_v63, %v204_v56  ;;  %vm4293_vm14 = vmand %vm389_vm12, %vm373_vm11  ;;  %v245_v12 = vsel %vm244_vm5, 0.0, %v243_v54  ;;  %v276_v13 = vsub.f32 %v271_v26, %v275_v61  ;;  %v4346_v54 = vld [vmem:[%s4250_s25 + $0x60] sm:$0xff] }
  0x2d   : > { %466 = vrot.lane.b32.xlu0 %v434_v7, %s4173_s26  ;;  %v437_v15 = vsel %vm4293_vm14, %v421_v4, %v237_v59  ;;  %vm371_vm15 = vcmp.ne.f32.partialorder %v215_v5, 0.0  ;;  %vm387_vm0 = vcmp.lt.f32.partialorder %v215_v5, 0.0  ;;  %v419_v16 = vadd.f32 12.0, %v215_v5 }
  0x2e   : > { %vm4306_vm1 = vmand %vm387_vm0, %vm371_vm15  ;;  %vm375_vm2 = vcmp.ne.f32.partialorder %v259_v6, 0.0  ;;  %vm391_vm3 = vcmp.lt.f32.partialorder %v259_v6, 0.0  ;;  %v423_v19 = vadd.f32 12.0, %v259_v6  ;;  %v246_v20 = vand.u32 2147483647, %v245_v12 }
  0x2f   : > { %v435_v23 = vsel %vm4306_vm1, %v419_v16, %v215_v5  ;;  %vm4315_vm4 = vmand %vm391_vm3, %vm375_vm2  ;;  %vm277_vm5 = vcmp.eq.f32.partialorder %v276_v13, 12.0  ;;  %v280_v25 = vand.u32 2147483648, %v4281_v22  ;;  %v263_v26 = vfloor.f32 %v262_v14 }
  0x30   : > { %472 = vrot.lane.b32.xlu1 %v437_v15, %s4173_s26  ;;  %v248_v27 = vor.u32 %v247_v34, %v246_v20  ;;  %v278_v28 = vsel %vm277_vm5, 0.0, %v276_v13  ;;  %v269_v29 = vand.u32 2147483648, %v4286_v31  ;;  %v293_v30 = vand.u32 2147483647, %v4304_v17 }
  0x31   : > { %468 = vrot.lane.b32.xlu0 %v435_v23, %s4173_s26  ;;  %v439_v32 = vsel %vm4315_vm4, %v423_v19, %v259_v6  ;;  %v279_v33 = vand.u32 2147483647, %v278_v28  ;;  %v264_v35 = vmul.f32 12.0, %v263_v26  ;;  %v282_v36 = vand.u32 2147483647, %v4311_v21 }
  0x32   : > { %vm374_vm6 = vcmp.ne.f32.partialorder %v248_v27, 0.0  ;;  %vm390_vm7 = vcmp.lt.f32.partialorder %v248_v27, 0.0  ;;  %v422_v34 = vadd.f32 12.0, %v248_v27  ;;  %v295_v38 = vmul.f32 0.083333336, %v293_v30 }
  0x33   : > { %vm406_vm8 = vmand %vm390_vm7, %vm374_vm6  ;;  %v281_v39 = vor.u32 %v280_v25, %v279_v33  ;;  %v265_v40 = vsub.f32 %v260_v43, %v264_v35  ;;  %v302_v41 = vand.u32 2147483648, %v4304_v17  ;;  %v284_v42 = vmul.f32 0.083333336, %v282_v36  ;;  %v4343_v43 = vld [vmem:[%s4250_s25 + $0x68] sm:$0xff] }
  0x34   : > { %476 = vrot.lane.b32.xlu1 %v439_v32, %s4173_s26  ;;  %v438_v44 = vsel %vm406_vm8, %v422_v34, %v248_v27  ;;  %v296_v45 = vfloor.f32 %v295_v38  ;;  %v291_v46 = vand.u32 2147483648, %v4311_v21  ;;  %v315_v47 = vand.u32 2147483647, %v4330_v37 }
  0x35   : > { %474 = vrot.lane.b32.xlu0 %v438_v44, %s4173_s26  ;;  %vm377_vm9 = vcmp.ne.f32.partialorder %v281_v39, 0.0  ;;  %vm393_vm10 = vcmp.lt.f32.partialorder %v281_v39, 0.0  ;;  %v425_v49 = vadd.f32 12.0, %v281_v39  ;;  %vm266_vm11 = vcmp.eq.f32.partialorder %v265_v40, 12.0 }
  0x36   : > { %vm409_vm12 = vmand %vm393_vm10, %vm377_vm9  ;;  %v267_v50 = vsel %vm266_vm11, 0.0, %v265_v40  ;;  %v297_v51 = vmul.f32 12.0, %v296_v45  ;;  %v285_v52 = vfloor.f32 %v284_v42  ;;  %v317_v53 = vmul.f32 0.083333336, %v315_v47 }
  0x37   : > { %v441_v55 = vsel %vm409_vm12, %v425_v49, %v281_v39  ;;  %v268_v56 = vand.u32 2147483647, %v267_v50  ;;  %v324_v57 = vand.u32 2147483648, %v4330_v37  ;;  %v304_v58 = vand.u32 2147483647, %v4339_v48  ;;  %v4357_v39 = vld [vmem:[%s4250_s25 + $0x78] sm:$0xff] }
  0x38   : > { %480 = vrot.lane.b32.xlu1 %v441_v55, %s4173_s26  ;;  %v298_v59 = vsub.f32 %v293_v30, %v297_v51  ;;  %v286_v60 = vmul.f32 12.0, %v285_v52  ;;  %v318_v61 = vfloor.f32 %v317_v53  ;;  %v337_v62 = vand.u32 2147483647, %v4343_v43  ;;  %v4362_v50 = vld [vmem:[%s4250_s25 + $0x70] sm:$0xff] }
  0x39   : > { %v270_v63 = vor.u32 %v269_v29, %v268_v56  ;;  %v306_v3 = vmul.f32 0.083333336, %v304_v58  ;;  %v313_v4 = vand.u32 2147483648, %v4339_v48  ;;  %v326_v5 = vand.u32 2147483647, %v4346_v54 }
  0x3a   : > { %vm299_vm13 = vcmp.eq.f32.partialorder %v298_v59, 12.0  ;;  %v287_v6 = vsub.f32 %v282_v36, %v286_v60  ;;  %v319_v7 = vmul.f32 12.0, %v318_v61  ;;  %v339_v11 = vmul.f32 0.083333336, %v337_v62 }
  0x3b   : > { %vm376_vm14 = vcmp.ne.f32.partialorder %v270_v63, 0.0  ;;  %vm392_vm15 = vcmp.lt.f32.partialorder %v270_v63, 0.0  ;;  %v424_v12 = vadd.f32 12.0, %v270_v63  ;;  %v300_v13 = vsel %vm299_vm13, 0.0, %v298_v59 }
  0x3c   : > { %vm408_vm0 = vmand %vm392_vm15, %vm376_vm14  ;;  %v301_v14 = vand.u32 2147483647, %v300_v13  ;;  %vm288_vm1 = vcmp.eq.f32.partialorder %v287_v6, 12.0  ;;  %v320_v15 = vsub.f32 %v315_v47, %v319_v7  ;;  %v307_v16 = vfloor.f32 %v306_v3 }
  0x3d   : > { %v440_v18 = vsel %vm408_vm0, %v424_v12, %v270_v63  ;;  %v289_v19 = vsel %vm288_vm1, 0.0, %v287_v6  ;;  %v340_v20 = vfloor.f32 %v339_v11  ;;  %v328_v23 = vmul.f32 0.083333336, %v326_v5 }
  0x3e   : > { %478 = vrot.lane.b32.xlu0 %v440_v18, %s4173_s26  ;;  %v303_v24 = vor.u32 %v302_v41, %v301_v14  ;;  %v290_v25 = vand.u32 2147483647, %v289_v19  ;;  %vm321_vm2 = vcmp.eq.f32.partialorder %v320_v15, 12.0  ;;  %v308_v26 = vmul.f32 12.0, %v307_v16  ;;  %v565_v19 = vld [vmem:[%s6011_s1] sm:$0xff] }
  0x3f   : > { %v322_v27 = vsel %vm321_vm2, 0.0, %v320_v15  ;;  %v341_v28 = vmul.f32 12.0, %v340_v20  ;;  %v346_v29 = vand.u32 2147483648, %v4343_v43  ;;  %v329_v30 = vfloor.f32 %v328_v23 }
  0x40   : > { %vm379_vm3 = vcmp.ne.f32.partialorder %v303_v24, 0.0  ;;  %vm395_vm4 = vcmp.lt.f32.partialorder %v303_v24, 0.0  ;;  %v427_v32 = vadd.f32 12.0, %v303_v24  ;;  %v292_v33 = vor.u32 %v291_v46, %v290_v25 }
  0x41   : > { %vm411_vm5 = vmand %vm395_vm4, %vm379_vm3  ;;  %v323_v35 = vand.u32 2147483647, %v322_v27  ;;  %v309_v36 = vsub.f32 %v304_v58, %v308_v26  ;;  %v342_v34 = vsub.f32 %v337_v62, %v341_v28  ;;  %v330_v38 = vmul.f32 12.0, %v329_v30 }
  0x42   : > { %v443_v40 = vsel %vm411_vm5, %v427_v32, %v303_v24  ;;  %vm378_vm6 = vcmp.ne.f32.partialorder %v292_v33, 0.0  ;;  %vm394_vm7 = vcmp.lt.f32.partialorder %v292_v33, 0.0  ;;  %v426_v41 = vadd.f32 12.0, %v292_v33  ;;  %v566_v24 = vld [vmem:[%s6011_s1 + $0x8] sm:$0xff] }
  0x43   : > { %484 = vrot.lane.b32.xlu1 %v443_v40, %s4173_s26  ;;  %vm410_vm8 = vmand %vm394_vm7, %vm378_vm6  ;;  %v325_v42 = vor.u32 %v324_v57, %v323_v35  ;;  %vm310_vm9 = vcmp.eq.f32.partialorder %v309_v36, 12.0  ;;  %vm343_vm10 = vcmp.eq.f32.partialorder %v342_v34, 12.0  ;;  %v331_v44 = vsub.f32 %v326_v5, %v330_v38 }
  0x44   : > { %v442_v45 = vsel %vm410_vm8, %v426_v41, %v292_v33  ;;  %v311_v46 = vsel %vm310_vm9, 0.0, %v309_v36  ;;  %v344_v47 = vsel %vm343_vm10, 0.0, %v342_v34  ;;  %v359_v49 = vand.u32 2147483647, %v4357_v39 }
  0x45   : > { %482 = vrot.lane.b32.xlu0 %v442_v45, %s4173_s26  ;;  %vm381_vm11 = vcmp.ne.f32.partialorder %v325_v42, 0.0  ;;  %vm397_vm12 = vcmp.lt.f32.partialorder %v325_v42, 0.0  ;;  %v429_v51 = vadd.f32 12.0, %v325_v42  ;;  %v312_v52 = vand.u32 2147483647, %v311_v46 }
  0x46   : > { %vm413_vm13 = vmand %vm397_vm12, %vm381_vm11  ;;  %v345_v53 = vand.u32 2147483647, %v344_v47  ;;  %vm332_vm14 = vcmp.eq.f32.partialorder %v331_v44, 12.0  ;;  %v335_v55 = vand.u32 2147483648, %v4346_v54  ;;  %v361_v56 = vmul.f32 0.083333336, %v359_v49 }
  0x47   : > { %v445_v57 = vsel %vm413_vm13, %v429_v51, %v325_v42  ;;  %v314_v58 = vor.u32 %v313_v4, %v312_v52  ;;  %v333_v59 = vsel %vm332_vm14, 0.0, %v331_v44  ;;  %v348_v60 = vand.u32 2147483647, %v4362_v50 }
  0x48   : > { %488 = vrot.lane.b32.xlu1 %v445_v57, %s4173_s26  ;;  %v347_v61 = vor.u32 %v346_v29, %v345_v53  ;;  %v334_v62 = vand.u32 2147483647, %v333_v59  ;;  %v362_v63 = vfloor.f32 %v361_v56  ;;  %v368_v20 = vand.u32 2147483648, %v4357_v39 }
  0x49   : > { %vm380_vm15 = vcmp.ne.f32.partialorder %v314_v58, 0.0  ;;  %vm396_vm0 = vcmp.lt.f32.partialorder %v314_v58, 0.0  ;;  %v428_v3 = vadd.f32 12.0, %v314_v58  ;;  %v350_v5 = vmul.f32 0.083333336, %v348_v60 }
  0x4a   : > { %vm412_vm1 = vmand %vm396_vm0, %vm380_vm15  ;;  %vm383_vm2 = vcmp.ne.f32.partialorder %v347_v61, 0.0  ;;  %vm399_vm3 = vcmp.lt.f32.partialorder %v347_v61, 0.0  ;;  %v431_v6 = vadd.f32 12.0, %v347_v61  ;;  %v336_v7 = vor.u32 %v335_v55, %v334_v62 }
  0x4b   : > { %v444_v11 = vsel %vm412_vm1, %v428_v3, %v314_v58  ;;  %vm415_vm4 = vmand %vm399_vm3, %vm383_vm2  ;;  %v363_v4 = vmul.f32 12.0, %v362_v63  ;;  %v351_v12 = vfloor.f32 %v350_v5  ;;  %v357_v27 = vand.u32 2147483648, %v4362_v50 }
  0x4c   : > { %486 = vrot.lane.b32.xlu0 %v444_v11, %s4173_s26  ;;  %v447_v13 = vsel %vm415_vm4, %v431_v6, %v347_v61  ;;  %vm382_vm5 = vcmp.ne.f32.partialorder %v336_v7, 0.0  ;;  %vm398_vm6 = vcmp.lt.f32.partialorder %v336_v7, 0.0  ;;  %v430_v14 = vadd.f32 12.0, %v336_v7 }
  0x4d   : > { %492 = vrot.lane.b32.xlu1 %v447_v13, %s4173_s26  ;;  %vm414_vm7 = vmand %vm398_vm6, %vm382_vm5  ;;  %v364_v15 = vsub.f32 %v359_v49, %v363_v4  ;;  %v352_v16 = vmul.f32 12.0, %v351_v12  ;;  %v617_v28 = vand.u32 4294901760, %v565_v19  ;;  %v620_v30 = vand.u32 4294901760, %v566_v24 }
  0x4e   : > { %v446_v18 = vsel %vm414_vm7, %v430_v14, %v336_v7  ;;  %v164_v57 = vmul.f32 0.083333336, %v4253_v0  ;;  %v162_v58 = vmul.f32 0.083333336, %v4256_v1  ;;  %vm514_vm0 = vcmask 31744  }
  0x4f   : > { %vm365_vm8 = vcmp.eq.f32.partialorder %v364_v15, 12.0  ;;  %v353_v23 = vsub.f32 %v348_v60, %v352_v16  ;;  %v4381_v35 = vpack.c.bf16 %v620_v30, %v617_v28  ;;  %v845_v36 = vsub.f32 %v565_v19, %v617_v28 }
  0x50   : > { %490 = vrot.lane.b32.xlu0 %v446_v18, %s4173_s26  ;;  %v366_v25 = vsel %vm365_vm8, 0.0, %v364_v15  ;;  %v852_v41 = vsub.f32 %v566_v24, %v620_v30  ;;  %v180_v59 = vfloor.f32 %v164_v57  ;;  %v165_v60 = vmul.f32 0.083333336, %v4259_v2 }
  0x51   : > { %v367_v26 = vand.u32 2147483647, %v366_v25  ;;  %vm354_vm9 = vcmp.eq.f32.partialorder %v353_v23, 12.0  ;;  %3842 = vmatprep.subr.bf16.mxu0 %v4381_v35  ;;  %3830 = vmatprep.subr.bf16.mxu1 %v4381_v35  ;;  %v846_v40 = vand.u32 4294901760, %v845_v36  ;;  %v178_v61 = vfloor.f32 %v162_v58 }
  0x52   : > { %v355_v29 = vsel %vm354_vm9, 0.0, %v353_v23  ;;  %3844 = vmatpush3.bf16.msra.mxu0 %v4381_v35  ;;  %3832 = vmatpush3.bf16.msra.mxu1 %v4381_v35  ;;  %v853_v46 = vand.u32 4294901760, %v852_v41  ;;  %v4392_v55 = vpack.c.bf16 %v852_v41, %v845_v36  ;;  %v163_v62 = vmul.f32 0.083333336, %v4267_v8 }
  0x53   : > { %v369_v32 = vor.u32 %v368_v20, %v367_v26  ;;  %v356_v33 = vand.u32 2147483647, %v355_v29  ;;  %v847_v45 = vsub.f32 %v845_v36, %v846_v40  ;;  %vm531_vm1 = vcmask 64512  }
  0x54   : > { %v854_v51 = vsub.f32 %v852_v41, %v853_v46  ;;  %v4389_v52 = vpack.c.bf16 %v853_v46, %v846_v40  ;;  %vm548_vm2 = vcmask 72704   ;;  %v167_v3 = vmul.f32 0.083333336, %v4270_v9 }
  0x55   : > { %vm385_vm10 = vcmp.ne.f32.partialorder %v369_v32, 0.0  ;;  %vm401_vm11 = vcmp.lt.f32.partialorder %v369_v32, 0.0  ;;  %v433_v34 = vadd.f32 12.0, %v369_v32  ;;  %v358_v38 = vor.u32 %v357_v27, %v356_v33 }
  0x56   : > { %vm417_vm12 = vmand %vm401_vm11, %vm385_vm10  ;;  %v848_v49 = vand.u32 4294901760, %v847_v45  ;;  %v855_v53 = vand.u32 4294901760, %v854_v51  ;;  %3846 = vmatprep.subr.bf16.mxu0 %v4389_v52  ;;  %vm567_vm3 = vcmask 130048   ;;  %v181_v7 = vfloor.f32 %v165_v60 }
  0x57   : > { %v449_v42 = vsel %vm417_vm12, %v433_v34, %v369_v32  ;;  %vm384_vm13 = vcmp.ne.f32.partialorder %v358_v38, 0.0  ;;  %vm400_vm14 = vcmp.lt.f32.partialorder %v358_v38, 0.0  ;;  %v432_v44 = vadd.f32 12.0, %v358_v38 }
  0x58   : > { %496 = vrot.lane.b32.xlu1 %v449_v42, %s4173_s26  ;;  %vm416_vm15 = vmand %vm400_vm14, %vm384_vm13  ;;  %v4394_v56 = vpack.c.bf16 %v855_v53, %v848_v49  ;;  %v179_v11 = vfloor.f32 %v163_v62  ;;  %v166_v2 = vmul.f32 0.083333336, %v4273_v10  ;;  %v183_v14 = vfloor.f32 %v167_v3 }
  0x59   : > { %v448_v47 = vsel %vm416_vm15, %v432_v44, %v358_v38  ;;  %v169_v20 = vmul.f32 0.083333336, %v4281_v22  ;;  %v168_v33 = vmul.f32 0.083333336, %v4286_v31 }
  0x5a   : > { %494 = vrot.lane.b32.xlu0 %v448_v47, %s4173_s26  ;;  %3834 = vmatprep.subr.bf16.mxu1 %v4394_v56  ;;  %v182_v25 = vfloor.f32 %v166_v2 }
  0x5b   : > { %v185_v41 = vfloor.f32 %v169_v20  ;;  %v184_v2 = vfloor.f32 %v168_v33 }
  0x9e   : > { %v471_v63 = vpop.permute.xlu1 %470 }
  0x9f   : > { %v517_v5 = vsel %vm514_vm0, %v180_v59, %v471_v63  ;;  %v467_v6 = vpop.permute.xlu0 %466 }
  0xa0   : > { %v534_v0 = vsel %vm531_vm1, %v517_v5, 1.0  ;;  %v515_v1 = vsel %vm514_vm0, %v178_v61, %v467_v6 }
  0xa1   : > { %v551_v4 = vsel %vm548_vm2, %v534_v0, 0.0  ;;  %v532_v8 = vsel %vm531_vm1, %v515_v1, 1.0 }
  0xa2   : > { %v575_v12 = vsel %vm567_vm3, %v551_v4, 0  ;;  %v549_v9 = vsel %vm548_vm2, %v532_v8, 0.0  ;;  %v473_v13 = vpop.permute.xlu1 %472 }
  0xa3   : > { %v4410_v15 = vand.u32 4294901760, %v575_v12  ;;  %v569_v16 = vsel %vm567_vm3, %v549_v9, 0  ;;  %v518_v18 = vsel %vm514_vm0, %v181_v7, %v473_v13  ;;  %v469_v19 = vpop.permute.xlu0 %468  ;;  %v171_v9 = vmul.f32 0.083333336, %v4304_v17 }
  0xa4   : > { %v4415_v10 = vand.u32 4294901760, %v569_v16  ;;  %v535_v23 = vsel %vm531_vm1, %v518_v18, 1.0  ;;  %v516_v24 = vsel %vm514_vm0, %v179_v11, %v469_v19 }
  0xa5   : > { %v4420_v26 = vsub.f32 %v575_v12, %v4410_v15  ;;  %v552_v27 = vsel %vm548_vm2, %v535_v23, 0.0  ;;  %v533_v28 = vsel %vm531_vm1, %v516_v24, 1.0 }
  0xa6   : > { %v4425_v29 = vsub.f32 %v569_v16, %v4415_v10  ;;  %v578_v30 = vsel %vm567_vm3, %v552_v27, 0  ;;  %v550_v22 = vsel %vm548_vm2, %v533_v28, 0.0  ;;  %v477_v32 = vpop.permute.xlu1 %476  ;;  %v170_v16 = vmul.f32 0.083333336, %v4311_v21 }
  0xa7   : > { %v4430_v36 = vand.u32 4294901760, %v578_v30  ;;  %v572_v34 = vsel %vm567_vm3, %v550_v22, 0  ;;  %v520_v38 = vsel %vm514_vm0, %v183_v14, %v477_v32  ;;  %v475_v40 = vpop.permute.xlu0 %474  ;;  %v705_v51 = vand.u32 4294901760, %v4420_v26 }
  0xa8   : > { %v4434_v42 = vand.u32 4294901760, %v572_v34  ;;  %v537_v44 = vsel %vm531_vm1, %v520_v38, 1.0  ;;  %v519_v45 = vsel %vm514_vm0, %v182_v25, %v475_v40  ;;  %v685_v46 = vand.u32 4294901760, %v4425_v29 }
  0xa9   : > { %v4440_v47 = vsub.f32 %v578_v30, %v4430_v36  ;;  %v554_v31 = vsel %vm548_vm2, %v537_v44, 0.0  ;;  %v536_v49 = vsel %vm531_vm1, %v519_v45, 1.0  ;;  %v706_v4 = vsub.f32 %v4420_v26, %v705_v51 }
  0xaa   : > { %v4446_v53 = vsub.f32 %v572_v34, %v4434_v42  ;;  %v584_v57 = vsel %vm567_vm3, %v554_v31, 0  ;;  %v553_v58 = vsel %vm548_vm2, %v536_v49, 0.0  ;;  %3749 = vmatprep.mubr.f32.mxu0 %v685_v46  ;;  %v481_v59 = vpop.permute.xlu1 %480  ;;  %v686_v60 = vsub.f32 %v4425_v29, %v685_v46 }
  0xab   : > { %v4451_v61 = vand.u32 4294901760, %v584_v57  ;;  %v581_v62 = vsel %vm567_vm3, %v553_v58, 0  ;;  %v522_v63 = vsel %vm514_vm0, %v185_v41, %v481_v59  ;;  %v715_v3 = vand.u32 4294901760, %v4440_v47 }
  0xac   : > { %v4456_v5 = vand.u32 4294901760, %v581_v62  ;;  %v539_v6 = vsel %vm531_vm1, %v522_v63, 1.0  ;;  %v687_v7 = vand.u32 4294901760, %v686_v60  ;;  %v695_v0 = vand.u32 4294901760, %v4446_v53 }
  0xad   : > { %v4461_v1 = vsub.f32 %v584_v57, %v4451_v61  ;;  %v556_v11 = vsel %vm548_vm2, %v539_v6, 0.0  ;;  %v716_v23 = vsub.f32 %v4440_v47, %v715_v3  ;;  %v707_v25 = vand.u32 4294901760, %v706_v4 }
  0xae   : > { %v4466_v8 = vsub.f32 %v581_v62, %v4456_v5  ;;  %v590_v12 = vsel %vm567_vm3, %v556_v11, 0  ;;  %3665 = vmatprep.mubr.f32.mxu1 %v687_v7  ;;  %3750 = vmatmul.mubr.f32.vlgmr.msra.gmra.mrb[0].mxu0 %v695_v0  ;;  %v696_v13 = vsub.f32 %v4446_v53, %v695_v0  ;;  %v187_v28 = vfloor.f32 %v171_v9 }
  0xaf   : > { %v4471_v14 = vand.u32 4294901760, %v590_v12  ;;  %3752 = vmatprep.mubr.f32.mxu0 %v705_v51  ;;  %3848 = vmatpush3.bf16.msra.mxu0 %v4389_v52  ;;  %v735_v24 = vand.u32 4294901760, %v4461_v1  ;;  %v186_v22 = vfloor.f32 %v170_v16  ;;  %v173_v32 = vmul.f32 0.083333336, %v4330_v37 }
  0xb0   : > { %v479_v18 = vpop.permute.xlu0 %478  ;;  %v697_v19 = vand.u32 4294901760, %v696_v13  ;;  %v725_v20 = vand.u32 4294901760, %v4466_v8  ;;  %3850 = vmatprep.subr.bf16.mxu0 %v4381_v35  ;;  %v717_v34 = vand.u32 4294901760, %v716_v23  ;;  %v172_v51 = vmul.f32 0.083333336, %v4339_v48 }
  0xb1   : > { %v521_v17 = vsel %vm514_vm0, %v184_v2, %v479_v18  ;;  %v4481_v27 = vsub.f32 %v590_v12, %v4471_v14  ;;  %v736_v40 = vsub.f32 %v4461_v1, %v735_v24  ;;  %v189_v49 = vfloor.f32 %v173_v32 }
  0xb2   : > { %v538_v21 = vsel %vm531_vm1, %v521_v17, 1.0  ;;  %3666 = vmatmul.mubr.f32.vlgmr.msra.gmra.mrb[0].mxu1 %v697_v19  ;;  %3753 = vmatmul.mubr.f32.gmra.mrb[2].mxu0 %v715_v3  ;;  %v726_v52 = vsub.f32 %v4466_v8, %v725_v20  ;;  %v175_v59 = vmul.f32 0.083333336, %v4343_v43  ;;  %v174_v48 = vmul.f32 0.083333336, %v4346_v54 }
  0xb3   : > { %v555_v30 = vsel %vm548_vm2, %v538_v21, 0.0  ;;  %3836 = vmatpush3.bf16.msra.mxu1 %v4394_v56  ;;  %3668 = vmatprep.mubr.f32.mxu1 %v707_v25  ;;  %v755_v56 = vand.u32 4294901760, %v4481_v27  ;;  %v737_v60 = vand.u32 4294901760, %v736_v40  ;;  %v188_v4 = vfloor.f32 %v172_v51 }
  0xb4   : > { %v587_v33 = vsel %vm567_vm3, %v555_v30, 0  ;;  %3755 = vmatprep.mubr.f32.mxu0 %v725_v20  ;;  %v727_v38 = vand.u32 4294901760, %v726_v52  ;;  %3838 = vmatprep.subr.bf16.mxu1 %v4392_v55  ;;  %v191_v18 = vfloor.f32 %v175_v59  ;;  %v190_v30 = vfloor.f32 %v174_v48 }
  0xb5   : > { %v4491_v41 = vand.u32 4294901760, %v587_v33  ;;  %v485_v44 = vpop.permute.xlu1 %484  ;;  %v756_v11 = vsub.f32 %v4481_v27, %v755_v56 }
  0xb6   : > { %v524_v45 = vsel %vm514_vm0, %v187_v28, %v485_v44  ;;  %3669 = vmatmul.mubr.f32.gmra.mrb[2].mxu1 %v717_v34  ;;  %3756 = vmatmul.mubr.f32.gmra.mrb[4].mxu0 %v735_v24 }
  0xb7   : > { %v4496_v37 = vsub.f32 %v587_v33, %v4491_v41  ;;  %v541_v46 = vsel %vm531_vm1, %v524_v45, 1.0  ;;  %v483_v31 = vpop.permute.xlu0 %482  ;;  %3671 = vmatprep.mubr.f32.mxu1 %v727_v38  ;;  %v757_v17 = vand.u32 4294901760, %v756_v11 }
  0xb8   : > { %v558_v57 = vsel %vm548_vm2, %v541_v46, 0.0  ;;  %v523_v58 = vsel %vm514_vm0, %v186_v22, %v483_v31 }
  0xb9   : > { %v596_v62 = vsel %vm567_vm3, %v558_v57, 0  ;;  %v540_v63 = vsel %vm531_vm1, %v523_v58, 1.0  ;;  %v745_v3 = vand.u32 4294901760, %v4496_v37  ;;  %v177_v58 = vmul.f32 0.083333336, %v4357_v39 }
  0xba   : > { %v4506_v6 = vand.u32 4294901760, %v596_v62  ;;  %v557_v7 = vsel %vm548_vm2, %v540_v63, 0.0  ;;  %v489_v0 = vpop.permute.xlu1 %488  ;;  %3672 = vmatmul.mubr.f32.gmra.mrb[4].mxu1 %v737_v60 }
  0xbb   : > { %v593_v2 = vsel %vm567_vm3, %v557_v7, 0  ;;  %v526_v43 = vsel %vm514_vm0, %v189_v49, %v489_v0  ;;  %3758 = vmatprep.mubr.f32.mxu0 %v745_v3  ;;  %v746_v12 = vsub.f32 %v4496_v37, %v745_v3  ;;  %v176_v0 = vmul.f32 0.083333336, %v4362_v50 }
  0xbc   : > { %v4515_v9 = vsub.f32 %v596_v62, %v4506_v6  ;;  %v4517_v13 = vand.u32 4294901760, %v593_v2  ;;  %v543_v16 = vsel %vm531_vm1, %v526_v43, 1.0  ;;  %3759 = vmatmul.mubr.f32.gmra.mrb[6].mxu0 %v755_v56  ;;  %v193_v43 = vfloor.f32 %v177_v58 }
  0xbd   : > { %v560_v54 = vsel %vm548_vm2, %v543_v16, 0.0  ;;  %v747_v19 = vand.u32 4294901760, %v746_v12  ;;  %v192_v50 = vfloor.f32 %v176_v0 }
  0xbe   : > { %v4522_v20 = vsub.f32 %v593_v2, %v4517_v13  ;;  %v602_v23 = vsel %vm567_vm3, %v560_v54, 0  ;;  %v487_v24 = vpop.permute.xlu0 %486  ;;  %v775_v25 = vand.u32 4294901760, %v4515_v9 }
  0xbf   : > { %v4526_v21 = vand.u32 4294901760, %v602_v23  ;;  %v525_v28 = vsel %vm514_vm0, %v188_v4, %v487_v24  ;;  %v493_v52 = vpop.permute.xlu1 %492  ;;  %3674 = vmatprep.mubr.f32.mxu1 %v747_v19 }
  0xc0   : > { %v542_v22 = vsel %vm531_vm1, %v525_v28, 1.0  ;;  %v528_v32 = vsel %vm514_vm0, %v191_v18, %v493_v52  ;;  %v765_v33 = vand.u32 4294901760, %v4522_v20  ;;  %3675 = vmatmul.mubr.f32.gmra.mrb[6].mxu1 %v757_v17  ;;  %v776_v44 = vsub.f32 %v4515_v9, %v775_v25 }
  0xc1   : > { %v4533_v34 = vsub.f32 %v602_v23, %v4526_v21  ;;  %v559_v38 = vsel %vm548_vm2, %v542_v22, 0.0  ;;  %v545_v40 = vsel %vm531_vm1, %v528_v32, 1.0 }
  0xc2   : > { %v599_v45 = vsel %vm567_vm3, %v559_v38, 0  ;;  %v562_v56 = vsel %vm548_vm2, %v545_v40, 0.0  ;;  %v491_v46 = vpop.permute.xlu0 %490  ;;  %3761 = vmatprep.mubr.f32.mxu0 %v765_v33  ;;  %v766_v31 = vsub.f32 %v4522_v20, %v765_v33  ;;  %v777_v48 = vand.u32 4294901760, %v776_v44 }
  0xc3   : > { %v4541_v49 = vand.u32 4294901760, %v599_v45  ;;  %v608_v51 = vsel %vm567_vm3, %v562_v56, 0  ;;  %v527_v57 = vsel %vm514_vm0, %v190_v30, %v491_v46  ;;  %3762 = vmatmul.mubr.f32.gmra.mrb[8].mxu0 %v775_v25  ;;  %v795_v63 = vand.u32 4294901760, %v4533_v34 }
  0xc4   : > { %v4546_v59 = vand.u32 4294901760, %v608_v51  ;;  %v544_v60 = vsel %vm531_vm1, %v527_v57, 1.0  ;;  %v767_v62 = vand.u32 4294901760, %v766_v31 }
  0xc5   : > { %v4551_v3 = vsub.f32 %v599_v45, %v4541_v49  ;;  %v561_v7 = vsel %vm548_vm2, %v544_v60, 0.0  ;;  %v796_v12 = vsub.f32 %v4533_v34, %v795_v63 }
  0xc6   : > { %v4556_v11 = vsub.f32 %v608_v51, %v4546_v59  ;;  %v605_v39 = vsel %vm567_vm3, %v561_v7, 0  ;;  %3677 = vmatprep.mubr.f32.mxu1 %v767_v62 }
  0xc7   : > { %v4559_v2 = vand.u32 4294901760, %v605_v39  ;;  %v785_v4 = vand.u32 4294901760, %v4551_v3  ;;  %3678 = vmatmul.mubr.f32.gmra.mrb[8].mxu1 %v777_v48  ;;  %v797_v52 = vand.u32 4294901760, %v796_v12 }
  0xc8   : > { %v815_v16 = vand.u32 4294901760, %v4556_v11 }
  0xc9   : > { %v4565_v18 = vsub.f32 %v605_v39, %v4559_v2  ;;  %3764 = vmatprep.mubr.f32.mxu0 %v785_v4  ;;  %v786_v54 = vsub.f32 %v4551_v3, %v785_v4 }
  0xca   : > { %v497_v19 = vpop.permute.xlu1 %496  ;;  %3765 = vmatmul.mubr.f32.gmra.mrb[10].mxu0 %v795_v63  ;;  %v816_v30 = vsub.f32 %v4556_v11, %v815_v16 }
  0xcb   : > { %v530_v23 = vsel %vm514_vm0, %v193_v43, %v497_v19  ;;  %v787_v24 = vand.u32 4294901760, %v786_v54  ;;  %v805_v17 = vand.u32 4294901760, %v4565_v18 }
  0xcc   : > { %v547_v25 = vsel %vm531_vm1, %v530_v23, 1.0  ;;  %v495_v28 = vpop.permute.xlu0 %494  ;;  %v817_v31 = vand.u32 4294901760, %v816_v30 }
  0xcd   : > { %v564_v22 = vsel %vm548_vm2, %v547_v25, 0.0  ;;  %v529_v32 = vsel %vm514_vm0, %v192_v50, %v495_v28  ;;  %3680 = vmatprep.mubr.f32.mxu1 %v787_v24  ;;  %3767 = vmatprep.mubr.f32.mxu0 %v805_v17  ;;  %v806_v33 = vsub.f32 %v4565_v18, %v805_v17 }
  0xce   : > { %v614_v38 = vsel %vm567_vm3, %v564_v22, 0  ;;  %v546_v40 = vsel %vm531_vm1, %v529_v32, 1.0  ;;  %3681 = vmatmul.mubr.f32.gmra.mrb[10].mxu1 %v797_v52  ;;  %3768 = vmatmul.mubr.f32.gmra.mrb[12].mxu0 %v815_v16 }
  0xcf   : > { %v4577_v44 = vand.u32 4294901760, %v614_v38  ;;  %v563_v45 = vsel %vm548_vm2, %v546_v40, 0.0  ;;  %v807_v56 = vand.u32 4294901760, %v806_v33 }
  0xd0   : > { %v611_v46 = vsel %vm567_vm3, %v563_v45, 0 }
  0xd1   : > { %v4582_v51 = vsub.f32 %v614_v38, %v4577_v44  ;;  %v4584_v57 = vand.u32 4294901760, %v611_v46  ;;  %3683 = vmatprep.mubr.f32.mxu1 %v807_v56  ;;  %v4174_v38 = vmov 683565275   ;;  %v4175_v56 = vmov 2475754826  }
  0xd2   : > { %3684 = vmatmul.mubr.f32.gmra.mrb[12].mxu1 %v817_v31  ;;  %v4176_v31 = vmov 2131351028  }
  0xd3   : > { %v4587_v58 = vsub.f32 %v611_v46, %v4584_v57  ;;  %v835_v60 = vand.u32 4294901760, %v4582_v51 }
  0xd5   : > { %v825_v62 = vand.u32 4294901760, %v4587_v58  ;;  %v836_v63 = vsub.f32 %v4582_v51, %v835_v60 }
  0xd7   : > { %3770 = vmatprep.mubr.f32.mxu0 %v825_v62  ;;  %v826_v7 = vsub.f32 %v4587_v58, %v825_v62  ;;  %v837_v48 = vand.u32 4294901760, %v836_v63 }
  0xd8   : > { %3771 = vmatmul.mubr.f32.gmra.mrb[14].mxu0 %v835_v60  ;;  %v4178_v60 = vmov 920167782  }
  0xd9   : > { %v827_v0 = vand.u32 4294901760, %v826_v7  ;;  %3777 = vmatprep.mubr.f32.mxu0 %v4415_v10 }
  0xdb   : > { %3686 = vmatprep.mubr.f32.mxu1 %v827_v0 }
  0xdc   : > { %3687 = vmatmul.mubr.f32.gmra.mrb[14].mxu1 %v837_v48  ;;  %3778 = vmatmul.mubr.f32.vlgmr.msra.gmra.mrb[0].mxu0 %v4434_v42 }
  0xdd   : > { %3693 = vmatprep.mubr.f32.mxu1 %v4415_v10  ;;  %3780 = vmatprep.mubr.f32.mxu0 %v4410_v15 }
  0xde   : > { %3852 = vmatpush3.bf16.msra.mxu0 %v4381_v35 }
  0xe0   : > { %3694 = vmatmul.mubr.f32.vlgmr.msra.gmra.mrb[0].mxu1 %v4434_v42  ;;  %3781 = vmatmul.mubr.f32.gmra.mrb[2].mxu0 %v4430_v36 }
  0xe1   : > { %3840 = vmatpush3.bf16.msra.mxu1 %v4392_v55  ;;  %3696 = vmatprep.mubr.f32.mxu1 %v4410_v15 }
  0xe2   : > { %3783 = vmatprep.mubr.f32.mxu0 %v4456_v5 }
  0xe4   : > { %3697 = vmatmul.mubr.f32.gmra.mrb[2].mxu1 %v4430_v36  ;;  %3784 = vmatmul.mubr.f32.gmra.mrb[4].mxu0 %v4451_v61 }
  0xe5   : > { %3699 = vmatprep.mubr.f32.mxu1 %v4456_v5  ;;  %3786 = vmatprep.mubr.f32.mxu0 %v4491_v41 }
  0xe8   : > { %3700 = vmatmul.mubr.f32.gmra.mrb[4].mxu1 %v4451_v61  ;;  %3787 = vmatmul.mubr.f32.gmra.mrb[6].mxu0 %v4471_v14 }
  0xe9   : > { %3702 = vmatprep.mubr.f32.mxu1 %v4491_v41  ;;  %3789 = vmatprep.mubr.f32.mxu0 %v4517_v13 }
  0xec   : > { %3703 = vmatmul.mubr.f32.gmra.mrb[6].mxu1 %v4471_v14  ;;  %3790 = vmatmul.mubr.f32.gmra.mrb[8].mxu0 %v4506_v6 }
  0xed   : > { %3705 = vmatprep.mubr.f32.mxu1 %v4517_v13  ;;  %3792 = vmatprep.mubr.f32.mxu0 %v4541_v49 }
  0xf0   : > { %3706 = vmatmul.mubr.f32.gmra.mrb[8].mxu1 %v4506_v6  ;;  %3793 = vmatmul.mubr.f32.gmra.mrb[10].mxu0 %v4526_v21 }
  0xf1   : > { %3708 = vmatprep.mubr.f32.mxu1 %v4541_v49  ;;  %3795 = vmatprep.mubr.f32.mxu0 %v4559_v2 }
  0xf4   : > { %3709 = vmatmul.mubr.f32.gmra.mrb[10].mxu1 %v4526_v21  ;;  %3796 = vmatmul.mubr.f32.gmra.mrb[12].mxu0 %v4546_v59 }
  0xf5   : > { %3711 = vmatprep.mubr.f32.mxu1 %v4559_v2  ;;  %3798 = vmatprep.mubr.f32.mxu0 %v4584_v57 }
  0xf8   : > { %3712 = vmatmul.mubr.f32.gmra.mrb[12].mxu1 %v4546_v59  ;;  %3799 = vmatmul.mubr.f32.gmra.mrb[14].mxu0 %v4577_v44 }
  0xf9   : > { %3714 = vmatprep.mubr.f32.mxu1 %v4584_v57  ;;  %3805 = vmatprep.mubr.f32.mxu0 %v4415_v10 }
  0xfc   : > { %3715 = vmatmul.mubr.f32.gmra.mrb[14].mxu1 %v4577_v44  ;;  %3806 = vmatmul.mubr.f32.vlgmr.msra.gmra.mrb[0].mxu0 %v4434_v42 }
  0xfd   : > { %3721 = vmatprep.mubr.f32.mxu1 %v4425_v29  ;;  %3808 = vmatprep.mubr.f32.mxu0 %v4410_v15 }
 0x100   : > { %3722 = vmatmul.mubr.f32.vlgmr.msra.gmra.mrb[0].mxu1 %v4446_v53  ;;  %3809 = vmatmul.mubr.f32.gmra.mrb[2].mxu0 %v4430_v36 }
 0x101   : > { %3724 = vmatprep.mubr.f32.mxu1 %v4420_v26  ;;  %3811 = vmatprep.mubr.f32.mxu0 %v4456_v5 }
 0x104   : > { %3725 = vmatmul.mubr.f32.gmra.mrb[2].mxu1 %v4440_v47  ;;  %3812 = vmatmul.mubr.f32.gmra.mrb[4].mxu0 %v4451_v61 }
 0x105   : > { %3727 = vmatprep.mubr.f32.mxu1 %v4466_v8  ;;  %3814 = vmatprep.mubr.f32.mxu0 %v4491_v41 }
 0x108   : > { %3728 = vmatmul.mubr.f32.gmra.mrb[4].mxu1 %v4461_v1  ;;  %3815 = vmatmul.mubr.f32.gmra.mrb[6].mxu0 %v4471_v14 }
 0x109   : > { %3730 = vmatprep.mubr.f32.mxu1 %v4496_v37  ;;  %3817 = vmatprep.mubr.f32.mxu0 %v4517_v13 }
 0x10c   : > { %3731 = vmatmul.mubr.f32.gmra.mrb[6].mxu1 %v4481_v27  ;;  %3818 = vmatmul.mubr.f32.gmra.mrb[8].mxu0 %v4506_v6 }
 0x10d   : > { %3733 = vmatprep.mubr.f32.mxu1 %v4522_v20  ;;  %3820 = vmatprep.mubr.f32.mxu0 %v4541_v49 }
 0x110   : > { %3734 = vmatmul.mubr.f32.gmra.mrb[8].mxu1 %v4515_v9  ;;  %3821 = vmatmul.mubr.f32.gmra.mrb[10].mxu0 %v4526_v21 }
 0x111   : > { %3736 = vmatprep.mubr.f32.mxu1 %v4551_v3  ;;  %3823 = vmatprep.mubr.f32.mxu0 %v4559_v2 }
 0x114   : > { %3737 = vmatmul.mubr.f32.gmra.mrb[10].mxu1 %v4533_v34  ;;  %3824 = vmatmul.mubr.f32.gmra.mrb[12].mxu0 %v4546_v59 }
 0x115   : > { %3739 = vmatprep.mubr.f32.mxu1 %v4565_v18  ;;  %3826 = vmatprep.mubr.f32.mxu0 %v4584_v57  ;;  %v4177_v57 = vmov 2102212464  }
 0x118   : > { %3740 = vmatmul.mubr.f32.gmra.mrb[12].mxu1 %v4556_v11  ;;  %3827 = vmatmul.mubr.f32.gmra.mrb[14].mxu0 %v4577_v44 }
 0x119   : > { %3742 = vmatprep.mubr.f32.mxu1 %v4587_v58 }
 0x11c   : > { %3743 = vmatmul.mubr.f32.gmra.mrb[14].mxu1 %v4582_v51 }
 0x1cf   : > { %v3807_v35 = vpop.f32.mrb[0].mxu0 }
 0x1d0   : > { %v1626_v55 = vpop.f32.mrb[1].mxu0 }
 0x1d3   : > { %v3723_v15 = vpop.f32.mrb[0].mxu1  ;;  %v3810_v10 = vpop.f32.mrb[2].mxu0 }
 0x1d4   : > { %v4659_v26 = vadd.f32 %v3807_v35, %v3723_v15  ;;  %v1086_v29 = vpop.f32.mrb[1].mxu1  ;;  %v1638_v36 = vpop.f32.mrb[3].mxu0 }
 0x1d5   : > { %v4661_v42 = vadd.f32 %v1626_v55, %v1086_v29  ;;  %v4179_v55 = vmov 1326507024  }
 0x1d6   : > { %v1824_v47 = vand.u32 2147483647, %v4659_v26  ;;  %v1827_v53 = vand.u32 2139095040, %v4659_v26  ;;  %vm1826_vm1 = vcmp.lt.s32.totalorder %v4659_v26, 0 }
 0x1d7   : > { %v1720_v61 = vand.u32 2147483647, %v4661_v42  ;;  %v1723_v5 = vand.u32 2139095040, %v4661_v42  ;;  %v3726_v1 = vpop.f32.mrb[2].mxu1  ;;  %v4667_v8 = vpop.f32.mrb[4].mxu0  ;;  %vm1722_vm3 = vcmp.lt.s32.totalorder %v4661_v42, 0 }
 0x1d8   : > { %v1828_v14 = vshrl.u32 %v1827_v53, 23  ;;  %v1831_v27 = vand.u32 8388607, %v1824_v47  ;;  %v4671_v41 = vadd.f32 %v3810_v10, %v3726_v1  ;;  %v1100_v37 = vpop.f32.mrb[3].mxu1  ;;  %v4677_v20 = vpop.f32.mrb[5].mxu0 }
 0x1d9   : > { %v1724_v6 = vshrl.u32 %v1723_v5, 23  ;;  %v1727_v9 = vand.u32 8388607, %v1720_v61  ;;  %v4675_v13 = vadd.f32 %v1638_v36, %v1100_v37  ;;  %vm4812_vm2 = vcmp.le.f32.partialorder %v1824_v47, 0.7853982 }
 0x1da   : > { %v3487_v21 = vadd.s32 4294967169, %v1828_v14  ;;  %v2035_v49 = vand.u32 2139095040, %v4671_v41  ;;  %v1832_v11 = vor.u32 8388608, %v1831_v27  ;;  %v2032_v4 = vand.u32 2147483647, %v4671_v41 }
 0x1db   : > { %v3483_v34 = vadd.s32 4294967169, %v1724_v6  ;;  %v4680_v59 = vpop.f32.mrb[4].mxu1  ;;  %v4682_v3 = vpop.f32.mrb[6].mxu0  ;;  %v1728_v2 = vor.u32 8388608, %v1727_v9 }
 0x1dc   : > { %v1834_v39 = vadd.s32 1, %v3487_v21  ;;  %v2036_v12 = vshrl.u32 %v2035_v49, 23  ;;  %v4685_v16 = vpop.f32.mrb[5].mxu1  ;;  %v4687_v18 = vpop.f32.mrb[7].mxu0  ;;  %v4695_v52 = vshll.u32 %v1832_v11, 8 }
 0x1dd   : > { %v1730_v43 = vadd.s32 1, %v3483_v34  ;;  %v4699_v22 = vshll.u32 %v1728_v2, 8  ;;  %v4703_v32 = vand.u32 8388607, %v2032_v4 }
 0x1de   : > { %vm1835_vm4 = vcmp.gt.s32.totalorder %v1834_v39, 0  ;;  %v3495_v54 = vadd.s32 4294967169, %v2036_v12 }
 0x1df   : > { %v1836_v50 = vsel %vm1835_vm4, %v1834_v39, 0  ;;  %vm1731_vm5 = vcmp.gt.s32.totalorder %v1730_v43, 0  ;;  %v4689_v19 = vpop.f32.mrb[6].mxu1  ;;  %v4691_v25 = vpop.f32.mrb[8].mxu0 }
 0x1e0   : > { %v1837_v23 = vshrl.u32 %v1836_v50, 5  ;;  %v1838_v24 = vand.u32 31, %v1836_v50  ;;  %v1732_v17 = vsel %vm1731_vm5, %v1730_v43, 0  ;;  %v4693_v28 = vpop.f32.mrb[7].mxu1  ;;  %v4706_v45 = vadd.s32 1, %v3495_v54 }
 0x1e1   : > { %v4697_v30 = vshrl.u32 %v1732_v17, 5  ;;  %v1734_v44 = vand.u32 31, %v1732_v17 }
 0x1e2   : > { %v1839_v33 = vsub.s32 32, %v1838_v24  ;;  %v1841_v40 = vshll.u32 %v4174_v38, %v1838_v24  ;;  %v1844_v46 = vshll.u32 %v4175_v56, %v1838_v24  ;;  %v1847_v51 = vshll.u32 %v4176_v31, %v1838_v24 }
 0x1e3   : > { %v1850_v58 = vshll.u32 %v4177_v57, %v1838_v24  ;;  %v1853_v62 = vshll.u32 %v4178_v60, %v1838_v24  ;;  %vm1856_vm6 = vcmp.lt.s32.totalorder %v1837_v23, 1  ;;  %vm1857_vm7 = vcmp.lt.s32.totalorder %v1837_v23, 2 }
 0x1e4   : > { %v1842_v63 = vshrl.u32 %v4175_v56, %v1839_v33  ;;  %v1845_v7 = vshrl.u32 %v4176_v31, %v1839_v33  ;;  %v1848_v0 = vshrl.u32 %v4177_v57, %v1839_v33  ;;  %v1840_v48 = vshrl.u32 %v4174_v38, %v1839_v33 }
 0x1e5   : > { %v1851_v35 = vshrl.u32 %v4178_v60, %v1839_v33  ;;  %v1854_v15 = vshrl.u32 %v4179_v55, %v1839_v33  ;;  %v1735_v53 = vsub.s32 32, %v1734_v44  ;;  %vm1858_vm8 = vcmp.lt.s32.totalorder %v1837_v23, 3 }
 0x1e6   : > { %v1843_v10 = vor.u32 %v1842_v63, %v1841_v40  ;;  %v1846_v29 = vor.u32 %v1845_v7, %v1844_v46  ;;  %v1849_v36 = vor.u32 %v1848_v0, %v1847_v51  ;;  %vm1859_vm9 = vcmp.lt.s32.totalorder %v1837_v23, 4 }
 0x1e7   : > { %v1852_v5 = vor.u32 %v1851_v35, %v1850_v58  ;;  %v1855_v1 = vor.u32 %v1854_v15, %v1853_v62  ;;  %v1737_v49 = vshll.u32 %v4174_v38, %v1734_v44  ;;  %v1738_v2 = vshrl.u32 %v4175_v56, %v1735_v53 }
 0x1e8   : > { %v1860_v14 = vsel %vm1856_vm6, %v1840_v48, %v1843_v10  ;;  %v1861_v27 = vsel %vm1859_vm9, %v1849_v36, 2102212464  ;;  %v1864_v37 = vsel %vm1856_vm6, %v1843_v10, %v1846_v29  ;;  %v1868_v6 = vsel %vm1856_vm6, %v1846_v29, %v1849_v36 }
 0x1e9   : > { %v1862_v9 = vsel %vm1858_vm8, %v1846_v29, %v1861_v27  ;;  %v1865_v21 = vsel %vm1859_vm9, %v1852_v5, 920167782  ;;  %v1869_v34 = vsel %vm1859_vm9, %v1855_v1, 1326507024  ;;  %v1740_v43 = vshll.u32 %v4175_v56, %v1734_v44  ;;  %v4751_v27 = vpop.f32.mrb[9].mxu0 }
 0x1ea   : > { %v1866_v11 = vsel %vm1858_vm8, %v1849_v36, %v1865_v21  ;;  %v1870_v39 = vsel %vm1858_vm8, %v1852_v5, %v1869_v34  ;;  %v1863_v12 = vsel %vm1857_vm7, %v1860_v14, %v1862_v9  ;;  %v1741_v24 = vshrl.u32 %v4176_v31, %v1735_v53 }
 0x1eb   : > { %v1867_v50 = vsel %vm1857_vm7, %v1864_v37, %v1866_v11  ;;  %v1871_v54 = vsel %vm1857_vm7, %v1868_v6, %v1870_v39  ;;  %v1739_v51 = vor.u32 %v1738_v2, %v1737_v49  ;;  %v1743_v62 = vshll.u32 %v4176_v31, %v1734_v44 }
 0x1ec   : > { %v4729_v17 = vmul.u32.u64.low %v4695_v52, %v1871_v54  ;;  %v4730_v33 = vmul.u32.u64.high %v4695_v52, %v1871_v54, %v4729_v17  ;;  %v4733_v40 = vmul.u32.u64.low %v4695_v52, %v1867_v50  ;;  %v4734_v46 = vmul.u32.u64.high %v4695_v52, %v1867_v50, %v4733_v40  ;;  %v4763_v50 = vpop.f32.mrb[8].mxu1 }
 0x1ed   : > { %v1742_v58 = vor.u32 %v1741_v24, %v1740_v43  ;;  %v1744_v63 = vshrl.u32 %v4177_v57, %v1735_v53  ;;  %v1736_v7 = vshrl.u32 %v4174_v38, %v1735_v53  ;;  %v1746_v23 = vshll.u32 %v4177_v57, %v1734_v44 }
 0x1ee   : > { %v1747_v0 = vshrl.u32 %v4178_v60, %v1735_v53  ;;  %v1750_v48 = vshrl.u32 %v4179_v55, %v1735_v53  ;;  %v1879_v35 = vmul.u32 %v4695_v52, %v1863_v12  ;;  %v1749_v10 = vshll.u32 %v4178_v60, %v1734_v44 }
 0x1ef   : > { %v1745_v15 = vor.u32 %v1744_v63, %v1743_v62  ;;  %vm1752_vm10 = vcmp.lt.s32.totalorder %v4697_v30, 1  ;;  %vm1881_vm11 = vc.u32 %v4730_v33, %v4733_v40  ;;  %v1882_v29 = vadd.s32 1, %v4734_v46 }
 0x1f0   : > { %v1748_v36 = vor.u32 %v1747_v0, %v1746_v23  ;;  %vm1753_vm12 = vcmp.lt.s32.totalorder %v4697_v30, 2  ;;  %v1751_v5 = vor.u32 %v1750_v48, %v1749_v10  ;;  %vm1754_vm13 = vcmp.lt.s32.totalorder %v4697_v30, 3 }
 0x1f1   : > { %vm1755_vm14 = vcmp.lt.s32.totalorder %v4697_v30, 4  ;;  %v1760_v53 = vsel %vm1752_vm10, %v1739_v51, %v1742_v58  ;;  %v1883_v52 = vsel %vm1881_vm11, %v1882_v29, %v4734_v46  ;;  %v1764_v44 = vsel %vm1752_vm10, %v1742_v58, %v1745_v15 }
 0x1f2   : > { %v1757_v1 = vsel %vm1755_vm14, %v1745_v15, 2102212464  ;;  %v1761_v14 = vsel %vm1755_vm14, %v1748_v36, 920167782  ;;  %v1884_v37 = vadd.s32 %v1883_v52, %v1879_v35  ;;  %v1756_v6 = vsel %vm1752_vm10, %v1736_v7, %v1739_v51 }
 0x1f3   : > { %v1762_v9 = vsel %vm1754_vm13, %v1745_v15, %v1761_v14  ;;  %v1765_v21 = vsel %vm1755_vm14, %v1751_v5, 1326507024  ;;  %v1758_v34 = vsel %vm1754_vm13, %v1742_v58, %v1757_v1  ;;  %vm2043_vm15 = vcmp.gt.s32.totalorder %v4706_v45, 0 }
 0x1f4   : > { %v1763_v49 = vsel %vm1753_vm12, %v1760_v53, %v1762_v9  ;;  %v1766_v11 = vsel %vm1754_vm13, %v1748_v36, %v1765_v21  ;;  %v1885_v39 = vadd.s32 536870912, %v1884_v37  ;;  %v2044_v17 = vsel %vm2043_vm15, %v4706_v45, 0 }
 0x1f5   : > { %v1767_v2 = vsel %vm1753_vm12, %v1764_v44, %v1766_v11  ;;  %v4759_v43 = vmul.u32.u64.low %v4699_v22, %v1763_v49  ;;  %v4760_v12 = vmul.u32.u64.high %v4699_v22, %v1763_v49, %v4759_v43  ;;  %v1759_v51 = vsel %vm1753_vm12, %v1756_v6, %v1758_v34 }
 0x1f6   : > { %v4766_v54 = vmul.u32.u64.low %v4699_v22, %v1767_v2  ;;  %v4767_v24 = vmul.u32.u64.high %v4699_v22, %v1767_v2, %v4766_v54  ;;  %v1886_v46 = vshrl.u32 %v1885_v39, 30  ;;  %v2046_v58 = vand.u32 31, %v2044_v17 }
 0x1f7   : > { %v1931_v62 = vand.u32 2139095040, %v4675_v13  ;;  %v4775_v63 = vadd.f32 %v4667_v8, %v4680_v59  ;;  %v4779_v7 = vadd.f32 %v4677_v20, %v4685_v16  ;;  %v1778_v0 = vadd.s32 1, %v4760_v12 }
 0x1f8   : > { %v1887_v23 = vshll.u32 %v1886_v46, 30  ;;  %v2040_v45 = vor.u32 8388608, %v4703_v32  ;;  %v1775_v48 = vmul.u32 %v4699_v22, %v1759_v51  ;;  %vm1777_vm0 = vc.u32 %v4767_v24, %v4759_v43 }
 0x1f9   : > { %v2047_v30 = vsub.s32 32, %v2046_v58  ;;  %v1779_v8 = vsel %vm1777_vm0, %v1778_v0, %v4760_v12  ;;  %v1932_v59 = vshrl.u32 %v1931_v62, 23  ;;  %v1928_v16 = vand.u32 2147483647, %v4675_v13 }
 0x1fa   : > { %v4786_v35 = vsub.s32 %v1884_v37, %v1887_v23  ;;  %v1780_v20 = vadd.s32 %v1779_v8, %v1775_v48  ;;  %v1880_v15 = vadd.s32 %v4733_v40, %v4730_v33  ;;  %v4793_v10 = vshrl.u32 %v2044_v17, 5 }
 0x1fb   : > { %v4795_v22 = vshll.u32 %v2040_v45, 8  ;;  %v1910_v29 = vsub.s32 4, %v1886_v46  ;;  %v2050_v5 = vshrl.u32 %v4175_v56, %v2047_v30  ;;  %v2053_v53 = vshrl.u32 %v4176_v31, %v2047_v30 }
 0x1fc   : > { %v1890_v32 = vsub.s32 0, %v4786_v35  ;;  %v1781_v36 = vadd.s32 536870912, %v1780_v20  ;;  %v2056_v1 = vshrl.u32 %v4177_v57, %v2047_v30  ;;  %v2059_v14 = vshrl.u32 %v4178_v60, %v2047_v30 }
 0x1fd   : > { %v4802_v44 = vadd.s32 4294967169, %v1932_v59  ;;  %v2049_v40 = vshll.u32 %v4174_v38, %v2046_v58  ;;  %v2052_v37 = vshll.u32 %v4175_v56, %v2046_v58  ;;  %v4808_v6 = vand.u32 8388607, %v1928_v16 }
 0x1fe   : > { %v3488_v52 = vmin.u32 %v1890_v32, %v4786_v35  ;;  %v1782_v33 = vshrl.u32 %v1781_v36, 30  ;;  %v2055_v34 = vshll.u32 %v4176_v31, %v2046_v58  ;;  %v2058_v49 = vshll.u32 %v4177_v57, %v2046_v58 }
 0x1ff   : > { %v2062_v11 = vshrl.u32 %v4179_v55, %v2047_v30  ;;  %v1911_v39 = vsel %vm1826_vm1, %v1910_v29, %v1886_v46  ;;  %v2051_v12 = vor.u32 %v2050_v5, %v2049_v40  ;;  %v2054_v54 = vor.u32 %v2053_v53, %v2052_v37 }
 0x200   : > { %v1892_v21 = vclz %v3488_v52  ;;  %v1783_v2 = vshll.u32 %v1782_v33, 30  ;;  %v2057_v47 = vor.u32 %v2056_v1, %v2055_v34  ;;  %v2060_v51 = vor.u32 %v2059_v14, %v2058_v49 }
 0x201   : > { %v2061_v62 = vshll.u32 %v4178_v60, %v2046_v58  ;;  %v1806_v0 = vsub.s32 4, %v1782_v33  ;;  %v2048_v45 = vshrl.u32 %v4174_v38, %v2047_v30  ;;  %vm2064_vm4 = vcmp.lt.s32.totalorder %v4793_v10, 1 }
 0x202   : > { %v3489_v17 = vadd.s32 4294967294, %v1892_v21  ;;  %v4823_v23 = vsub.s32 %v1780_v20, %v1783_v2  ;;  %vm2065_vm6 = vcmp.lt.s32.totalorder %v4793_v10, 2  ;;  %vm2066_vm7 = vcmp.lt.s32.totalorder %v4793_v10, 3 }
 0x203   : > { %v2063_v48 = vor.u32 %v2062_v11, %v2061_v62  ;;  %vm4831_vm8 = vcmp.le.f32.partialorder %v1720_v61, 0.7853982  ;;  %vm2067_vm9 = vcmp.lt.s32.totalorder %v4793_v10, 4  ;;  %v2072_v30 = vsel %vm2064_vm4, %v2051_v12, %v2054_v54 }
 0x204   : > { %vm3490_vm5 = vcmp.lt.s32.totalorder %v3489_v17, 0  ;;  %v1786_v58 = vsub.s32 0, %v4823_v23  ;;  %v2069_v32 = vsel %vm2067_vm9, %v2057_v47, 2102212464  ;;  %v2073_v29 = vsel %vm2067_vm9, %v2060_v51, 920167782 }
 0x205   : > { %v1895_v46 = vsel %vm3490_vm5, 0, %v3489_v17  ;;  %v2074_v61 = vsel %vm2066_vm7, %v2057_v47, %v2073_v29  ;;  %v2076_v53 = vsel %vm2064_vm4, %v2054_v54, %v2057_v47  ;;  %v2077_v40 = vsel %vm2067_vm9, %v2063_v48, 1326507024 }
 0x206   : > { %v1896_v59 = vsub.s32 32, %v1895_v46  ;;  %v1900_v20 = vsub.s32 4294967266, %v1895_v46  ;;  %v1897_v36 = vshll.u32 %v4786_v35, %v1895_v46  ;;  %v3484_v5 = vmin.u32 %v1786_v58, %v4823_v23 }
 0x207   : > { %v2075_v14 = vsel %vm2065_vm6, %v2072_v30, %v2074_v61  ;;  %v1913_v37 = vsel %vm4812_vm2, 0, %v1911_v39  ;;  %v2068_v35 = vsel %vm2064_vm4, %v2048_v45, %v2051_v12  ;;  %v2070_v34 = vsel %vm2066_vm7, %v2054_v54, %v2069_v32 }
 0x208   : > { %v1898_v52 = vshrl.u32 %v1880_v15, %v1896_v59  ;;  %v1901_v1 = vadd.s32 127, %v1900_v20  ;;  %v1788_v21 = vclz %v3484_v5  ;;  %v1807_v15 = vsel %vm1722_vm3, %v1806_v0, %v1782_v33 }
 0x209   : > { %v2078_v2 = vsel %vm2066_vm7, %v2060_v51, %v2077_v40  ;;  %v4860_v39 = vmul.u32.u64.low %v4795_v22, %v2075_v14  ;;  %v4861_v62 = vmul.u32.u64.high %v4795_v22, %v2075_v14, %v4860_v39  ;;  %v2071_v54 = vsel %vm2065_vm6, %v2068_v35, %v2070_v34 }
 0x20a   : > { %v1899_v49 = vor.u32 %v1898_v52, %v1897_v36  ;;  %v1902_v11 = vshll.u32 %v1901_v1, 23  ;;  %v3485_v17 = vadd.s32 4294967294, %v1788_v21  ;;  %v2079_v47 = vsel %vm2065_vm6, %v2076_v53, %v2078_v2  ;;  %v4877_v36 = vpop.f32.mrb[10].mxu0 }
 0x20b   : > { %v4867_v45 = vmul.u32.u64.low %v4795_v22, %v2079_v47  ;;  %v4868_v48 = vmul.u32.u64.high %v4795_v22, %v2079_v47, %v4867_v45  ;;  %v1917_v33 = vadd.s32 3, %v1913_v37  ;;  %v1776_v51 = vadd.s32 %v4759_v43, %v4767_v24  ;;  %v4882_v24 = vpop.f32.mrb[9].mxu1 }
 0x20c   : > { %v1903_v12 = vor.u32 4788187, %v1902_v11  ;;  %vm3486_vm10 = vcmp.lt.s32.totalorder %v3485_v17, 0  ;;  %v1938_v0 = vadd.s32 1, %v4802_v44  ;;  %v1906_v58 = vcvt.s32.f32 %v1899_v49 }
 0x20d   : > { %v1791_v30 = vsel %vm3486_vm10, 0, %v3485_v17  ;;  %v1809_v59 = vsel %vm4831_vm8, 0, %v1807_v15  ;;  %v2087_v32 = vmul.u32 %v4795_v22, %v2071_v54  ;;  %v2090_v29 = vadd.s32 1, %v4861_v62 }
 0x20e   : > { %v1904_v46 = vand.u32 2147483647, %v1903_v12  ;;  %v1792_v20 = vsub.s32 32, %v1791_v30  ;;  %v1796_v10 = vsub.s32 4294967266, %v1791_v30  ;;  %v1793_v43 = vshll.u32 %v4823_v23, %v1791_v30 }
 0x20f   : > { %vm2089_vm11 = vc.u32 %v4868_v48, %v4860_v39  ;;  %vm1939_vm12 = vcmp.gt.s32.totalorder %v1938_v0, 0  ;;  %v1813_v22 = vadd.s32 3, %v1809_v59  ;;  %v4890_v11 = vand.u32 3, %v1917_v33 }
 0x210   : > { %v1907_v5 = vmul.f32 %v1906_v58, %v1904_v46  ;;  %v1794_v44 = vshrl.u32 %v1776_v51, %v1792_v20  ;;  %v1797_v61 = vadd.s32 127, %v1796_v10  ;;  %v2091_v53 = vsel %vm2089_vm11, %v2090_v29, %v4861_v62 }
 0x211   : > { %v1940_v52 = vsel %vm1939_vm12, %v1938_v0, 0  ;;  %v2092_v14 = vadd.s32 %v2091_v53, %v2087_v32  ;;  %vm2034_vm13 = vcmp.lt.s32.totalorder %v4671_v41, 0  ;;  %v4893_v2 = vand.u32 3, %v1813_v22 }
 0x212   : > { %v1908_v1 = vxor.u32 2147483648, %v1907_v5  ;;  %v1942_v40 = vand.u32 31, %v1940_v52  ;;  %v1795_v37 = vor.u32 %v1794_v44, %v1793_v43  ;;  %v1798_v21 = vshll.u32 %v1797_v61, 23 }
 0x213   : > { %v2093_v35 = vadd.s32 536870912, %v2092_v14  ;;  %v1936_v47 = vor.u32 8388608, %v4808_v6  ;;  %v2243_v54 = vand.u32 2139095040, %v4775_v63  ;;  %vm4899_vm14 = vcmp.le.f32.partialorder %v2032_v4, 0.7853982 }
 0x214   : > { %v1909_v23 = vsel %vm1826_vm1, %v1908_v1, %v1907_v5  ;;  %v1943_v34 = vsub.s32 32, %v1942_v40  ;;  %v1799_v15 = vor.u32 4788187, %v1798_v21  ;;  %v1802_v12 = vcvt.s32.f32 %v1795_v37 }
 0x215   : > { %v1912_v49 = vsel %vm4812_vm2, %v4659_v26, %v1909_v23  ;;  %v2094_v17 = vshrl.u32 %v2093_v35, 30  ;;  %v4903_v33 = vshrl.u32 %v1940_v52, 5  ;;  %v1954_v58 = vshll.u32 %v4177_v57, %v1942_v40 }
 0x216   : > { %4045 = vcosq.f32 %v1912_v49  ;;  %v1800_v62 = vand.u32 2147483647, %v1799_v15  ;;  %v1946_v51 = vshrl.u32 %v4175_v56, %v1943_v34  ;;  %v1949_v0 = vshrl.u32 %v4176_v31, %v1943_v34 }
 0x217   : > { %4047 = vsinq.f32 %v1912_v49  ;;  %v2095_v45 = vshll.u32 %v2094_v17, 30  ;;  %v1952_v6 = vshrl.u32 %v4177_v57, %v1943_v34  ;;  %v1955_v30 = vshrl.u32 %v4178_v60, %v1943_v34 }
 0x218   : > { %v1803_v46 = vmul.f32 %v1802_v12, %v1800_v62  ;;  %vm1923_vm15 = vcmp.eq.s32.totalorder %v4890_v11, 2  ;;  %v2118_v59 = vsub.s32 4, %v2094_v17  ;;  %v1945_v20 = vshll.u32 %v4174_v38, %v1942_v40 }
 0x219   : > { %v4911_v4 = vsub.s32 %v2092_v14, %v2095_v45  ;;  %v1948_v10 = vshll.u32 %v4175_v56, %v1942_v40  ;;  %vm1920_vm0 = vcmp.eq.s32.totalorder %v4890_v11, 0  ;;  %v1951_v29 = vshll.u32 %v4176_v31, %v1942_v40 }
 0x21a   : > { %v1804_v32 = vxor.u32 2147483648, %v1803_v46  ;;  %v1956_v5 = vor.u32 %v1955_v30, %v1954_v58  ;;  %v1958_v43 = vshrl.u32 %v4179_v55, %v1943_v34  ;;  %vm1919_vm1 = vcmp.lt.s32.totalorder %v4890_v11, 2  ;;  %v4960_v30 = vpop.f32.mrb[11].mxu0 }
 0x21b   : > { %v2088_v44 = vadd.s32 %v4860_v39, %v4868_v48  ;;  %v2098_v61 = vsub.s32 0, %v4911_v4  ;;  %v1947_v53 = vor.u32 %v1946_v51, %v1945_v20  ;;  %v1950_v52 = vor.u32 %v1949_v0, %v1948_v10 }
 0x21c   : > { %vm1916_vm2 = vweird.f32 %v4659_v26  ;;  %v1805_v1 = vsel %vm1722_vm3, %v1804_v32, %v1803_v46  ;;  %v1953_v22 = vor.u32 %v1952_v6, %v1951_v29  ;;  %v1957_v14 = vshll.u32 %v4178_v60, %v1942_v40 }
 0x21d   : > { %v4926_v37 = vshll.u32 %v1936_v47, 8  ;;  %v1808_v39 = vsel %vm4831_vm8, %v4661_v42, %v1805_v1  ;;  %v3496_v48 = vmin.u32 %v2098_v61, %v4911_v4  ;;  %v2119_v21 = vsel %vm2034_vm13, %v2118_v59, %v2094_v17 }
 0x21e   : > { %vm1963_vm4 = vcmp.lt.s32.totalorder %v4903_v33, 4  ;;  %4049 = vcosq.f32 %v1808_v39  ;;  %v1959_v23 = vor.u32 %v1958_v43, %v1957_v14  ;;  %vm1960_vm3 = vcmp.lt.s32.totalorder %v4903_v33, 1  ;;  %v4979_v14 = vpop.f32.mrb[10].mxu1 }
 0x21f   : > { %v1969_v40 = vsel %vm1963_vm4, %v1956_v5, 920167782  ;;  %4051 = vsinq.f32 %v1808_v39  ;;  %v2100_v49 = vclz %v3496_v48  ;;  %vm1962_vm5 = vcmp.lt.s32.totalorder %v4903_v33, 3 }
 0x220   : > { %v4046_v35 = vpop.eup %4045  ;;  %v1968_v8 = vsel %vm1960_vm3, %v1947_v53, %v1950_v52  ;;  %v2121_v47 = vsel %vm4899_vm14, 0, %v2119_v21  ;;  %v1944_v62 = vshrl.u32 %v4174_v38, %v1943_v34  ;;  %v1970_v12 = vsel %vm1962_vm5, %v1953_v22, %v1969_v40 }
 0x221   : > { %v4048_v15 = vpop.eup %4047  ;;  %v1924_v17 = vxor.u32 2147483648, %v4046_v35  ;;  %v3497_v51 = vadd.s32 4294967294, %v2100_v49  ;;  %vm1961_vm6 = vcmp.lt.s32.totalorder %v4903_v33, 2  ;;  %v1965_v0 = vsel %vm1963_vm4, %v1953_v22, 2102212464 }
 0x222   : > { %v1921_v45 = vxor.u32 2147483648, %v4048_v15  ;;  %v1971_v6 = vsel %vm1961_vm6, %v1968_v8, %v1970_v12  ;;  %v1972_v58 = vsel %vm1960_vm3, %v1950_v52, %v1953_v22  ;;  %v1973_v34 = vsel %vm1963_vm4, %v1959_v23, 1326507024 }
 0x223   : > { %v1925_v46 = vsel %vm1923_vm15, %v1924_v17, %v4048_v15  ;;  %vm3498_vm7 = vcmp.lt.s32.totalorder %v3497_v51, 0  ;;  %v1974_v20 = vsel %vm1962_vm5, %v1956_v5, %v1973_v34  ;;  %v2244_v10 = vshrl.u32 %v2243_v54, 23 }
 0x224   : > { %v1922_v59 = vsel %vm1920_vm0, %v4046_v35, %v1921_v45  ;;  %v2103_v29 = vsel %vm3498_vm7, 0, %v3497_v51  ;;  %v1964_v43 = vsel %vm1960_vm3, %v1944_v62, %v1947_v53  ;;  %v1975_v61 = vsel %vm1961_vm6, %v1972_v58, %v1974_v20 }
 0x225   : > { %v1926_v32 = vsel %vm1919_vm1, %v1922_v59, %v1925_v46  ;;  %vm1812_vm8 = vweird.f32 %v4661_v42  ;;  %v2104_v22 = vsub.s32 32, %v2103_v29  ;;  %v2108_v5 = vsub.s32 4294967266, %v2103_v29 }
 0x226   : > { %v1927_v1 = vsel %vm1916_vm2, nan, %v1926_v32  ;;  %v1966_v54 = vsel %vm1962_vm5, %v1950_v52, %v1965_v0  ;;  %v4985_v11 = vmul.u32.u64.low %v4926_v37, %v1975_v61  ;;  %v4986_v53 = vmul.u32.u64.high %v4926_v37, %v1975_v61, %v4985_v11 }
 0x227   : > { %3385 = vst [vmem:[%s4981_s5 + $0x8] sm:$0xff] %v1927_v1  ;;  %v4989_v26 = vmul.u32.u64.low %v4926_v37, %v1971_v6  ;;  %v4990_v39 = vmul.u32.u64.high %v4926_v37, %v1971_v6, %v4989_v26  ;;  %v2105_v48 = vshll.u32 %v4911_v4, %v2103_v29  ;;  %v2106_v21 = vshrl.u32 %v2088_v44, %v2104_v22 }
 0x228   : > { %v2109_v23 = vadd.s32 127, %v2108_v5  ;;  %v3503_v52 = vadd.s32 4294967169, %v2244_v10  ;;  %v4050_v40 = vpop.eup %4049  ;;  %vm1815_vm9 = vcmp.lt.s32.totalorder %v4893_v2, 2  ;;  %vm1816_vm10 = vcmp.eq.s32.totalorder %v4893_v2, 0 }
 0x229   : > { %vm1819_vm11 = vcmp.eq.s32.totalorder %v4893_v2, 2  ;;  %v1967_v35 = vsel %vm1961_vm6, %v1964_v43, %v1966_v54  ;;  %v4052_v49 = vpop.eup %4051  ;;  %v1820_v8 = vxor.u32 2147483648, %v4050_v40  ;;  %v2107_v15 = vor.u32 %v2106_v21, %v2105_v48 }
 0x22a   : > { %v2110_v17 = vshll.u32 %v2109_v23, 23  ;;  %v2250_v62 = vadd.s32 1, %v3503_v52  ;;  %v1817_v12 = vxor.u32 2147483648, %v4052_v49  ;;  %v2125_v4 = vadd.s32 3, %v2121_v47 }
 0x22b   : > { %vm1985_vm12 = vc.u32 %v4986_v53, %v4989_v26  ;;  %v1986_v44 = vadd.s32 1, %v4990_v39  ;;  %v1821_v45 = vsel %vm1819_vm11, %v1820_v8, %v4052_v49  ;;  %v1983_v0 = vmul.u32 %v4926_v37, %v1967_v35 }
 0x22c   : > { %v2111_v51 = vor.u32 4788187, %v2110_v17  ;;  %vm2251_vm15 = vcmp.gt.s32.totalorder %v2250_v62, 0  ;;  %v1818_v33 = vsel %vm1816_vm10, %v4050_v40, %v1817_v12  ;;  %v2240_v6 = vand.u32 2147483647, %v4775_v63 }
 0x22d   : > { %v1987_v46 = vsel %vm1985_vm12, %v1986_v44, %v4990_v39  ;;  %v2252_v58 = vsel %vm2251_vm15, %v2250_v62, 0  ;;  %v1822_v47 = vsel %vm1815_vm9, %v1818_v33, %v1821_v45  ;;  %v2114_v59 = vcvt.s32.f32 %v2107_v15 }
 0x22e   : > { %v2112_v34 = vand.u32 2147483647, %v2111_v51  ;;  %v1988_v20 = vadd.s32 %v1987_v46, %v1983_v0  ;;  %v1823_v10 = vsel %vm1812_vm8, nan, %v1822_v47  ;;  %v2254_v32 = vand.u32 31, %v2252_v58 }
 0x22f   : > { %3384 = vst [vmem:[%s4981_s5] sm:$0xff] %v1823_v10  ;;  %v5012_v29 = vand.u32 3, %v2125_v4  ;;  %v2247_v61 = vand.u32 8388607, %v2240_v6  ;;  %v2253_v1 = vshrl.u32 %v2252_v58, 5  ;;  %v2139_v2 = vand.u32 2139095040, %v4779_v7 }
 0x230   : > { %v2115_v37 = vmul.f32 %v2114_v59, %v2112_v34  ;;  %v1989_v43 = vadd.s32 536870912, %v1988_v20  ;;  %v2255_v22 = vsub.s32 32, %v2254_v32  ;;  %v2257_v11 = vshll.u32 %v4174_v38, %v2254_v32 }
 0x231   : > { %v2260_v42 = vshll.u32 %v4175_v56, %v2254_v32  ;;  %v2263_v21 = vshll.u32 %v4176_v31, %v2254_v32  ;;  %v2266_v35 = vshll.u32 %v4177_v57, %v2254_v32  ;;  %v2248_v4 = vor.u32 8388608, %v2247_v61 }
 0x232   : > { %v2116_v5 = vxor.u32 2147483648, %v2115_v37  ;;  %v5017_v54 = vshrl.u32 %v1989_v43, 30  ;;  %v2258_v39 = vshrl.u32 %v4175_v56, %v2255_v22  ;;  %v2261_v48 = vshrl.u32 %v4176_v31, %v2255_v22 }
 0x233   : > { %v2264_v23 = vshrl.u32 %v4177_v57, %v2255_v22  ;;  %v2267_v49 = vshrl.u32 %v4178_v60, %v2255_v22  ;;  %v2269_v45 = vshll.u32 %v4178_v60, %v2254_v32  ;;  %v2270_v51 = vshrl.u32 %v4179_v55, %v2255_v22 }
 0x234   : > { %v2117_v52 = vsel %vm2034_vm13, %v2116_v5, %v2115_v37  ;;  %v1991_v40 = vshll.u32 %v5017_v54, 30  ;;  %v2259_v15 = vor.u32 %v2258_v39, %v2257_v11  ;;  %v2262_v17 = vor.u32 %v2261_v48, %v2260_v42 }
 0x235   : > { %v2120_v8 = vsel %vm4899_vm14, %v4671_v41, %v2117_v52  ;;  %v2265_v62 = vor.u32 %v2264_v23, %v2263_v21  ;;  %v2268_v44 = vor.u32 %v2267_v49, %v2266_v35  ;;  %v2140_v0 = vshrl.u32 %v2139_v2, 23 }
 0x236   : > { %4053 = vcosq.f32 %v2120_v8  ;;  %v5033_v12 = vsub.s32 %v1988_v20, %v1991_v40  ;;  %vm1930_vm13 = vcmp.lt.s32.totalorder %v4675_v13, 0  ;;  %vm2272_vm0 = vcmp.lt.s32.totalorder %v2253_v1, 1 }
 0x237   : > { %4055 = vsinq.f32 %v2120_v8  ;;  %vm2274_vm14 = vcmp.lt.s32.totalorder %v2253_v1, 3  ;;  %vm2275_vm1 = vcmp.lt.s32.totalorder %v2253_v1, 4  ;;  %v2271_v9 = vor.u32 %v2270_v51, %v2269_v45 }
 0x238   : > { %v1994_v33 = vsub.s32 0, %v5033_v12  ;;  %v2277_v46 = vsel %vm2275_vm1, %v2265_v62, 2102212464  ;;  %v2280_v58 = vsel %vm2272_vm0, %v2259_v15, %v2262_v17  ;;  %v2281_v47 = vsel %vm2275_vm1, %v2268_v44, 920167782 }
 0x239   : > { %v2256_v59 = vshrl.u32 %v4174_v38, %v2255_v22  ;;  %vm2273_vm2 = vcmp.lt.s32.totalorder %v2253_v1, 2  ;;  %v2282_v20 = vsel %vm2274_vm14, %v2265_v62, %v2281_v47  ;;  %vm2128_vm4 = vcmp.eq.s32.totalorder %v5012_v29, 0  ;;  %v5081_v1 = vpop.f32.mrb[11].mxu1 }
 0x23a   : > { %v3492_v34 = vmin.u32 %v1994_v33, %v5033_v12  ;;  %v2283_v10 = vsel %vm2273_vm2, %v2280_v58, %v2282_v20  ;;  %v2284_v32 = vsel %vm2272_vm0, %v2262_v17, %v2265_v62  ;;  %v2285_v37 = vsel %vm2275_vm1, %v2271_v9, 1326507024 }
 0x23b   : > { %v2288_v43 = vshll.u32 %v2248_v4, 8  ;;  %vm2127_vm3 = vcmp.lt.s32.totalorder %v5012_v29, 2  ;;  %vm2131_vm5 = vcmp.eq.s32.totalorder %v5012_v29, 2  ;;  %v2276_v2 = vsel %vm2272_vm0, %v2256_v59, %v2259_v15  ;;  %v5073_v15 = vpop.f32.mrb[12].mxu0 }
 0x23c   : > { %v1996_v61 = vclz %v3492_v34  ;;  %v2278_v22 = vsel %vm2274_vm14, %v2262_v17, %v2277_v46  ;;  %vm2124_vm6 = vweird.f32 %v4671_v41  ;;  %vm5053_vm7 = vcmp.le.f32.partialorder %v1928_v16, 0.7853982 }
 0x23d   : > { %v2014_v11 = vsub.s32 4, %v5017_v54  ;;  %v2286_v42 = vsel %vm2274_vm14, %v2268_v44, %v2285_v37  ;;  %v5059_v39 = vmul.u32.u64.low %v2288_v43, %v2283_v10  ;;  %v5060_v48 = vmul.u32.u64.high %v2288_v43, %v2283_v10, %v5059_v39 }
 0x23e   : > { %v3493_v21 = vadd.s32 4294967294, %v1996_v61  ;;  %v2287_v23 = vsel %vm2273_vm2, %v2284_v32, %v2286_v42  ;;  %v2136_v52 = vand.u32 2147483647, %v4779_v7  ;;  %v3499_v40 = vadd.s32 4294967169, %v2140_v0 }
 0x23f   : > { %v2279_v35 = vsel %vm2273_vm2, %v2276_v2, %v2278_v22  ;;  %v5066_v16 = vmul.u32.u64.low %v2288_v43, %v2287_v23  ;;  %v5067_v49 = vmul.u32.u64.high %v2288_v43, %v2287_v23, %v5066_v16  ;;  %v5071_v8 = vadd.f32 %v4682_v3, %v4689_v19 }
 0x240   : > { %v4054_v17 = vpop.eup %4053  ;;  %v1984_v62 = vadd.s32 %v4989_v26, %v4986_v53  ;;  %vm3494_vm8 = vcmp.lt.s32.totalorder %v3493_v21, 0  ;;  %v2146_v4 = vadd.s32 1, %v3499_v40  ;;  %v5079_v44 = vadd.f32 %v4687_v18, %v4693_v28 }
 0x241   : > { %v4056_v45 = vpop.eup %4055  ;;  %v2132_v51 = vxor.u32 2147483648, %v4054_v17  ;;  %v1999_v0 = vsel %vm3494_vm8, 0, %v3493_v21  ;;  %v2015_v3 = vsel %vm1930_vm13, %v2014_v11, %v5017_v54  ;;  %v2298_v19 = vadd.s32 1, %v5060_v48 }
 0x242   : > { %v2129_v33 = vxor.u32 2147483648, %v4056_v45  ;;  %v2000_v9 = vsub.s32 32, %v1999_v0  ;;  %v2004_v53 = vsub.s32 4294967266, %v1999_v0  ;;  %v2295_v26 = vmul.u32 %v2288_v43, %v2279_v35 }
 0x243   : > { %v2133_v46 = vsel %vm2131_vm5, %v2132_v51, %v4056_v45  ;;  %v2001_v18 = vshll.u32 %v5033_v12, %v1999_v0  ;;  %vm2297_vm9 = vc.u32 %v5067_v49, %v5059_v39  ;;  %vm2147_vm10 = vcmp.gt.s32.totalorder %v2146_v4, 0 }
 0x244   : > { %v2130_v28 = vsel %vm2128_vm4, %v4054_v17, %v2129_v33  ;;  %v2002_v54 = vshrl.u32 %v1984_v62, %v2000_v9  ;;  %v2005_v58 = vadd.s32 127, %v2004_v53  ;;  %v2299_v47 = vsel %vm2297_vm9, %v2298_v19, %v5060_v48 }
 0x245   : > { %v2134_v34 = vsel %vm2127_vm3, %v2130_v28, %v2133_v46  ;;  %v2300_v59 = vadd.s32 %v2299_v47, %v2295_v26  ;;  %v2143_v20 = vand.u32 8388607, %v2136_v52  ;;  %v2148_v10 = vsel %vm2147_vm10, %v2146_v4, 0 }
 0x246   : > { %v2135_v12 = vsel %vm2124_vm6, nan, %v2134_v34  ;;  %v2003_v32 = vor.u32 %v2002_v54, %v2001_v18  ;;  %v2006_v37 = vshll.u32 %v2005_v58, 23  ;;  %v2017_v43 = vsel %vm5053_vm7, 0, %v2015_v3 }
 0x247   : > { %3387 = vst [vmem:[%s4981_s5 + $0x18] sm:$0xff] %v2135_v12  ;;  %v2301_v61 = vadd.s32 536870912, %v2300_v59  ;;  %v2150_v2 = vand.u32 31, %v2148_v10  ;;  %v2021_v11 = vadd.s32 3, %v2017_v43  ;;  %v2144_v42 = vor.u32 8388608, %v2143_v20 }
 0x248   : > { %v2007_v22 = vor.u32 4788187, %v2006_v37  ;;  %v2010_v23 = vcvt.s32.f32 %v2003_v32  ;;  %v5106_v40 = vshrl.u32 %v2148_v10, 5  ;;  %vm2242_vm11 = vcmp.lt.s32.totalorder %v4775_v63, 0 }
 0x249   : > { %v5104_v29 = vshrl.u32 %v2301_v61, 30  ;;  %v2151_v48 = vsub.s32 32, %v2150_v2  ;;  %v2153_v41 = vshll.u32 %v4174_v38, %v2150_v2  ;;  %v2156_v17 = vshll.u32 %v4175_v56, %v2150_v2 }
 0x24a   : > { %v2008_v21 = vand.u32 2147483647, %v2007_v22  ;;  %v2159_v62 = vshll.u32 %v4176_v31, %v2150_v2  ;;  %v2162_v19 = vshll.u32 %v4177_v57, %v2150_v2  ;;  %v5120_v18 = vand.u32 3, %v2021_v11 }
 0x24b   : > { %v2303_v35 = vshll.u32 %v5104_v29, 30  ;;  %v2154_v16 = vshrl.u32 %v4175_v56, %v2151_v48  ;;  %v2157_v45 = vshrl.u32 %v4176_v31, %v2151_v48  ;;  %v2160_v51 = vshrl.u32 %v4177_v57, %v2151_v48 }
 0x24c   : > { %v2011_v4 = vmul.f32 %v2010_v23, %v2008_v21  ;;  %v2163_v0 = vshrl.u32 %v4178_v60, %v2151_v48  ;;  %v2166_v33 = vshrl.u32 %v4179_v55, %v2151_v48  ;;  %v2165_v58 = vshll.u32 %v4178_v60, %v2150_v2 }
 0x24d   : > { %v5116_v3 = vsub.s32 %v2300_v59, %v2303_v35  ;;  %v2155_v53 = vor.u32 %v2154_v16, %v2153_v41  ;;  %v2158_v26 = vor.u32 %v2157_v45, %v2156_v17  ;;  %v2161_v46 = vor.u32 %v2160_v51, %v2159_v62  ;;  %v5156_v62 = vpop.f32.mrb[13].mxu0 }
 0x24e   : > { %v2012_v9 = vxor.u32 2147483648, %v2011_v4  ;;  %v2164_v54 = vor.u32 %v2163_v0, %v2162_v19  ;;  %v2152_v34 = vshrl.u32 %v4174_v38, %v2151_v48  ;;  %vm2168_vm12 = vcmp.lt.s32.totalorder %v5106_v40, 1 }
 0x24f   : > { %v2306_v28 = vsub.s32 0, %v5116_v3  ;;  %v2184_v59 = vshll.u32 %v2144_v42, 8  ;;  %v2167_v12 = vor.u32 %v2166_v33, %v2165_v58  ;;  %vm2171_vm15 = vcmp.lt.s32.totalorder %v5106_v40, 4 }
 0x250   : > { %v2013_v47 = vsel %vm1930_vm13, %v2012_v9, %v2011_v4  ;;  %v2173_v32 = vsel %vm2171_vm15, %v2161_v46, 2102212464  ;;  %v2176_v37 = vsel %vm2168_vm12, %v2155_v53, %v2158_v26  ;;  %v2177_v43 = vsel %vm2171_vm15, %v2164_v54, 920167782 }
 0x251   : > { %v2016_v20 = vsel %vm5053_vm7, %v4675_v13, %v2013_v47  ;;  %v3504_v10 = vmin.u32 %v2306_v28, %v5116_v3  ;;  %vm2169_vm13 = vcmp.lt.s32.totalorder %v5106_v40, 2  ;;  %vm2170_vm0 = vcmp.lt.s32.totalorder %v5106_v40, 3  ;;  %v5176_v28 = vpop.f32.mrb[12].mxu1 }
 0x252   : > { %4057 = vcosq.f32 %v2016_v20  ;;  %v2326_v5 = vsub.s32 4, %v5104_v29  ;;  %v2172_v2 = vsel %vm2168_vm12, %v2152_v34, %v2155_v53  ;;  %v2178_v22 = vsel %vm2170_vm0, %v2161_v46, %v2177_v43 }
 0x253   : > { %4059 = vsinq.f32 %v2016_v20  ;;  %v2308_v61 = vclz %v3504_v10  ;;  %v2180_v11 = vsel %vm2168_vm12, %v2158_v26, %v2161_v46  ;;  %v2174_v48 = vsel %vm2170_vm0, %v2158_v26, %v2173_v32 }
 0x254   : > { %v2179_v21 = vsel %vm2169_vm13, %v2176_v37, %v2178_v22  ;;  %v2181_v23 = vsel %vm2171_vm15, %v2167_v12, 1326507024  ;;  %v2451_v17 = vand.u32 2139095040, %v5071_v8  ;;  %vm5160_vm14 = vcmp.le.f32.partialorder %v2240_v6, 0.7853982 }
 0x255   : > { %v3505_v42 = vadd.s32 4294967294, %v2308_v61  ;;  %v2182_v41 = vsel %vm2170_vm0, %v2164_v54, %v2181_v23  ;;  %v5151_v35 = vmul.u32.u64.low %v2184_v59, %v2179_v21  ;;  %v5152_v16 = vmul.u32.u64.high %v2184_v59, %v2179_v21, %v5151_v35 }
 0x256   : > { %v2296_v45 = vadd.s32 %v5059_v39, %v5067_v49  ;;  %v2183_v51 = vsel %vm2169_vm13, %v2180_v11, %v2182_v41  ;;  %v2452_v9 = vshrl.u32 %v2451_v17, 23  ;;  %v2327_v6 = vsel %vm2242_vm11, %v2326_v5, %v5104_v29 }
 0x257   : > { %vm3506_vm1 = vcmp.lt.s32.totalorder %v3505_v42, 0  ;;  %v5168_v19 = vmul.u32.u64.low %v2184_v59, %v2183_v51  ;;  %v5169_v33 = vmul.u32.u64.high %v2184_v59, %v2183_v51, %v5168_v19  ;;  %v2175_v46 = vsel %vm2169_vm13, %v2172_v2, %v2174_v48 }
 0x258   : > { %v2311_v0 = vsel %vm3506_vm1, 0, %v3505_v42  ;;  %vm2023_vm2 = vcmp.lt.s32.totalorder %v5120_v18, 2  ;;  %vm2024_vm4 = vcmp.eq.s32.totalorder %v5120_v18, 0  ;;  %v2194_v39 = vadd.s32 1, %v5152_v16 }
 0x259   : > { %v2312_v53 = vsub.s32 32, %v2311_v0  ;;  %v2316_v26 = vsub.s32 4294967266, %v2311_v0  ;;  %v3511_v49 = vadd.s32 4294967169, %v2452_v9  ;;  %v2313_v54 = vshll.u32 %v5116_v3, %v2311_v0 }
 0x25a   : > { %v2448_v34 = vand.u32 2147483647, %v5071_v8  ;;  %v2329_v29 = vsel %vm5160_vm14, 0, %v2327_v6  ;;  %v2191_v40 = vmul.u32 %v2184_v59, %v2175_v46  ;;  %vm2193_vm3 = vc.u32 %v5169_v33, %v5151_v35 }
 0x25b   : > { %v2314_v58 = vshrl.u32 %v2296_v45, %v2312_v53  ;;  %v2317_v47 = vadd.s32 127, %v2316_v26  ;;  %v2458_v10 = vadd.s32 1, %v3511_v49  ;;  %v2195_v61 = vsel %vm2193_vm3, %v2194_v39, %v5152_v16 }
 0x25c   : > { %v4058_v20 = vpop.eup %4057  ;;  %vm2027_vm5 = vcmp.eq.s32.totalorder %v5120_v18, 2  ;;  %v2196_v5 = vadd.s32 %v2195_v61, %v2191_v40  ;;  %v2333_v11 = vadd.s32 3, %v2329_v29  ;;  %v2455_v21 = vand.u32 8388607, %v2448_v34 }
 0x25d   : > { %v4060_v12 = vpop.eup %4059  ;;  %v2028_v32 = vxor.u32 2147483648, %v4058_v20  ;;  %v2315_v37 = vor.u32 %v2314_v58, %v2313_v54  ;;  %v2318_v43 = vshll.u32 %v2317_v47, 23  ;;  %vm2459_vm6 = vcmp.gt.s32.totalorder %v2458_v10, 0 }
 0x25e   : > { %v2025_v3 = vxor.u32 2147483648, %v4060_v12  ;;  %v2460_v59 = vsel %vm2459_vm6, %v2458_v10, 0  ;;  %v2197_v48 = vadd.s32 536870912, %v2196_v5  ;;  %vm2020_vm7 = vweird.f32 %v4675_v13 }
 0x25f   : > { %v2029_v2 = vsel %vm2027_vm5, %v2028_v32, %v4060_v12  ;;  %v2319_v22 = vor.u32 4788187, %v2318_v43  ;;  %v2462_v23 = vand.u32 31, %v2460_v59  ;;  %v2322_v17 = vcvt.s32.f32 %v2315_v37 }
 0x260   : > { %v2026_v42 = vsel %vm2024_vm4, %v4058_v20, %v2025_v3  ;;  %v5196_v51 = vshrl.u32 %v2197_v48, 30  ;;  %v2347_v19 = vand.u32 2139095040, %v5079_v44  ;;  %v5200_v53 = vand.u32 3, %v2333_v11 }
 0x261   : > { %v2030_v41 = vsel %vm2023_vm2, %v2026_v42, %v2029_v2  ;;  %v2320_v16 = vand.u32 2147483647, %v2319_v22  ;;  %v2463_v0 = vsub.s32 32, %v2462_v23  ;;  %v2456_v6 = vor.u32 8388608, %v2455_v21 }
 0x262   : > { %v2031_v45 = vsel %vm2020_vm7, nan, %v2030_v41  ;;  %v2199_v26 = vshll.u32 %v5196_v51, 30  ;;  %v2465_v13 = vshll.u32 %v4174_v38, %v2462_v23  ;;  %v2461_v47 = vshrl.u32 %v2460_v59, 5 }
 0x263   : > { %3386 = vst [vmem:[%s4981_s5 + $0x10] sm:$0xff] %v2031_v45  ;;  %v2323_v9 = vmul.f32 %v2322_v17, %v2320_v16  ;;  %v2466_v18 = vshrl.u32 %v4175_v56, %v2463_v0  ;;  %v2469_v39 = vshrl.u32 %v4176_v31, %v2463_v0  ;;  %v2472_v49 = vshrl.u32 %v4177_v57, %v2463_v0 }
 0x264   : > { %v2475_v54 = vshrl.u32 %v4178_v60, %v2463_v0  ;;  %v5208_v58 = vsub.s32 %v2196_v5, %v2199_v26  ;;  %v2468_v20 = vshll.u32 %v4175_v56, %v2462_v23  ;;  %v2348_v29 = vshrl.u32 %v2347_v19, 23 }
 0x265   : > { %v2324_v46 = vxor.u32 2147483648, %v2323_v9  ;;  %v2467_v10 = vor.u32 %v2466_v18, %v2465_v13  ;;  %v2471_v12 = vshll.u32 %v4176_v31, %v2462_v23  ;;  %v2474_v32 = vshll.u32 %v4177_v57, %v2462_v23  ;;  %v5235_v13 = vpop.f32.mrb[13].mxu1 }
 0x266   : > { %v2202_v43 = vsub.s32 0, %v5208_v58  ;;  %v2470_v61 = vor.u32 %v2469_v39, %v2468_v20  ;;  %v2477_v3 = vshll.u32 %v4178_v60, %v2462_v23  ;;  %vm2138_vm8 = vcmp.lt.s32.totalorder %v4779_v7, 0 }
 0x267   : > { %v2325_v40 = vsel %vm2242_vm11, %v2324_v46, %v2323_v9  ;;  %v2473_v5 = vor.u32 %v2472_v49, %v2471_v12  ;;  %v2476_v2 = vor.u32 %v2475_v54, %v2474_v32  ;;  %v2478_v22 = vshrl.u32 %v4179_v55, %v2463_v0 }
 0x268   : > { %v2328_v37 = vsel %vm5160_vm14, %v4775_v63, %v2325_v40  ;;  %v3500_v11 = vmin.u32 %v2202_v43, %v5208_v58  ;;  %v5223_v59 = vshll.u32 %v2456_v6, 8  ;;  %v3507_v42 = vadd.s32 4294967169, %v2348_v29  ;;  %v5233_v6 = vpop.f32.mrb[14].mxu0 }
 0x269   : > { %4061 = vcosq.f32 %v2328_v37  ;;  %v2222_v4 = vsub.s32 4, %v5196_v51  ;;  %v2464_v48 = vshrl.u32 %v4174_v38, %v2463_v0  ;;  %v2479_v21 = vor.u32 %v2478_v22, %v2477_v3 }
 0x26a   : > { %4063 = vsinq.f32 %v2328_v37  ;;  %vm2480_vm9 = vcmp.lt.s32.totalorder %v2461_v47, 1  ;;  %v2204_v23 = vclz %v3500_v11  ;;  %vm2482_vm10 = vcmp.lt.s32.totalorder %v2461_v47, 3 }
 0x26b   : > { %vm2483_vm11 = vcmp.lt.s32.totalorder %v2461_v47, 4  ;;  %v2488_v41 = vsel %vm2480_vm9, %v2467_v10, %v2470_v61  ;;  %vm2339_vm12 = vcmp.eq.s32.totalorder %v5200_v53, 2  ;;  %v2492_v45 = vsel %vm2480_vm9, %v2470_v61, %v2473_v5 }
 0x26c   : > { %v2485_v16 = vsel %vm2483_vm11, %v2473_v5, 2102212464  ;;  %v2489_v17 = vsel %vm2483_vm11, %v2476_v2, 920167782  ;;  %v2493_v19 = vsel %vm2483_vm11, %v2479_v21, 1326507024  ;;  %v2484_v46 = vsel %vm2480_vm9, %v2464_v48, %v2467_v10 }
 0x26d   : > { %vm2336_vm15 = vcmp.eq.s32.totalorder %v5200_v53, 0  ;;  %v3501_v9 = vadd.s32 4294967294, %v2204_v23  ;;  %vm2481_vm13 = vcmp.lt.s32.totalorder %v2461_v47, 2  ;;  %v2490_v0 = vsel %vm2482_vm10, %v2473_v5, %v2489_v17 }
 0x26e   : > { %v2494_v26 = vsel %vm2482_vm10, %v2476_v2, %v2493_v19  ;;  %vm2335_vm0 = vcmp.lt.s32.totalorder %v5200_v53, 2  ;;  %vm5240_vm14 = vcmp.le.f32.partialorder %v2136_v52, 0.7853982  ;;  %v2491_v39 = vsel %vm2481_vm13, %v2488_v41, %v2490_v0 }
 0x26f   : > { %v2495_v49 = vsel %vm2481_vm13, %v2492_v45, %v2494_v26  ;;  %v2344_v54 = vand.u32 2147483647, %v5079_v44  ;;  %vm2332_vm1 = vweird.f32 %v4775_v63  ;;  %vm3502_vm2 = vcmp.lt.s32.totalorder %v3501_v9, 0 }
 0x270   : > { %v2486_v20 = vsel %vm2482_vm10, %v2470_v61, %v2485_v16  ;;  %v5251_v29 = vmul.u32.u64.low %v5223_v59, %v2495_v49  ;;  %v5252_v40 = vmul.u32.u64.high %v5223_v59, %v2495_v49, %v5251_v29  ;;  %v2207_v52 = vsel %vm3502_vm2, 0, %v3501_v9 }
 0x271   : > { %v5255_v12 = vmul.u32.u64.low %v5223_v59, %v2491_v39  ;;  %v5256_v32 = vmul.u32.u64.high %v5223_v59, %v2491_v39, %v5255_v12  ;;  %v2354_v10 = vadd.s32 1, %v3507_v42  ;;  %v2192_v37 = vadd.s32 %v5151_v35, %v5169_v33 }
 0x272   : > { %v2208_v43 = vsub.s32 32, %v2207_v52  ;;  %v2212_v3 = vsub.s32 4294967266, %v2207_v52  ;;  %v2223_v61 = vsel %vm2138_vm8, %v2222_v4, %v5196_v51  ;;  %v2487_v2 = vsel %vm2481_vm13, %v2484_v46, %v2486_v20 }
 0x273   : > { %v4062_v5 = vpop.eup %4061  ;;  %vm2355_vm4 = vcmp.gt.s32.totalorder %v2354_v10, 0  ;;  %v5267_v22 = vadd.f32 %v4691_v25, %v4763_v50  ;;  %v5271_v11 = vadd.f32 %v4751_v27, %v4882_v24  ;;  %v2209_v33 = vshll.u32 %v5208_v58, %v2207_v52 }
 0x274   : > { %v4064_v42 = vpop.eup %4063  ;;  %v2340_v35 = vxor.u32 2147483648, %v4062_v5  ;;  %v2210_v48 = vshrl.u32 %v2192_v37, %v2208_v43  ;;  %v2213_v21 = vadd.s32 127, %v2212_v3  ;;  %vm2505_vm3 = vc.u32 %v5252_v40, %v5255_v12 }
 0x275   : > { %v2337_v23 = vxor.u32 2147483648, %v4064_v42  ;;  %v2506_v51 = vadd.s32 1, %v5256_v32  ;;  %v2356_v47 = vsel %vm2355_vm4, %v2354_v10, 0  ;;  %v2503_v24 = vmul.u32 %v5223_v59, %v2487_v2 }
 0x276   : > { %v2341_v25 = vsel %vm2339_vm12, %v2340_v35, %v4064_v42  ;;  %v2211_v50 = vor.u32 %v2210_v48, %v2209_v33  ;;  %v2214_v27 = vshll.u32 %v2213_v21, 23  ;;  %v2351_v41 = vand.u32 8388607, %v2344_v54 }
 0x277   : > { %v2338_v58 = vsel %vm2336_vm15, %v4062_v5, %v2337_v23  ;;  %v2507_v4 = vsel %vm2505_vm3, %v2506_v51, %v5256_v32  ;;  %v2358_v16 = vand.u32 31, %v2356_v47  ;;  %v2225_v19 = vsel %vm5240_vm14, 0, %v2223_v61 }
 0x278   : > { %v2342_v17 = vsel %vm2335_vm0, %v2338_v58, %v2341_v25  ;;  %v2215_v45 = vor.u32 4788187, %v2214_v27  ;;  %v2508_v9 = vadd.s32 %v2507_v4, %v2503_v24  ;;  %v2218_v46 = vcvt.s32.f32 %v2211_v50 }
 0x279   : > { %v2343_v59 = vsel %vm2332_vm1, nan, %v2342_v17  ;;  %v2359_v0 = vsub.s32 32, %v2358_v16  ;;  %v2229_v49 = vadd.s32 3, %v2225_v19  ;;  %v2352_v20 = vor.u32 8388608, %v2351_v41 }
 0x27a   : > { %3389 = vst [vmem:[%s4981_s5 + $0x28] sm:$0xff] %v2343_v59  ;;  %v2216_v26 = vand.u32 2147483647, %v2215_v45  ;;  %v2509_v39 = vadd.s32 536870912, %v2508_v9  ;;  %v2361_v63 = vshll.u32 %v4174_v38, %v2358_v16  ;;  %v2364_v43 = vshll.u32 %v4175_v56, %v2358_v16 }
 0x27b   : > { %v2362_v29 = vshrl.u32 %v4175_v56, %v2359_v0  ;;  %v2365_v53 = vshrl.u32 %v4176_v31, %v2359_v0  ;;  %v2368_v10 = vshrl.u32 %v4177_v57, %v2359_v0  ;;  %v2371_v37 = vshrl.u32 %v4178_v60, %v2359_v0 }
 0x27c   : > { %v2219_v52 = vmul.f32 %v2218_v46, %v2216_v26  ;;  %v2510_v32 = vshrl.u32 %v2509_v39, 30  ;;  %v2370_v3 = vshll.u32 %v4177_v57, %v2358_v16  ;;  %v2374_v61 = vshrl.u32 %v4179_v55, %v2359_v0 }
 0x27d   : > { %v2357_v42 = vshrl.u32 %v2356_v47, 5  ;;  %v2367_v35 = vshll.u32 %v4176_v31, %v2358_v16  ;;  %v2363_v33 = vor.u32 %v2362_v29, %v2361_v63  ;;  %v2366_v48 = vor.u32 %v2365_v53, %v2364_v43 }
 0x27e   : > { %v2220_v5 = vxor.u32 2147483648, %v2219_v52  ;;  %v2511_v2 = vshll.u32 %v2510_v32, 30  ;;  %v2372_v21 = vor.u32 %v2371_v37, %v2370_v3  ;;  %v2373_v23 = vshll.u32 %v4178_v60, %v2358_v16 }
 0x27f   : > { %v5304_v25 = vand.u32 3, %v2229_v49  ;;  %v2369_v27 = vor.u32 %v2368_v10, %v2367_v35  ;;  %v2360_v47 = vshrl.u32 %v4174_v38, %v2359_v0  ;;  %v2392_v4 = vshll.u32 %v2352_v20, 8 }
 0x280   : > { %v2221_v51 = vsel %vm2138_vm8, %v2220_v5, %v2219_v52  ;;  %v5306_v50 = vsub.s32 %v2508_v9, %v2511_v2  ;;  %v2375_v58 = vor.u32 %v2374_v61, %v2373_v23  ;;  %vm2376_vm5 = vcmp.lt.s32.totalorder %v2357_v42, 1  ;;  %v5346_v23 = vpop.f32.mrb[14].mxu1 }
 0x281   : > { %v2224_v24 = vsel %vm5240_vm14, %v4779_v7, %v2221_v51  ;;  %vm2379_vm6 = vcmp.lt.s32.totalorder %v2357_v42, 4  ;;  %vm2378_vm7 = vcmp.lt.s32.totalorder %v2357_v42, 3  ;;  %v2384_v16 = vsel %vm2376_vm5, %v2363_v33, %v2366_v48 }
 0x282   : > { %4065 = vcosq.f32 %v2224_v24  ;;  %v2514_v41 = vsub.s32 0, %v5306_v50  ;;  %v2385_v17 = vsel %vm2379_vm6, %v2372_v21, 920167782  ;;  %vm2377_vm8 = vcmp.lt.s32.totalorder %v2357_v42, 2 }
 0x283   : > { %4067 = vsinq.f32 %v2224_v24  ;;  %v2381_v19 = vsel %vm2379_vm6, %v2369_v27, 2102212464  ;;  %v2386_v18 = vsel %vm2378_vm7, %v2369_v27, %v2385_v17  ;;  %v2534_v9 = vsub.s32 4, %v2510_v32 }
 0x284   : > { %v3512_v45 = vmin.u32 %v2514_v41, %v5306_v50  ;;  %v2387_v59 = vsel %vm2377_vm8, %v2384_v16, %v2386_v18  ;;  %v2388_v0 = vsel %vm2376_vm5, %v2366_v48, %v2369_v27  ;;  %v2389_v26 = vsel %vm2379_vm6, %v2375_v58, 1326507024 }
 0x285   : > { %vm5319_vm9 = vcmp.le.f32.partialorder %v2448_v34, 0.7853982  ;;  %v2380_v49 = vsel %vm2376_vm5, %v2360_v47, %v2363_v33  ;;  %v2382_v20 = vsel %vm2378_vm7, %v2366_v48, %v2381_v19  ;;  %v2390_v29 = vsel %vm2378_vm7, %v2372_v21, %v2389_v26  ;;  %v5331_v34 = vpop.f32.mrb[15].mxu0 }
 0x286   : > { %v2516_v39 = vclz %v3512_v45  ;;  %v5324_v53 = vmul.u32.u64.low %v2392_v4, %v2387_v59  ;;  %v5325_v52 = vmul.u32.u64.high %v2392_v4, %v2387_v59, %v5324_v53  ;;  %vm2450_vm10 = vcmp.lt.s32.totalorder %v5071_v8, 0 }
 0x287   : > { %v2391_v37 = vsel %vm2377_vm8, %v2388_v0, %v2390_v29  ;;  %v2659_v63 = vand.u32 2139095040, %v5267_v22  ;;  %vm2228_vm11 = vweird.f32 %v4779_v7  ;;  %vm2232_vm12 = vcmp.eq.s32.totalorder %v5304_v25, 0 }
 0x288   : > { %v3513_v10 = vadd.s32 4294967294, %v2516_v39  ;;  %v2535_v43 = vsel %vm2450_vm10, %v2534_v9, %v2510_v32  ;;  %v5337_v3 = vmul.u32.u64.low %v2392_v4, %v2391_v37  ;;  %v5338_v61 = vmul.u32.u64.high %v2392_v4, %v2391_v37, %v5337_v3 }
 0x289   : > { %vm2235_vm15 = vcmp.eq.s32.totalorder %v5304_v25, 2  ;;  %v2383_v5 = vsel %vm2377_vm8, %v2380_v49, %v2382_v20  ;;  %v2660_v2 = vshrl.u32 %v2659_v63, 23  ;;  %v2504_v35 = vadd.s32 %v5255_v12, %v5252_v40 }
 0x28a   : > { %vm3514_vm13 = vcmp.lt.s32.totalorder %v3513_v10, 0  ;;  %v2402_v48 = vadd.s32 1, %v5325_v52  ;;  %v2656_v21 = vand.u32 2147483647, %v5267_v22  ;;  %v2537_v24 = vsel %vm5319_vm9, 0, %v2535_v43 }
 0x28b   : > { %v2519_v33 = vsel %vm3514_vm13, 0, %v3513_v10  ;;  %v3519_v47 = vadd.s32 4294967169, %v2660_v2  ;;  %v2399_v16 = vmul.u32 %v2392_v4, %v2383_v5  ;;  %vm2401_vm0 = vc.u32 %v5338_v61, %v5324_v53 }
 0x28c   : > { %v4066_v32 = vpop.eup %4065  ;;  %v2520_v51 = vsub.s32 32, %v2519_v33  ;;  %v2524_v27 = vsub.s32 4294967266, %v2519_v33  ;;  %v2521_v41 = vshll.u32 %v5306_v50, %v2519_v33  ;;  %v2403_v45 = vsel %vm2401_vm0, %v2402_v48, %v5325_v52 }
 0x28d   : > { %v4068_v42 = vpop.eup %4067  ;;  %v2236_v58 = vxor.u32 2147483648, %v4066_v32  ;;  %v2404_v18 = vadd.s32 %v2403_v45, %v2399_v16  ;;  %v2666_v9 = vadd.s32 1, %v3519_v47  ;;  %v2555_v59 = vand.u32 2139095040, %v5271_v11 }
 0x28e   : > { %v2233_v40 = vxor.u32 2147483648, %v4068_v42  ;;  %v2522_v12 = vshrl.u32 %v2504_v35, %v2520_v51  ;;  %v2525_v17 = vadd.s32 127, %v2524_v27  ;;  %vm2231_vm14 = vcmp.lt.s32.totalorder %v5304_v25, 2 }
 0x28f   : > { %v2237_v19 = vsel %vm2235_vm15, %v2236_v58, %v4068_v42  ;;  %v2541_v39 = vadd.s32 3, %v2537_v24  ;;  %v2405_v49 = vadd.s32 536870912, %v2404_v18  ;;  %vm2667_vm1 = vcmp.gt.s32.totalorder %v2666_v9, 0 }
 0x290   : > { %v2234_v50 = vsel %vm2232_vm12, %v4066_v32, %v2233_v40  ;;  %v2523_v4 = vor.u32 %v2522_v12, %v2521_v41  ;;  %v2526_v0 = vshll.u32 %v2525_v17, 23  ;;  %v2663_v52 = vand.u32 8388607, %v2656_v21 }
 0x291   : > { %v2238_v26 = vsel %vm2231_vm14, %v2234_v50, %v2237_v19  ;;  %v2668_v10 = vsel %vm2667_vm1, %v2666_v9, 0  ;;  %v2406_v37 = vshrl.u32 %v2405_v49, 30  ;;  %v2556_v43 = vshrl.u32 %v2555_v59, 23 }
 0x292   : > { %v2239_v20 = vsel %vm2228_vm11, nan, %v2238_v26  ;;  %v2527_v29 = vor.u32 4788187, %v2526_v0  ;;  %v2670_v63 = vand.u32 31, %v2668_v10  ;;  %v2530_v3 = vcvt.s32.f32 %v2523_v4 }
 0x293   : > { %3388 = vst [vmem:[%s4981_s5 + $0x20] sm:$0xff] %v2239_v20  ;;  %v5367_v5 = vadd.f32 %v4877_v36, %v4979_v14  ;;  %v5369_v2 = vand.u32 3, %v2541_v39  ;;  %vm2346_vm2 = vcmp.lt.s32.totalorder %v5079_v44, 0  ;;  %v2407_v7 = vshll.u32 %v2406_v37, 30 }
 0x294   : > { %v2528_v25 = vand.u32 2147483647, %v2527_v29  ;;  %v2671_v35 = vsub.s32 32, %v2670_v63  ;;  %v2400_v48 = vadd.s32 %v5324_v53, %v5338_v61  ;;  %v2664_v32 = vor.u32 8388608, %v2663_v52 }
 0x295   : > { %v2552_v51 = vand.u32 2147483647, %v5271_v11  ;;  %v5375_v27 = vsub.s32 %v2404_v18, %v2407_v7  ;;  %v5377_v24 = vshrl.u32 %v2668_v10, 5  ;;  %v3515_v14 = vadd.s32 4294967169, %v2556_v43 }
 0x296   : > { %v2531_v33 = vmul.f32 %v2530_v3, %v2528_v25  ;;  %v2674_v36 = vshrl.u32 %v4175_v56, %v2671_v35  ;;  %v2673_v42 = vshll.u32 %v4174_v38, %v2670_v63  ;;  %v2677_v58 = vshrl.u32 %v4176_v31, %v2671_v35 }
 0x297   : > { %v2680_v41 = vshrl.u32 %v4177_v57, %v2671_v35  ;;  %v2410_v16 = vsub.s32 0, %v5375_v27  ;;  %v2676_v53 = vshll.u32 %v4175_v56, %v2670_v63  ;;  %v2679_v61 = vshll.u32 %v4176_v31, %v2670_v63 }
 0x298   : > { %v2532_v47 = vxor.u32 2147483648, %v2531_v33  ;;  %v2683_v40 = vshrl.u32 %v4178_v60, %v2671_v35  ;;  %v2430_v17 = vsub.s32 4, %v2406_v37  ;;  %v2675_v45 = vor.u32 %v2674_v36, %v2673_v42 }
 0x299   : > { %v2682_v19 = vshll.u32 %v4177_v57, %v2670_v63  ;;  %v3508_v9 = vmin.u32 %v2410_v16, %v5375_v27  ;;  %v2678_v59 = vor.u32 %v2677_v58, %v2676_v53  ;;  %v2681_v50 = vor.u32 %v2680_v41, %v2679_v61  ;;  %v5423_v41 = vpop.f32.mrb[15].mxu1 }
 0x29a   : > { %v2533_v12 = vsel %vm2450_vm10, %v2532_v47, %v2531_v33  ;;  %v2685_v0 = vshll.u32 %v4178_v60, %v2670_v63  ;;  %v2686_v26 = vshrl.u32 %v4179_v55, %v2671_v35  ;;  %v5396_v49 = vshll.u32 %v2664_v32, 8 }
 0x29b   : > { %v2536_v18 = vsel %vm5319_vm9, %v5071_v8, %v2533_v12  ;;  %v2684_v4 = vor.u32 %v2683_v40, %v2682_v19  ;;  %v2412_v39 = vclz %v3508_v9  ;;  %v2562_v20 = vadd.s32 1, %v3515_v14 }
 0x29c   : > { %4069 = vcosq.f32 %v2536_v18  ;;  %vm5400_vm4 = vcmp.le.f32.partialorder %v2344_v54, 0.7853982  ;;  %v2431_v29 = vsel %vm2346_vm2, %v2430_v17, %v2406_v37  ;;  %v2672_v52 = vshrl.u32 %v4174_v38, %v2671_v35 }
 0x29d   : > { %4071 = vsinq.f32 %v2536_v18  ;;  %v2687_v10 = vor.u32 %v2686_v26, %v2685_v0  ;;  %vm2688_vm3 = vcmp.lt.s32.totalorder %v5377_v24, 1  ;;  %v3509_v63 = vadd.s32 4294967294, %v2412_v39 }
 0x29e   : > { %vm2690_vm5 = vcmp.lt.s32.totalorder %v5377_v24, 3  ;;  %vm2691_vm6 = vcmp.lt.s32.totalorder %v5377_v24, 4  ;;  %v2696_v43 = vsel %vm2688_vm3, %v2675_v45, %v2678_v59  ;;  %v2700_v54 = vsel %vm2688_vm3, %v2678_v59, %v2681_v50 }
 0x29f   : > { %v2693_v25 = vsel %vm2691_vm6, %v2681_v50, 2102212464  ;;  %v2697_v3 = vsel %vm2691_vm6, %v2684_v4, 920167782  ;;  %v2701_v7 = vsel %vm2691_vm6, %v2687_v10, 1326507024  ;;  %v2692_v32 = vsel %vm2688_vm3, %v2672_v52, %v2675_v45 }
 0x2a0   : > { %vm3510_vm7 = vcmp.lt.s32.totalorder %v3509_v63, 0  ;;  %vm2689_vm8 = vcmp.lt.s32.totalorder %v5377_v24, 2  ;;  %v2698_v37 = vsel %vm2690_vm5, %v2681_v50, %v2697_v3  ;;  %v2702_v35 = vsel %vm2690_vm5, %v2684_v4, %v2701_v7 }
 0x2a1   : > { %vm2543_vm9 = vcmp.lt.s32.totalorder %v5369_v2, 2  ;;  %v2415_v33 = vsel %vm3510_vm7, 0, %v3509_v63  ;;  %v2699_v36 = vsel %vm2689_vm8, %v2696_v43, %v2698_v37  ;;  %v2703_v14 = vsel %vm2689_vm8, %v2700_v54, %v2702_v35 }
 0x2a2   : > { %vm2540_vm10 = vweird.f32 %v5071_v8  ;;  %v2416_v47 = vsub.s32 32, %v2415_v33  ;;  %v2420_v42 = vsub.s32 4294967266, %v2415_v33  ;;  %v2694_v58 = vsel %vm2690_vm5, %v2678_v59, %v2693_v25 }
 0x2a3   : > { %vm2563_vm11 = vcmp.gt.s32.totalorder %v2562_v20, 0  ;;  %v5426_v16 = vmul.u32.u64.low %v5396_v49, %v2703_v14  ;;  %v5427_v53 = vmul.u32.u64.high %v5396_v49, %v2703_v14, %v5426_v16  ;;  %v2417_v12 = vshll.u32 %v5375_v27, %v2415_v33 }
 0x2a4   : > { %v5430_v61 = vmul.u32.u64.low %v5396_v49, %v2699_v36  ;;  %v5431_v40 = vmul.u32.u64.high %v5396_v49, %v2699_v36, %v5430_v61  ;;  %v2418_v17 = vshrl.u32 %v2400_v48, %v2416_v47  ;;  %v2421_v45 = vadd.s32 127, %v2420_v42 }
 0x2a5   : > { %v2564_v19 = vsel %vm2563_vm11, %v2562_v20, 0  ;;  %vm2544_vm12 = vcmp.eq.s32.totalorder %v5369_v2, 0  ;;  %vm2547_vm15 = vcmp.eq.s32.totalorder %v5369_v2, 2  ;;  %v2695_v9 = vsel %vm2689_vm8, %v2692_v32, %v2694_v58 }
 0x2a6   : > { %v4070_v18 = vpop.eup %4069  ;;  %v2566_v59 = vand.u32 31, %v2564_v19  ;;  %v2419_v0 = vor.u32 %v2418_v17, %v2417_v12  ;;  %v2422_v26 = vshll.u32 %v2421_v45, 23  ;;  %v2433_v39 = vsel %vm5400_vm4, 0, %v2431_v29 }
 0x2a7   : > { %v4072_v50 = vpop.eup %4071  ;;  %v2548_v4 = vxor.u32 2147483648, %v4070_v18  ;;  %vm2713_vm13 = vc.u32 %v5427_v53, %v5430_v61  ;;  %v2714_v48 = vadd.s32 1, %v5431_v40  ;;  %v2559_v20 = vand.u32 8388607, %v2552_v51 }
 0x2a8   : > { %v2545_v27 = vxor.u32 2147483648, %v4072_v50  ;;  %v2423_v24 = vor.u32 4788187, %v2422_v26  ;;  %v2711_v10 = vmul.u32 %v5396_v49, %v2695_v9  ;;  %v2567_v63 = vsub.s32 32, %v2566_v59 }
 0x2a9   : > { %v2549_v52 = vsel %vm2547_vm15, %v2548_v4, %v4072_v50  ;;  %v2437_v25 = vadd.s32 3, %v2433_v39  ;;  %v2715_v29 = vsel %vm2713_vm13, %v2714_v48, %v5431_v40  ;;  %v5450_v3 = vshrl.u32 %v2564_v19, 5 }
 0x2aa   : > { %v2546_v43 = vsel %vm2544_vm12, %v4070_v18, %v2545_v27  ;;  %v2424_v7 = vand.u32 2147483647, %v2423_v24  ;;  %v2426_v37 = vcvt.s32.f32 %v2419_v0  ;;  %v2716_v35 = vadd.s32 %v2715_v29, %v2711_v10 }
 0x2ab   : > { %v2550_v54 = vsel %vm2543_vm9, %v2546_v43, %v2549_v52  ;;  %v2569_v49 = vshll.u32 %v4174_v38, %v2566_v59  ;;  %v2570_v32 = vshrl.u32 %v4175_v56, %v2567_v63  ;;  %v2573_v36 = vshrl.u32 %v4176_v31, %v2567_v63 }
 0x2ac   : > { %v2551_v33 = vsel %vm2540_vm10, nan, %v2550_v54  ;;  %v2427_v14 = vmul.f32 %v2426_v37, %v2424_v7  ;;  %v2717_v47 = vadd.s32 536870912, %v2716_v35  ;;  %v2572_v42 = vshll.u32 %v4175_v56, %v2566_v59 }
 0x2ad   : > { %3391 = vst [vmem:[%s4981_s5 + $0x38] sm:$0xff] %v2551_v33  ;;  %v2576_v2 = vshrl.u32 %v4177_v57, %v2567_v63  ;;  %v2571_v58 = vor.u32 %v2570_v32, %v2569_v49  ;;  %v2575_v16 = vshll.u32 %v4176_v31, %v2566_v59  ;;  %v2578_v40 = vshll.u32 %v4177_v57, %v2566_v59 }
 0x2ae   : > { %v2579_v8 = vshrl.u32 %v4178_v60, %v2567_v63  ;;  %v2428_v12 = vxor.u32 2147483648, %v2427_v14  ;;  %v2718_v17 = vshrl.u32 %v2717_v47, 30  ;;  %v2574_v45 = vor.u32 %v2573_v36, %v2572_v42 }
 0x2af   : > { %v2582_v19 = vshrl.u32 %v4179_v55, %v2567_v63  ;;  %v2581_v9 = vshll.u32 %v4178_v60, %v2566_v59  ;;  %v2560_v0 = vor.u32 8388608, %v2559_v20  ;;  %v2577_v26 = vor.u32 %v2576_v2, %v2575_v16 }
 0x2b0   : > { %v2580_v18 = vor.u32 %v2579_v8, %v2578_v40  ;;  %v2429_v50 = vsel %vm2346_vm2, %v2428_v12, %v2427_v14  ;;  %v2719_v4 = vshll.u32 %v2718_v17, 30  ;;  %v5472_v27 = vand.u32 3, %v2437_v25 }
 0x2b1   : > { %v2432_v39 = vsel %vm5400_vm4, %v5079_v44, %v2429_v50  ;;  %vm2658_vm0 = vcmp.lt.s32.totalorder %v5267_v22, 0  ;;  %v2583_v48 = vor.u32 %v2582_v19, %v2581_v9  ;;  %vm2584_vm14 = vcmp.lt.s32.totalorder %v5450_v3, 1 }
 0x2b2   : > { %4073 = vcosq.f32 %v2432_v39  ;;  %v5476_v52 = vsub.s32 %v2716_v35, %v2719_v4  ;;  %vm2587_vm1 = vcmp.lt.s32.totalorder %v5450_v3, 4  ;;  %v2592_v59 = vsel %vm2584_vm14, %v2571_v58, %v2574_v45 }
 0x2b3   : > { %4075 = vsinq.f32 %v2432_v39  ;;  %vm2586_vm2 = vcmp.lt.s32.totalorder %v5450_v3, 3  ;;  %v2593_v46 = vsel %vm2587_vm1, %v2580_v18, 920167782  ;;  %v2867_v20 = vand.u32 2139095040, %v5367_v5 }
 0x2b4   : > { %vm5485_vm4 = vcmp.le.f32.partialorder %v2656_v21, 0.7853982  ;;  %v2722_v10 = vsub.s32 0, %v5476_v52  ;;  %vm2585_vm3 = vcmp.lt.s32.totalorder %v5450_v3, 2  ;;  %v2594_v43 = vsel %vm2586_vm2, %v2577_v26, %v2593_v46 }
 0x2b5   : > { %v2600_v25 = vshll.u32 %v2560_v0, 8  ;;  %v2589_v29 = vsel %vm2587_vm1, %v2577_v26, 2102212464  ;;  %v2595_v54 = vsel %vm2585_vm3, %v2592_v59, %v2594_v43  ;;  %v2596_v7 = vsel %vm2584_vm14, %v2574_v45, %v2577_v26 }
 0x2b6   : > { %v2597_v37 = vsel %vm2587_vm1, %v2583_v48, 1326507024  ;;  %v3520_v21 = vmin.u32 %v2722_v10, %v5476_v52  ;;  %v2742_v35 = vsub.s32 4, %v2718_v17  ;;  %v2568_v33 = vshrl.u32 %v4174_v38, %v2567_v63 }
 0x2b7   : > { %v2598_v49 = vsel %vm2586_vm2, %v2580_v18, %v2597_v37  ;;  %v5503_v36 = vmul.u32.u64.low %v2600_v25, %v2595_v54  ;;  %v5504_v14 = vmul.u32.u64.high %v2600_v25, %v2595_v54, %v5503_v36  ;;  %v2868_v47 = vshrl.u32 %v2867_v20, 23 }
 0x2b8   : > { %v2599_v32 = vsel %vm2585_vm3, %v2596_v7, %v2598_v49  ;;  %vm2439_vm5 = vcmp.lt.s32.totalorder %v5472_v27, 2  ;;  %v2724_v42 = vclz %v3520_v21  ;;  %v2588_v2 = vsel %vm2584_vm14, %v2568_v33, %v2571_v58 }
 0x2b9   : > { %v2590_v16 = vsel %vm2586_vm2, %v2574_v45, %v2589_v29  ;;  %vm2436_vm6 = vweird.f32 %v5079_v44  ;;  %vm2440_vm7 = vcmp.eq.s32.totalorder %v5472_v27, 0  ;;  %v3527_v8 = vadd.s32 4294967169, %v2868_v47 }
 0x2ba   : > { %v5513_v63 = vmul.u32.u64.low %v2600_v25, %v2599_v32  ;;  %v5514_v40 = vmul.u32.u64.high %v2600_v25, %v2599_v32, %v5513_v63  ;;  %v3521_v12 = vadd.s32 4294967294, %v2724_v42  ;;  %v2743_v19 = vsel %vm2658_vm0, %v2742_v35, %v2718_v17 }
 0x2bb   : > { %v5520_v18 = vadd.f32 %v4960_v30, %v5081_v1  ;;  %v5524_v58 = vadd.f32 %v5073_v15, %v5176_v28  ;;  %v2591_v45 = vsel %vm2585_vm3, %v2588_v2, %v2590_v16  ;;  %v2610_v9 = vadd.s32 1, %v5504_v14 }
 0x2bc   : > { %v2874_v50 = vadd.s32 1, %v3527_v8  ;;  %v5531_v4 = vadd.f32 %v5156_v62, %v5235_v13  ;;  %v4074_v0 = vpop.eup %4073  ;;  %vm2443_vm8 = vcmp.eq.s32.totalorder %v5472_v27, 2  ;;  %v2712_v30 = vadd.s32 %v5430_v61, %v5427_v53 }
 0x2bd   : > { %vm3522_vm9 = vcmp.lt.s32.totalorder %v3521_v12, 0  ;;  %v2864_v15 = vand.u32 2147483647, %v5367_v5  ;;  %v4076_v1 = vpop.eup %4075  ;;  %v2444_v28 = vxor.u32 2147483648, %v4074_v0  ;;  %v2745_v17 = vsel %vm5485_vm4, 0, %v2743_v19 }
 0x2be   : > { %v2727_v3 = vsel %vm3522_vm9, 0, %v3521_v12  ;;  %vm2609_vm10 = vc.u32 %v5514_v40, %v5503_v36  ;;  %v2441_v26 = vxor.u32 2147483648, %v4076_v1  ;;  %v2607_v39 = vmul.u32 %v2600_v25, %v2591_v45 }
 0x2bf   : > { %v2728_v62 = vsub.s32 32, %v2727_v3  ;;  %v2732_v13 = vsub.s32 4294967266, %v2727_v3  ;;  %v2445_v48 = vsel %vm2443_vm8, %v2444_v28, %v4076_v1  ;;  %v2729_v59 = vshll.u32 %v5476_v52, %v2727_v3 }
 0x2c0   : > { %v2611_v53 = vsel %vm2609_vm10, %v2610_v9, %v5504_v14  ;;  %vm2875_vm11 = vcmp.gt.s32.totalorder %v2874_v50, 0  ;;  %v2442_v61 = vsel %vm2440_vm7, %v4074_v0, %v2441_v26  ;;  %v2749_v29 = vadd.s32 3, %v2745_v17 }
 0x2c1   : > { %v2730_v46 = vshrl.u32 %v2712_v30, %v2728_v62  ;;  %v2733_v20 = vadd.s32 127, %v2732_v13  ;;  %v2612_v10 = vadd.s32 %v2611_v53, %v2607_v39  ;;  %v2446_v43 = vsel %vm2439_vm5, %v2442_v61, %v2445_v48 }
 0x2c2   : > { %v2871_v25 = vand.u32 8388607, %v2864_v15  ;;  %v2876_v54 = vsel %vm2875_vm11, %v2874_v50, 0  ;;  %v2447_v52 = vsel %vm2436_vm6, nan, %v2446_v43  ;;  %v2763_v33 = vand.u32 2139095040, %v5520_v18 }
 0x2c3   : > { %v2731_v7 = vor.u32 %v2730_v46, %v2729_v59  ;;  %v2734_v37 = vshll.u32 %v2733_v20, 23  ;;  %v2613_v21 = vadd.s32 536870912, %v2612_v10  ;;  %3390 = vst [vmem:[%s4981_s5 + $0x30] sm:$0xff] %v2447_v52  ;;  %v2878_v35 = vand.u32 31, %v2876_v54 }
 0x2c4   : > { %v5552_v14 = vand.u32 3, %v2749_v29  ;;  %v2872_v27 = vor.u32 8388608, %v2871_v25  ;;  %v2760_v42 = vand.u32 2147483647, %v5520_v18  ;;  %vm2554_vm12 = vcmp.lt.s32.totalorder %v5271_v11, 0 }
 0x2c5   : > { %v2735_v49 = vor.u32 4788187, %v2734_v37  ;;  %v2614_v32 = vshrl.u32 %v2613_v21, 30  ;;  %v2879_v47 = vsub.s32 32, %v2878_v35  ;;  %v2738_v16 = vcvt.s32.f32 %v2731_v7 }
 0x2c6   : > { %v5557_v44 = vadd.s32 %v5503_v36, %v5514_v40  ;;  %v2764_v45 = vshrl.u32 %v2763_v33, 23  ;;  %v2881_v0 = vshll.u32 %v4174_v38, %v2878_v35  ;;  %v2877_v28 = vshrl.u32 %v2876_v54, 5 }
 0x2c7   : > { %v2736_v2 = vand.u32 2147483647, %v2735_v49  ;;  %v2615_v63 = vshll.u32 %v2614_v32, 30  ;;  %v2882_v8 = vshrl.u32 %v4175_v56, %v2879_v47  ;;  %v2885_v12 = vshrl.u32 %v4176_v31, %v2879_v47 }
 0x2c8   : > { %v2888_v19 = vshrl.u32 %v4177_v57, %v2879_v47  ;;  %v2891_v30 = vshrl.u32 %v4178_v60, %v2879_v47  ;;  %v2638_v1 = vsub.s32 4, %v2614_v32  ;;  %v2884_v36 = vshll.u32 %v4175_v56, %v2878_v35 }
 0x2c9   : > { %v2739_v9 = vmul.f32 %v2738_v16, %v2736_v2  ;;  %v5562_v50 = vsub.s32 %v2612_v10, %v2615_v63  ;;  %v2887_v40 = vshll.u32 %v4176_v31, %v2878_v35  ;;  %v2883_v26 = vor.u32 %v2882_v8, %v2881_v0 }
 0x2ca   : > { %v2890_v62 = vshll.u32 %v4177_v57, %v2878_v35  ;;  %vm5572_vm15 = vcmp.le.f32.partialorder %v2552_v51, 0.7853982  ;;  %v2886_v39 = vor.u32 %v2885_v12, %v2884_v36  ;;  %v2893_v59 = vshll.u32 %v4178_v60, %v2878_v35 }
 0x2cb   : > { %v2740_v3 = vxor.u32 2147483648, %v2739_v9  ;;  %v2618_v17 = vsub.s32 0, %v5562_v50  ;;  %v2889_v48 = vor.u32 %v2888_v19, %v2887_v40  ;;  %v2894_v53 = vshrl.u32 %v4179_v55, %v2879_v47 }
 0x2cc   : > { %v2892_v20 = vor.u32 %v2891_v30, %v2890_v62  ;;  %v2912_v10 = vshll.u32 %v2872_v27, 8  ;;  %v2880_v43 = vshrl.u32 %v4174_v38, %v2879_v47  ;;  %v3523_v25 = vadd.s32 4294967169, %v2764_v45 }
 0x2cd   : > { %v2741_v61 = vsel %vm2658_vm0, %v2740_v3, %v2739_v9  ;;  %v3516_v46 = vmin.u32 %v2618_v17, %v5562_v50  ;;  %v2895_v29 = vor.u32 %v2894_v53, %v2893_v59  ;;  %vm2896_vm13 = vcmp.lt.s32.totalorder %v2877_v28, 1 }
 0x2ce   : > { %v2744_v51 = vsel %vm5485_vm4, %v5267_v22, %v2741_v61  ;;  %vm2899_vm14 = vcmp.lt.s32.totalorder %v2877_v28, 4  ;;  %v2639_v52 = vsel %vm2554_vm12, %v2638_v1, %v2614_v32  ;;  %v2904_v37 = vsel %vm2896_vm13, %v2883_v26, %v2886_v39 }
 0x2cf   : > { %4077 = vcosq.f32 %v2744_v51  ;;  %v2620_v54 = vclz %v3516_v46  ;;  %v2901_v7 = vsel %vm2899_vm14, %v2889_v48, 2102212464  ;;  %vm2898_vm0 = vcmp.lt.s32.totalorder %v2877_v28, 3 }
 0x2d0   : > { %4079 = vsinq.f32 %v2744_v51  ;;  %v2905_v35 = vsel %vm2899_vm14, %v2892_v20, 920167782  ;;  %v2908_v33 = vsel %vm2896_vm13, %v2886_v39, %v2889_v48  ;;  %vm2897_vm1 = vcmp.lt.s32.totalorder %v2877_v28, 2 }
 0x2d1   : > { %v3517_v21 = vadd.s32 4294967294, %v2620_v54  ;;  %v2900_v24 = vsel %vm2896_vm13, %v2880_v43, %v2883_v26  ;;  %v2906_v49 = vsel %vm2898_vm0, %v2889_v48, %v2905_v35  ;;  %v2909_v27 = vsel %vm2899_vm14, %v2895_v29, 1326507024 }
 0x2d2   : > { %v2902_v47 = vsel %vm2898_vm0, %v2886_v39, %v2901_v7  ;;  %v2907_v2 = vsel %vm2897_vm1, %v2904_v37, %v2906_v49  ;;  %v2910_v16 = vsel %vm2898_vm0, %v2892_v20, %v2909_v27  ;;  %v2641_v9 = vsel %vm5572_vm15, 0, %v2639_v52 }
 0x2d3   : > { %vm3518_vm2 = vcmp.lt.s32.totalorder %v3517_v21, 0  ;;  %v2911_v8 = vsel %vm2897_vm1, %v2908_v33, %v2910_v16  ;;  %v5589_v12 = vmul.u32.u64.low %v2912_v10, %v2907_v2  ;;  %v5590_v32 = vmul.u32.u64.high %v2912_v10, %v2907_v2, %v5589_v12 }
 0x2d4   : > { %v2623_v63 = vsel %vm3518_vm2, 0, %v3517_v21  ;;  %v2770_v0 = vadd.s32 1, %v3523_v25  ;;  %vm2748_vm4 = vweird.f32 %v5267_v22  ;;  %v2903_v30 = vsel %vm2897_vm1, %v2900_v24, %v2902_v47 }
 0x2d5   : > { %v2624_v19 = vsub.s32 32, %v2623_v63  ;;  %v2628_v45 = vsub.s32 4294967266, %v2623_v63  ;;  %v5597_v1 = vmul.u32.u64.low %v2912_v10, %v2911_v8  ;;  %v5598_v36 = vmul.u32.u64.high %v2912_v10, %v2911_v8, %v5597_v1 }
 0x2d6   : > { %v2625_v40 = vshll.u32 %v5562_v50, %v2623_v63  ;;  %vm2771_vm3 = vcmp.gt.s32.totalorder %v2770_v0, 0  ;;  %vm2751_vm5 = vcmp.lt.s32.totalorder %v5552_v14, 2  ;;  %v2645_v26 = vadd.s32 3, %v2641_v9 }
 0x2d7   : > { %v2626_v3 = vshrl.u32 %v5557_v44, %v2624_v19  ;;  %v2629_v17 = vadd.s32 127, %v2628_v45  ;;  %v2922_v62 = vadd.s32 1, %v5590_v32  ;;  %v2772_v39 = vsel %vm2771_vm3, %v2770_v0, 0 }
 0x2d8   : > { %v2767_v28 = vand.u32 8388607, %v2760_v42  ;;  %v2774_v61 = vand.u32 31, %v2772_v39  ;;  %vm2752_vm6 = vcmp.eq.s32.totalorder %v5552_v14, 0  ;;  %v2919_v44 = vmul.u32 %v2912_v10, %v2903_v30 }
 0x2d9   : > { %v4078_v48 = vpop.eup %4077  ;;  %v2627_v59 = vor.u32 %v2626_v3, %v2625_v40  ;;  %v2630_v53 = vshll.u32 %v2629_v17, 23  ;;  %vm2921_vm7 = vc.u32 %v5598_v36, %v5589_v12  ;;  %vm2755_vm8 = vcmp.eq.s32.totalorder %v5552_v14, 2 }
 0x2da   : > { %v4080_v46 = vpop.eup %4079  ;;  %v2756_v50 = vxor.u32 2147483648, %v4078_v48  ;;  %v2923_v43 = vsel %vm2921_vm7, %v2922_v62, %v5590_v32  ;;  %v5611_v25 = vand.u32 3, %v2645_v26  ;;  %v2775_v52 = vsub.s32 32, %v2774_v61 }
 0x2db   : > { %v2753_v20 = vxor.u32 2147483648, %v4080_v46  ;;  %v2631_v51 = vor.u32 4788187, %v2630_v53  ;;  %v2924_v54 = vadd.s32 %v2923_v43, %v2919_v44  ;;  %v2634_v21 = vcvt.s32.f32 %v2627_v59 }
 0x2dc   : > { %v2757_v29 = vsel %vm2755_vm8, %v2756_v50, %v4080_v46  ;;  %v2768_v35 = vor.u32 8388608, %v2767_v28  ;;  %v2778_v24 = vshrl.u32 %v4175_v56, %v2775_v52  ;;  %v3075_v49 = vand.u32 2139095040, %v5524_v58 }
 0x2dd   : > { %v2754_v7 = vsel %vm2752_vm6, %v4078_v48, %v2753_v20  ;;  %v2632_v37 = vand.u32 2147483647, %v2631_v51  ;;  %v2925_v33 = vadd.s32 536870912, %v2924_v54  ;;  %v2781_v2 = vshrl.u32 %v4176_v31, %v2775_v52 }
 0x2de   : > { %v2758_v10 = vsel %vm2751_vm5, %v2754_v7, %v2757_v29  ;;  %v2784_v16 = vshrl.u32 %v4177_v57, %v2775_v52  ;;  %v2777_v8 = vshll.u32 %v4174_v38, %v2774_v61  ;;  %v2783_v14 = vshll.u32 %v4176_v31, %v2774_v61 }
 0x2df   : > { %v2759_v27 = vsel %vm2748_vm4, nan, %v2758_v10  ;;  %v2635_v47 = vmul.f32 %v2634_v21, %v2632_v37  ;;  %v5622_v63 = vshrl.u32 %v2925_v33, 30  ;;  %v2787_v32 = vshrl.u32 %v4178_v60, %v2775_v52 }
 0x2e0   : > { %3393 = vst [vmem:[%s4981_s5 + $0x48] sm:$0xff] %v2759_v27  ;;  %v2773_v45 = vshrl.u32 %v2772_v39, 5  ;;  %v2780_v9 = vshll.u32 %v4175_v56, %v2774_v61  ;;  %v2786_v22 = vshll.u32 %v4177_v57, %v2774_v61  ;;  %v2779_v30 = vor.u32 %v2778_v24, %v2777_v8 }
 0x2e1   : > { %v2636_v19 = vxor.u32 2147483648, %v2635_v47  ;;  %v2927_v0 = vshll.u32 %v5622_v63, 30  ;;  %v2785_v1 = vor.u32 %v2784_v16, %v2783_v14  ;;  %v2790_v40 = vshrl.u32 %v4179_v55, %v2775_v52 }
 0x2e2   : > { %v2782_v17 = vor.u32 %v2781_v2, %v2780_v9  ;;  %v2788_v26 = vor.u32 %v2787_v32, %v2786_v22  ;;  %v2789_v62 = vshll.u32 %v4178_v60, %v2774_v61  ;;  %v2808_v59 = vshll.u32 %v2768_v35, 8 }
 0x2e3   : > { %v2637_v3 = vsel %vm2554_vm12, %v2636_v19, %v2635_v47  ;;  %v5637_v48 = vsub.s32 %v2924_v54, %v2927_v0  ;;  %v3076_v53 = vshrl.u32 %v3075_v49, 23  ;;  %v2776_v28 = vshrl.u32 %v4174_v38, %v2775_v52 }
 0x2e4   : > { %v2640_v39 = vsel %vm5572_vm15, %v5271_v11, %v2637_v3  ;;  %v2791_v46 = vor.u32 %v2790_v40, %v2789_v62  ;;  %vm2795_vm9 = vcmp.lt.s32.totalorder %v2773_v45, 4  ;;  %vm2792_vm10 = vcmp.lt.s32.totalorder %v2773_v45, 1 }
 0x2e5   : > { %4081 = vcosq.f32 %v2640_v39  ;;  %v2930_v50 = vsub.s32 0, %v5637_v48  ;;  %v2797_v44 = vsel %vm2795_vm9, %v2785_v1, 2102212464  ;;  %vm2793_vm11 = vcmp.lt.s32.totalorder %v2773_v45, 2 }
 0x2e6   : > { %4083 = vsinq.f32 %v2640_v39  ;;  %vm2794_vm12 = vcmp.lt.s32.totalorder %v2773_v45, 3  ;;  %v2800_v61 = vsel %vm2792_vm10, %v2779_v30, %v2782_v17  ;;  %v2801_v20 = vsel %vm2795_vm9, %v2788_v26, 920167782 }
 0x2e7   : > { %v3528_v13 = vmin.u32 %v2930_v50, %v5637_v48  ;;  %v2796_v51 = vsel %vm2792_vm10, %v2776_v28, %v2779_v30  ;;  %v2798_v43 = vsel %vm2794_vm12, %v2782_v17, %v2797_v44  ;;  %v2802_v29 = vsel %vm2794_vm12, %v2785_v1, %v2801_v20 }
 0x2e8   : > { %v2803_v54 = vsel %vm2793_vm11, %v2800_v61, %v2802_v29  ;;  %v2804_v7 = vsel %vm2792_vm10, %v2782_v17, %v2785_v1  ;;  %v2805_v52 = vsel %vm2795_vm9, %v2791_v46, 1326507024  ;;  %v3535_v37 = vadd.s32 4294967169, %v3076_v53 }
 0x2e9   : > { %v2932_v21 = vclz %v3528_v13  ;;  %v2806_v35 = vsel %vm2794_vm12, %v2788_v26, %v2805_v52  ;;  %v5643_v10 = vmul.u32.u64.low %v2808_v59, %v2803_v54  ;;  %v5644_v33 = vmul.u32.u64.high %v2808_v59, %v2803_v54, %v5643_v10 }
 0x2ea   : > { %vm2644_vm15 = vweird.f32 %v5271_v11  ;;  %vm2866_vm13 = vcmp.lt.s32.totalorder %v5367_v5, 0  ;;  %v2799_v49 = vsel %vm2793_vm11, %v2796_v51, %v2798_v43  ;;  %v2807_v27 = vsel %vm2793_vm11, %v2804_v7, %v2806_v35 }
 0x2eb   : > { %v3529_v24 = vadd.s32 4294967294, %v2932_v21  ;;  %v3082_v47 = vadd.s32 1, %v3535_v37  ;;  %vm2648_vm14 = vcmp.eq.s32.totalorder %v5611_v25, 0  ;;  %v3072_v8 = vand.u32 2147483647, %v5524_v58 }
 0x2ec   : > { %v5652_v2 = vmul.u32.u64.low %v2808_v59, %v2807_v27  ;;  %v5653_v16 = vmul.u32.u64.high %v2808_v59, %v2807_v27, %v5652_v2  ;;  %vm2651_vm0 = vcmp.eq.s32.totalorder %v5611_v25, 2  ;;  %v2920_v14 = vadd.s32 %v5589_v12, %v5598_v36 }
 0x2ed   : > { %vm3530_vm1 = vcmp.lt.s32.totalorder %v3529_v24, 0  ;;  %vm3083_vm2 = vcmp.gt.s32.totalorder %v3082_v47, 0  ;;  %v2950_v45 = vsub.s32 4, %v5622_v63  ;;  %v2815_v9 = vmul.u32 %v2808_v59, %v2799_v49 }
 0x2ee   : > { %v2935_v19 = vsel %vm3530_vm1, 0, %v3529_v24  ;;  %v2818_v22 = vadd.s32 1, %v5644_v33  ;;  %v3084_v3 = vsel %vm3083_vm2, %v3082_v47, 0  ;;  %vm2817_vm4 = vc.u32 %v5653_v16, %v5643_v10 }
 0x2ef   : > { %v4082_v32 = vpop.eup %4081  ;;  %v2936_v1 = vsub.s32 32, %v2935_v19  ;;  %v2940_v40 = vsub.s32 4294967266, %v2935_v19  ;;  %v2937_v26 = vshll.u32 %v5637_v48, %v2935_v19  ;;  %v3079_v12 = vand.u32 8388607, %v3072_v8 }
 0x2f0   : > { %v4084_v0 = vpop.eup %4083  ;;  %v2652_v30 = vxor.u32 2147483648, %v4082_v32  ;;  %v2819_v59 = vsel %vm2817_vm4, %v2818_v22, %v5644_v33  ;;  %vm2647_vm3 = vcmp.lt.s32.totalorder %v5611_v25, 2  ;;  %v3086_v28 = vand.u32 31, %v3084_v3 }
 0x2f1   : > { %v2649_v17 = vxor.u32 2147483648, %v4084_v0  ;;  %v2938_v62 = vshrl.u32 %v2920_v14, %v2936_v1  ;;  %v2941_v39 = vadd.s32 127, %v2940_v40  ;;  %v2820_v48 = vadd.s32 %v2819_v59, %v2815_v9 }
 0x2f2   : > { %v2653_v36 = vsel %vm2651_vm0, %v2652_v30, %v4084_v0  ;;  %vm5674_vm5 = vcmp.le.f32.partialorder %v2864_v15, 0.7853982  ;;  %v2951_v13 = vsel %vm2866_vm13, %v2950_v45, %v5622_v63  ;;  %v3087_v51 = vsub.s32 32, %v3086_v28 }
 0x2f3   : > { %v2650_v53 = vsel %vm2648_vm14, %v4082_v32, %v2649_v17  ;;  %v2939_v44 = vor.u32 %v2938_v62, %v2937_v26  ;;  %v2942_v61 = vshll.u32 %v2941_v39, 23  ;;  %v2821_v25 = vadd.s32 536870912, %v2820_v48 }
 0x2f4   : > { %v2654_v46 = vsel %vm2647_vm3, %v2650_v53, %v2653_v36  ;;  %v3080_v54 = vor.u32 8388608, %v3079_v12  ;;  %v3089_v15 = vshll.u32 %v4174_v38, %v3086_v28  ;;  %v3090_v52 = vshrl.u32 %v4175_v56, %v3087_v51 }
 0x2f5   : > { %v2655_v20 = vsel %vm2644_vm15, nan, %v2654_v46  ;;  %v2943_v43 = vor.u32 4788187, %v2942_v61  ;;  %v2946_v29 = vcvt.s32.f32 %v2939_v44  ;;  %v2822_v7 = vshrl.u32 %v2821_v25, 30 }
 0x2f6   : > { %3392 = vst [vmem:[%s4981_s5 + $0x40] sm:$0xff] %v2655_v20  ;;  %v3092_v37 = vshll.u32 %v4175_v56, %v3086_v28  ;;  %v3093_v11 = vshrl.u32 %v4176_v31, %v3087_v51  ;;  %v3096_v35 = vshrl.u32 %v4177_v57, %v3087_v51  ;;  %v3098_v63 = vshll.u32 %v4177_v57, %v3086_v28 }
 0x2f7   : > { %v2944_v21 = vand.u32 2147483647, %v2943_v43  ;;  %v3099_v33 = vshrl.u32 %v4178_v60, %v3087_v51  ;;  %v2953_v24 = vsel %vm5674_vm5, 0, %v2951_v13  ;;  %v2823_v49 = vshll.u32 %v2822_v7, 30 }
 0x2f8   : > { %v3085_v27 = vshrl.u32 %v3084_v3, 5  ;;  %v3095_v47 = vshll.u32 %v4176_v31, %v3086_v28  ;;  %v3091_v14 = vor.u32 %v3090_v52, %v3089_v15  ;;  %v3094_v32 = vor.u32 %v3093_v11, %v3092_v37 }
 0x2f9   : > { %v2947_v2 = vmul.f32 %v2946_v29, %v2944_v21  ;;  %v3100_v19 = vor.u32 %v3099_v33, %v3098_v63  ;;  %v5694_v45 = vsub.s32 %v2820_v48, %v2823_v49  ;;  %v3101_v22 = vshll.u32 %v4178_v60, %v3086_v28 }
 0x2fa   : > { %v3097_v9 = vor.u32 %v3096_v35, %v3095_v47  ;;  %v3102_v0 = vshrl.u32 %v4179_v55, %v3087_v51  ;;  %v2957_v1 = vadd.s32 3, %v2953_v24  ;;  %vm2762_vm6 = vcmp.lt.s32.totalorder %v5520_v18, 0 }
 0x2fb   : > { %v2948_v30 = vxor.u32 2147483648, %v2947_v2  ;;  %v3120_v40 = vshll.u32 %v3080_v54, 8  ;;  %v2971_v3 = vand.u32 2139095040, %v5531_v4  ;;  %v2826_v17 = vsub.s32 0, %v5694_v45 }
 0x2fc   : > { %v3103_v26 = vor.u32 %v3102_v0, %v3101_v22  ;;  %vm3104_vm7 = vcmp.lt.s32.totalorder %v3085_v27, 1  ;;  %vm3107_vm8 = vcmp.lt.s32.totalorder %v3085_v27, 4  ;;  %v3088_v36 = vshrl.u32 %v4174_v38, %v3087_v51 }
 0x2fd   : > { %v2949_v12 = vsel %vm2866_vm13, %v2948_v30, %v2947_v2  ;;  %vm3106_vm9 = vcmp.lt.s32.totalorder %v3085_v27, 3  ;;  %v3113_v62 = vsel %vm3107_vm8, %v3100_v19, 920167782  ;;  %v3524_v59 = vmin.u32 %v2826_v17, %v5694_v45 }
 0x2fe   : > { %v2952_v39 = vsel %vm5674_vm5, %v5367_v5, %v2949_v12  ;;  %v3109_v53 = vsel %vm3107_vm8, %v3097_v9, 2102212464  ;;  %v3112_v48 = vsel %vm3104_vm7, %v3091_v14, %v3094_v32  ;;  %v3114_v28 = vsel %vm3106_vm9, %v3097_v9, %v3113_v62 }
 0x2ff   : > { %4085 = vcosq.f32 %v2952_v39  ;;  %v3116_v46 = vsel %vm3104_vm7, %v3094_v32, %v3097_v9  ;;  %v3117_v44 = vsel %vm3107_vm8, %v3103_v26, 1326507024  ;;  %v2828_v61 = vclz %v3524_v59 }
 0x300   : > { %4087 = vsinq.f32 %v2952_v39  ;;  %v2846_v20 = vsub.s32 4, %v2822_v7  ;;  %vm3105_vm10 = vcmp.lt.s32.totalorder %v3085_v27, 2  ;;  %v3108_v13 = vsel %vm3104_vm7, %v3088_v36, %v3091_v14 }
 0x301   : > { %v3110_v50 = vsel %vm3106_vm9, %v3094_v32, %v3109_v53  ;;  %v3115_v25 = vsel %vm3105_vm10, %v3112_v48, %v3114_v28  ;;  %v3118_v51 = vsel %vm3106_vm9, %v3100_v19, %v3117_v44  ;;  %v3525_v43 = vadd.s32 4294967294, %v2828_v61 }
 0x302   : > { %v3119_v29 = vsel %vm3105_vm10, %v3116_v46, %v3118_v51  ;;  %v5714_v54 = vmul.u32.u64.low %v3120_v40, %v3115_v25  ;;  %v5715_v15 = vmul.u32.u64.high %v3120_v40, %v3115_v25, %v5714_v54  ;;  %vm5720_vm11 = vcmp.le.f32.partialorder %v2760_v42, 0.7853982 }
 0x303   : > { %v5724_v37 = vmul.u32.u64.low %v3120_v40, %v3119_v29  ;;  %v5725_v11 = vmul.u32.u64.high %v3120_v40, %v3119_v29, %v5724_v37  ;;  %v2972_v21 = vshrl.u32 %v2971_v3, 23  ;;  %vm3526_vm12 = vcmp.lt.s32.totalorder %v3525_v43, 0 }
 0x304   : > { %v2847_v35 = vsel %vm2762_vm6, %v2846_v20, %v2822_v7  ;;  %v3111_v63 = vsel %vm3105_vm10, %v3108_v13, %v3110_v50  ;;  %v5731_v33 = vadd.f32 %v5233_v6, %v5346_v23  ;;  %v2958_v24 = vand.u32 3, %v2957_v1 }
 0x305   : > { %v2831_v49 = vsel %vm3526_vm12, 0, %v3525_v43  ;;  %v3531_v27 = vadd.s32 4294967169, %v2972_v21  ;;  %v5735_v42 = vadd.f32 %v5331_v34, %v5423_v41  ;;  %v2816_v47 = vadd.s32 %v5643_v10, %v5653_v16 }
 0x306   : > { %v2832_v2 = vsub.s32 32, %v2831_v49  ;;  %v2836_v14 = vsub.s32 4294967266, %v2831_v49  ;;  %v3130_v32 = vadd.s32 1, %v5715_v15  ;;  %v2849_v7 = vsel %vm5720_vm11, 0, %v2847_v35 }
 0x307   : > { %v3127_v19 = vmul.u32 %v3120_v40, %v3111_v63  ;;  %vm3129_vm15 = vc.u32 %v5725_v11, %v5714_v54  ;;  %v2978_v6 = vadd.s32 1, %v3531_v27  ;;  %v2833_v23 = vshll.u32 %v5694_v45, %v2831_v49 }
 0x308   : > { %v2834_v9 = vshrl.u32 %v2816_v47, %v2832_v2  ;;  %v2837_v34 = vadd.s32 127, %v2836_v14  ;;  %v3131_v41 = vsel %vm3129_vm15, %v3130_v32, %v5715_v15  ;;  %vm2963_vm13 = vcmp.eq.s32.totalorder %v2958_v24, 2 }
 0x309   : > { %v4086_v22 = vpop.eup %4085  ;;  %v3132_v10 = vadd.s32 %v3131_v41, %v3127_v19  ;;  %v2968_v16 = vand.u32 2147483647, %v5531_v4  ;;  %vm2979_vm14 = vcmp.gt.s32.totalorder %v2978_v6, 0  ;;  %v2853_v26 = vadd.s32 3, %v2849_v7 }
 0x30a   : > { %v4088_v0 = vpop.eup %4087  ;;  %v2964_v30 = vxor.u32 2147483648, %v4086_v22  ;;  %v2835_v1 = vor.u32 %v2834_v9, %v2833_v23  ;;  %v2838_v40 = vshll.u32 %v2837_v34, 23  ;;  %v2980_v3 = vsel %vm2979_vm14, %v2978_v6, 0 }
 0x30b   : > { %v2961_v17 = vxor.u32 2147483648, %v4088_v0  ;;  %v3133_v12 = vadd.s32 536870912, %v3132_v10  ;;  %v2982_v36 = vand.u32 31, %v2980_v3  ;;  %vm2956_vm0 = vweird.f32 %v5367_v5 }
 0x30c   : > { %vm2960_vm1 = vcmp.eq.s32.totalorder %v2958_v24, 0  ;;  %v2965_v45 = vsel %vm2963_vm13, %v2964_v30, %v4088_v0  ;;  %v2839_v62 = vor.u32 4788187, %v2838_v40  ;;  %vm2959_vm2 = vcmp.lt.s32.totalorder %v2958_v24, 2 }
 0x30d   : > { %v2962_v39 = vsel %vm2960_vm1, %v4086_v22, %v2961_v17  ;;  %v5748_v59 = vshrl.u32 %v3133_v12, 30  ;;  %v2983_v53 = vsub.s32 32, %v2982_v36  ;;  %v2842_v46 = vcvt.s32.f32 %v2835_v1 }
 0x30e   : > { %v2966_v48 = vsel %vm2959_vm2, %v2962_v39, %v2965_v45  ;;  %v2840_v28 = vand.u32 2147483647, %v2839_v62  ;;  %v2975_v44 = vand.u32 8388607, %v2968_v16  ;;  %v5752_v20 = vand.u32 3, %v2853_v26 }
 0x30f   : > { %v2967_v61 = vsel %vm2956_vm0, nan, %v2966_v48  ;;  %v3135_v13 = vshll.u32 %v5748_v59, 30  ;;  %v2986_v50 = vshrl.u32 %v4175_v56, %v2983_v53  ;;  %v2989_v25 = vshrl.u32 %v4176_v31, %v2983_v53 }
 0x310   : > { %3395 = vst [vmem:[%s4981_s5 + $0x58] sm:$0xff] %v2967_v61  ;;  %v2843_v5 = vmul.f32 %v2842_v46, %v2840_v28  ;;  %v2992_v51 = vshrl.u32 %v4177_v57, %v2983_v53  ;;  %v2985_v29 = vshll.u32 %v4174_v38, %v2982_v36  ;;  %v2988_v15 = vshll.u32 %v4175_v56, %v2982_v36 }
 0x311   : > { %v5759_v43 = vsub.s32 %v3132_v10, %v3135_v13  ;;  %v2995_v37 = vshrl.u32 %v4178_v60, %v2983_v53  ;;  %v2976_v35 = vor.u32 8388608, %v2975_v44  ;;  %v2981_v63 = vshrl.u32 %v2980_v3, 5 }
 0x312   : > { %v2844_v21 = vxor.u32 2147483648, %v2843_v5  ;;  %v2991_v24 = vshll.u32 %v4176_v31, %v2982_v36  ;;  %v2987_v27 = vor.u32 %v2986_v50, %v2985_v29  ;;  %v2990_v47 = vor.u32 %v2989_v25, %v2988_v15 }
 0x313   : > { %v3138_v49 = vsub.s32 0, %v5759_v43  ;;  %v2994_v2 = vshll.u32 %v4177_v57, %v2982_v36  ;;  %vm3074_vm4 = vcmp.lt.s32.totalorder %v5524_v58, 0  ;;  %v2997_v7 = vshll.u32 %v4178_v60, %v2982_v36 }
 0x314   : > { %v2845_v14 = vsel %vm2762_vm6, %v2844_v21, %v2843_v5  ;;  %v2993_v32 = vor.u32 %v2992_v51, %v2991_v24  ;;  %v2998_v19 = vshrl.u32 %v4179_v55, %v2983_v53  ;;  %v3128_v23 = vadd.s32 %v5714_v54, %v5725_v11 }
 0x315   : > { %v2848_v6 = vsel %vm5720_vm11, %v5520_v18, %v2845_v14  ;;  %v3536_v9 = vmin.u32 %v3138_v49, %v5759_v43  ;;  %v2996_v34 = vor.u32 %v2995_v37, %v2994_v2  ;;  %v3158_v41 = vsub.s32 4, %v5748_v59 }
 0x316   : > { %4089 = vcosq.f32 %v2848_v6  ;;  %v2999_v22 = vor.u32 %v2998_v19, %v2997_v7  ;;  %v3016_v10 = vshll.u32 %v2976_v35, 8  ;;  %vm5781_vm3 = vcmp.le.f32.partialorder %v3072_v8, 0.7853982 }
 0x317   : > { %4091 = vsinq.f32 %v2848_v6  ;;  %v3140_v52 = vclz %v3536_v9  ;;  %vm3000_vm5 = vcmp.lt.s32.totalorder %v2981_v63, 1  ;;  %vm3003_vm6 = vcmp.lt.s32.totalorder %v2981_v63, 4 }
 0x318   : > { %v2984_v54 = vshrl.u32 %v4174_v38, %v2983_v53  ;;  %vm3001_vm7 = vcmp.lt.s32.totalorder %v2981_v63, 2  ;;  %v3005_v11 = vsel %vm3003_vm6, %v2993_v32, 2102212464  ;;  %v3008_v30 = vsel %vm3000_vm5, %v2987_v27, %v2990_v47 }
 0x319   : > { %v3537_v1 = vadd.s32 4294967294, %v3140_v52  ;;  %vm3002_vm8 = vcmp.lt.s32.totalorder %v2981_v63, 3  ;;  %v3009_v40 = vsel %vm3003_vm6, %v2996_v34, 920167782  ;;  %v3012_v3 = vsel %vm3000_vm5, %v2990_v47, %v2993_v32 }
 0x31a   : > { %v3004_v17 = vsel %vm3000_vm5, %v2984_v54, %v2987_v27  ;;  %v3010_v26 = vsel %vm3002_vm8, %v2993_v32, %v3009_v40  ;;  %v3013_v12 = vsel %vm3003_vm6, %v2999_v22, 1326507024  ;;  %v3283_v8 = vand.u32 2139095040, %v5731_v33 }
 0x31b   : > { %vm3538_vm9 = vcmp.lt.s32.totalorder %v3537_v1, 0  ;;  %v3006_v36 = vsel %vm3002_vm8, %v2990_v47, %v3005_v11  ;;  %v3011_v45 = vsel %vm3001_vm7, %v3008_v30, %v3010_v26  ;;  %v3014_v62 = vsel %vm3002_vm8, %v2996_v34, %v3013_v12 }
 0x31c   : > { %v3143_v39 = vsel %vm3538_vm9, 0, %v3537_v1  ;;  %v3015_v53 = vsel %vm3001_vm7, %v3012_v3, %v3014_v62  ;;  %v5789_v48 = vmul.u32.u64.low %v3016_v10, %v3011_v45  ;;  %v5790_v28 = vmul.u32.u64.high %v3016_v10, %v3011_v45, %v5789_v48 }
 0x31d   : > { %vm2852_vm10 = vweird.f32 %v5520_v18  ;;  %v3144_v46 = vsub.s32 32, %v3143_v39  ;;  %v3148_v44 = vsub.s32 4294967266, %v3143_v39  ;;  %v3159_v61 = vsel %vm3074_vm4, %v3158_v41, %v5748_v59 }
 0x31e   : > { %v3284_v13 = vshrl.u32 %v3283_v8, 23  ;;  %vm2855_vm11 = vcmp.lt.s32.totalorder %v5752_v20, 2  ;;  %v3007_v5 = vsel %vm3001_vm7, %v3004_v17, %v3006_v36  ;;  %v3145_v51 = vshll.u32 %v5759_v43, %v3143_v39 }
 0x31f   : > { %v5799_v50 = vmul.u32.u64.low %v3016_v10, %v3015_v53  ;;  %v5800_v25 = vmul.u32.u64.high %v3016_v10, %v3015_v53, %v5799_v50  ;;  %v3146_v29 = vshrl.u32 %v3128_v23, %v3144_v46  ;;  %v3149_v15 = vadd.s32 127, %v3148_v44 }
 0x320   : > { %v3543_v37 = vadd.s32 4294967169, %v3284_v13  ;;  %v4090_v21 = vpop.eup %4089  ;;  %vm2856_vm12 = vcmp.eq.s32.totalorder %v5752_v20, 0  ;;  %v3161_v35 = vsel %vm5781_vm3, 0, %v3159_v61  ;;  %v3026_v59 = vadd.s32 1, %v5790_v28 }
 0x321   : > { %v3280_v24 = vand.u32 2147483647, %v5731_v33  ;;  %v4092_v63 = vpop.eup %4091  ;;  %v2860_v49 = vxor.u32 2147483648, %v4090_v21  ;;  %v3147_v27 = vor.u32 %v3146_v29, %v3145_v51  ;;  %v3150_v47 = vshll.u32 %v3149_v15, 23 }
 0x322   : > { %v3290_v2 = vadd.s32 1, %v3543_v37  ;;  %v2857_v14 = vxor.u32 2147483648, %v4092_v63  ;;  %vm2859_vm15 = vcmp.eq.s32.totalorder %v5752_v20, 2  ;;  %v3023_v43 = vmul.u32 %v3016_v10, %v3007_v5 }
 0x323   : > { %vm3025_vm13 = vc.u32 %v5800_v25, %v5789_v48  ;;  %v2861_v32 = vsel %vm2859_vm15, %v2860_v49, %v4092_v63  ;;  %v3151_v7 = vor.u32 4788187, %v3150_v47  ;;  %v3165_v19 = vadd.s32 3, %v3161_v35 }
 0x324   : > { %v3027_v6 = vsel %vm3025_vm13, %v3026_v59, %v5790_v28  ;;  %v2858_v23 = vsel %vm2856_vm12, %v4090_v21, %v2857_v14  ;;  %v3287_v34 = vand.u32 8388607, %v3280_v24  ;;  %vm3291_vm14 = vcmp.gt.s32.totalorder %v3290_v2, 0 }
 0x325   : > { %v3028_v9 = vadd.s32 %v3027_v6, %v3023_v43  ;;  %v2862_v41 = vsel %vm2855_vm11, %v2858_v23, %v2861_v32  ;;  %v3152_v22 = vand.u32 2147483647, %v3151_v7  ;;  %v3154_v10 = vcvt.s32.f32 %v3147_v27 }
 0x326   : > { %v3292_v52 = vsel %vm3291_vm14, %v3290_v2, 0  ;;  %v2863_v54 = vsel %vm2852_vm10, nan, %v2862_v41  ;;  %v5821_v40 = vand.u32 3, %v3165_v19  ;;  %v3288_v12 = vor.u32 8388608, %v3287_v34 }
 0x327   : > { %v3029_v11 = vadd.s32 536870912, %v3028_v9  ;;  %v3294_v30 = vand.u32 31, %v3292_v52  ;;  %3394 = vst [vmem:[%s4981_s5 + $0x50] sm:$0xff] %v2863_v54  ;;  %v3155_v1 = vmul.f32 %v3154_v10, %v3152_v22  ;;  %v5825_v8 = vshrl.u32 %v3292_v52, 5 }
 0x328   : > { %v3179_v20 = vand.u32 2139095040, %v5735_v42  ;;  %v3328_v63 = vshll.u32 %v3288_v12, 8  ;;  %vm3168_vm2 = vcmp.eq.s32.totalorder %v5821_v40, 0  ;;  %vm3164_vm6 = vweird.f32 %v5524_v58 }
 0x329   : > { %v5823_v3 = vshrl.u32 %v3029_v11, 30  ;;  %v3295_v17 = vsub.s32 32, %v3294_v30  ;;  %v3156_v26 = vxor.u32 2147483648, %v3155_v1  ;;  %v3297_v18 = vshll.u32 %v4174_v38, %v3294_v30 }
 0x32a   : > { %v3300_v62 = vshll.u32 %v4175_v56, %v3294_v30  ;;  %v3303_v13 = vshll.u32 %v4176_v31, %v3294_v30  ;;  %v3306_v5 = vshll.u32 %v4177_v57, %v3294_v30  ;;  %v3180_v29 = vshrl.u32 %v3179_v20, 23 }
 0x32b   : > { %v3031_v36 = vshll.u32 %v5823_v3, 30  ;;  %v3298_v45 = vshrl.u32 %v4175_v56, %v3295_v17  ;;  %v3157_v39 = vsel %vm3074_vm4, %v3156_v26, %v3155_v1  ;;  %v3301_v53 = vshrl.u32 %v4176_v31, %v3295_v17 }
 0x32c   : > { %v3304_v28 = vshrl.u32 %v4177_v57, %v3295_v17  ;;  %v3307_v46 = vshrl.u32 %v4178_v60, %v3295_v17  ;;  %v3160_v44 = vsel %vm5781_vm3, %v5524_v58, %v3157_v39  ;;  %v3309_v35 = vshll.u32 %v4178_v60, %v3294_v30 }
 0x32d   : > { %v5840_v61 = vsub.s32 %v3028_v9, %v3031_v36  ;;  %4093 = vcosq.f32 %v3160_v44  ;;  %v3299_v50 = vor.u32 %v3298_v45, %v3297_v18  ;;  %v3302_v51 = vor.u32 %v3301_v53, %v3300_v62 }
 0x32e   : > { %4095 = vsinq.f32 %v3160_v44  ;;  %v3305_v37 = vor.u32 %v3304_v28, %v3303_v13  ;;  %v3308_v21 = vor.u32 %v3307_v46, %v3306_v5  ;;  %v3310_v0 = vshrl.u32 %v4179_v55, %v3295_v17 }
 0x32f   : > { %v3034_v15 = vsub.s32 0, %v5840_v61  ;;  %vm3312_vm0 = vcmp.lt.s32.totalorder %v5825_v8, 1  ;;  %vm3315_vm1 = vcmp.lt.s32.totalorder %v5825_v8, 4  ;;  %v3539_v2 = vadd.s32 4294967169, %v3180_v29 }
 0x330   : > { %v3311_v49 = vor.u32 %v3310_v0, %v3309_v35  ;;  %v3320_v27 = vsel %vm3312_vm0, %v3299_v50, %v3302_v51  ;;  %v3321_v47 = vsel %vm3315_vm1, %v3308_v21, 920167782  ;;  %v3296_v43 = vshrl.u32 %v4174_v38, %v3295_v17 }
 0x331   : > { %v3532_v59 = vmin.u32 %v3034_v15, %v5840_v61  ;;  %vm3314_vm4 = vcmp.lt.s32.totalorder %v5825_v8, 3  ;;  %v3317_v32 = vsel %vm3315_vm1, %v3305_v37, 2102212464  ;;  %vm3167_vm3 = vcmp.lt.s32.totalorder %v5821_v40, 2 }
 0x332   : > { %vm3313_vm5 = vcmp.lt.s32.totalorder %v5825_v8, 2  ;;  %v3322_v7 = vsel %vm3314_vm4, %v3305_v37, %v3321_v47  ;;  %v3324_v19 = vsel %vm3312_vm0, %v3302_v51, %v3305_v37  ;;  %v3325_v6 = vsel %vm3315_vm1, %v3311_v49, 1326507024 }
 0x333   : > { %v3036_v14 = vclz %v3532_v59  ;;  %v3316_v9 = vsel %vm3312_vm0, %v3296_v43, %v3299_v50  ;;  %v3323_v34 = vsel %vm3313_vm5, %v3320_v27, %v3322_v7  ;;  %v3326_v41 = vsel %vm3314_vm4, %v3308_v21, %v3325_v6 }
 0x334   : > { %v3318_v22 = vsel %vm3314_vm4, %v3302_v51, %v3317_v32  ;;  %v3327_v10 = vsel %vm3313_vm5, %v3324_v19, %v3326_v41  ;;  %v5866_v52 = vmul.u32.u64.low %v3328_v63, %v3323_v34  ;;  %v5867_v54 = vmul.u32.u64.high %v3328_v63, %v3323_v34, %v5866_v52 }
 0x335   : > { %v3533_v23 = vadd.s32 4294967294, %v3036_v14  ;;  %vm3171_vm7 = vcmp.eq.s32.totalorder %v5821_v40, 2  ;;  %v5871_v11 = vmul.u32.u64.low %v3328_v63, %v3327_v10  ;;  %v5872_v30 = vmul.u32.u64.high %v3328_v63, %v3327_v10, %v5871_v11 }
 0x336   : > { %v3024_v17 = vadd.s32 %v5789_v48, %v5800_v25  ;;  %v3176_v12 = vand.u32 2147483647, %v5735_v42  ;;  %v3186_v20 = vadd.s32 1, %v3539_v2  ;;  %v3319_v39 = vsel %vm3313_vm5, %v3316_v9, %v3318_v22 }
 0x337   : > { %vm3534_vm8 = vcmp.lt.s32.totalorder %v3533_v23, 0  ;;  %v4094_v1 = vpop.eup %4093  ;;  %v3054_v28 = vsub.s32 4, %v5823_v3  ;;  %v3338_v46 = vadd.s32 1, %v5867_v54  ;;  %v3335_v50 = vmul.u32 %v3328_v63, %v3319_v39 }
 0x338   : > { %v3039_v26 = vsel %vm3534_vm8, 0, %v3533_v23  ;;  %v4096_v36 = vpop.eup %4095  ;;  %v3172_v18 = vxor.u32 2147483648, %v4094_v1  ;;  %vm3187_vm9 = vcmp.gt.s32.totalorder %v3186_v20, 0  ;;  %vm3337_vm10 = vc.u32 %v5872_v30, %v5866_v52 }
 0x339   : > { %v3040_v45 = vsub.s32 32, %v3039_v26  ;;  %v3044_v62 = vsub.s32 4294967266, %v3039_v26  ;;  %v3169_v53 = vxor.u32 2147483648, %v4096_v36  ;;  %v3041_v25 = vshll.u32 %v5840_v61, %v3039_v26 }
 0x33a   : > { %v3173_v48 = vsel %vm3171_vm7, %v3172_v18, %v4096_v36  ;;  %v3188_v8 = vsel %vm3187_vm9, %v3186_v20, 0  ;;  %v3339_v37 = vsel %vm3337_vm10, %v3338_v46, %v5867_v54  ;;  %vm2970_vm11 = vcmp.lt.s32.totalorder %v5531_v4, 0 }
 0x33b   : > { %v3042_v44 = vshrl.u32 %v3024_v17, %v3040_v45  ;;  %v3045_v13 = vadd.s32 127, %v3044_v62  ;;  %v3170_v5 = vsel %vm3168_vm2, %v4094_v1, %v3169_v53  ;;  %v3340_v21 = vadd.s32 %v3339_v37, %v3335_v50 }
 0x33c   : > { %v3174_v51 = vsel %vm3167_vm3, %v3170_v5, %v3173_v48  ;;  %v3190_v35 = vand.u32 31, %v3188_v8  ;;  %v3183_v63 = vand.u32 8388607, %v3176_v12  ;;  %v3055_v47 = vsel %vm2970_vm11, %v3054_v28, %v5823_v3 }
 0x33d   : > { %v3043_v29 = vor.u32 %v3042_v44, %v3041_v25  ;;  %v3046_v15 = vshll.u32 %v3045_v13, 23  ;;  %v3175_v61 = vsel %vm3164_vm6, nan, %v3174_v51  ;;  %v3341_v59 = vadd.s32 536870912, %v3340_v21 }
 0x33e   : > { %3397 = vst [vmem:[%s4981_s5 + $0x68] sm:$0xff] %v3175_v61  ;;  %v3191_v49 = vsub.s32 32, %v3190_v35  ;;  %v3189_v2 = vshrl.u32 %v3188_v8, 5  ;;  %v3202_v32 = vshll.u32 %v4177_v57, %v3190_v35  ;;  %v3193_v3 = vshll.u32 %v4174_v38, %v3190_v35 }
 0x33f   : > { %v3047_v0 = vor.u32 4788187, %v3046_v15  ;;  %v3050_v27 = vcvt.s32.f32 %v3043_v29  ;;  %v5900_v58 = vshrl.u32 %v3341_v59, 30  ;;  %v3196_v34 = vshll.u32 %v4175_v56, %v3190_v35 }
 0x340   : > { %v3194_v14 = vshrl.u32 %v4175_v56, %v3191_v49  ;;  %v3197_v43 = vshrl.u32 %v4176_v31, %v3191_v49  ;;  %v3200_v19 = vshrl.u32 %v4177_v57, %v3191_v49  ;;  %v3203_v6 = vshrl.u32 %v4178_v60, %v3191_v49 }
 0x341   : > { %v3048_v40 = vand.u32 2147483647, %v3047_v0  ;;  %v3206_v23 = vshrl.u32 %v4179_v55, %v3191_v49  ;;  %v3343_v9 = vshll.u32 %v5900_v58, 30  ;;  %v3199_v41 = vshll.u32 %v4176_v31, %v3190_v35 }
 0x342   : > { %vm5914_vm12 = vcmp.le.f32.partialorder %v2968_v16, 0.7853982  ;;  %v3204_v57 = vor.u32 %v3203_v6, %v3202_v32  ;;  %v3205_v54 = vshll.u32 %v4178_v60, %v3190_v35  ;;  %v3195_v55 = vor.u32 %v3194_v14, %v3193_v3 }
 0x343   : > { %v3051_v7 = vmul.f32 %v3050_v27, %v3048_v40  ;;  %v3344_v11 = vsub.s32 %v3340_v21, %v3343_v9  ;;  %v3198_v1 = vor.u32 %v3197_v43, %v3196_v34  ;;  %v3201_v17 = vor.u32 %v3200_v19, %v3199_v41 }
 0x344   : > { %v3057_v56 = vsel %vm5914_vm12, 0, %v3055_v47  ;;  %v3207_v31 = vor.u32 %v3206_v23, %v3205_v54  ;;  %v3184_v36 = vor.u32 8388608, %v3183_v63  ;;  %vm3211_vm15 = vcmp.lt.s32.totalorder %v3189_v2, 4 }
 0x345   : > { %v3052_v10 = vxor.u32 2147483648, %v3051_v7  ;;  %v3346_v20 = vsub.s32 0, %v3344_v11  ;;  %vm3208_vm13 = vcmp.lt.s32.totalorder %v3189_v2, 1  ;;  %vm3210_vm14 = vcmp.lt.s32.totalorder %v3189_v2, 3 }
 0x346   : > { %v3217_v60 = vsel %vm3211_vm15, %v3204_v57, 920167782  ;;  %v3213_v45 = vsel %vm3211_vm15, %v3201_v17, 2102212464  ;;  %v3216_v62 = vsel %vm3208_vm13, %v3195_v55, %v3198_v1  ;;  %v3192_v39 = vshrl.u32 %v4174_v38, %v3191_v49 }
 0x347   : > { %v3053_v26 = vsel %vm2970_vm11, %v3052_v10, %v3051_v7  ;;  %v3544_v18 = vmin.u32 %v3346_v20, %v3344_v11  ;;  %v3218_v53 = vsel %vm3210_vm14, %v3201_v17, %v3217_v60  ;;  %v3220_v28 = vsel %vm3208_vm13, %v3198_v1, %v3201_v17 }
 0x348   : > { %v3056_v16 = vsel %vm5914_vm12, %v5531_v4, %v3053_v26  ;;  %v3221_v46 = vsel %vm3211_vm15, %v3207_v31, 1326507024  ;;  %v3061_v48 = vadd.s32 3, %v3057_v56  ;;  %vm3209_vm0 = vcmp.lt.s32.totalorder %v3189_v2, 2 }
 0x349   : > { %4097 = vcosq.f32 %v3056_v16  ;;  %v3348_v25 = vclz %v3544_v18  ;;  %v3224_v44 = vshll.u32 %v3184_v36, 8  ;;  %v3212_v13 = vsel %vm3208_vm13, %v3192_v39, %v3195_v55 }
 0x34a   : > { %4099 = vsinq.f32 %v3056_v16  ;;  %v3214_v5 = vsel %vm3210_vm14, %v3198_v1, %v3213_v45  ;;  %v3219_v50 = vsel %vm3209_vm0, %v3216_v62, %v3218_v53  ;;  %v3222_v8 = vsel %vm3210_vm14, %v3204_v57, %v3221_v46 }
 0x34b   : > { %v3545_v51 = vadd.s32 4294967294, %v3348_v25  ;;  %v3223_v29 = vsel %vm3209_vm0, %v3220_v28, %v3222_v8  ;;  %v5930_v15 = vmul.u32.u64.low %v3224_v44, %v3219_v50  ;;  %v5931_v37 = vmul.u32.u64.high %v3224_v44, %v3219_v50, %v5930_v15 }
 0x34c   : > { %v5933_v38 = vmul.u32.u64.low %v3224_v44, %v3223_v29  ;;  %v5934_v61 = vmul.u32.u64.high %v3224_v44, %v3223_v29, %v5933_v38  ;;  %v3215_v21 = vsel %vm3209_vm0, %v3212_v13, %v3214_v5  ;;  %v3062_v35 = vand.u32 3, %v3061_v48 }
 0x34d   : > { %vm3546_vm1 = vcmp.lt.s32.totalorder %v3545_v51, 0  ;;  %v3336_v59 = vadd.s32 %v5866_v52, %v5872_v30  ;;  %v3234_v40 = vadd.s32 1, %v5931_v37  ;;  %v3231_v2 = vmul.u32 %v3224_v44, %v3215_v21 }
 0x34e   : > { %v3351_v0 = vsel %vm3546_vm1, 0, %v3545_v51  ;;  %vm3233_vm2 = vc.u32 %v5934_v61, %v5930_v15  ;;  %vm3067_vm4 = vcmp.eq.s32.totalorder %v3062_v35, 2  ;;  %vm3064_vm3 = vcmp.eq.s32.totalorder %v3062_v35, 0 }
 0x34f   : > { %v3352_v63 = vsub.s32 32, %v3351_v0  ;;  %v3356_v49 = vsub.s32 4294967266, %v3351_v0  ;;  %v3353_v47 = vshll.u32 %v3344_v11, %v3351_v0  ;;  %v3235_v19 = vsel %vm3233_vm2, %v3234_v40, %v5931_v37 }
 0x350   : > { %v3236_v23 = vadd.s32 %v3235_v19, %v3231_v2  ;;  %vm3063_vm5 = vcmp.lt.s32.totalorder %v3062_v35, 2  ;;  %vm3060_vm6 = vweird.f32 %v5531_v4  ;;  %v3366_v17 = vsub.s32 4, %v5900_v58 }
 0x351   : > { %v3354_v32 = vshrl.u32 %v3336_v59, %v3352_v63  ;;  %v3357_v7 = vadd.s32 127, %v3356_v49  ;;  %vm3282_vm7 = vcmp.lt.s32.totalorder %v5731_v33, 0  ;;  %vm3281_vm8 = vcmp.le.f32.partialorder %v3280_v24, 0.7853982 }
 0x352   : > { %v3237_v34 = vadd.s32 536870912, %v3236_v23  ;;  %v3367_v16 = vsel %vm3282_vm7, %v3366_v17, %v5900_v58  ;;  %v3232_v53 = vadd.s32 %v5930_v15, %v5934_v61  ;;  %vm3372_vm15 = vweird.f32 %v5731_v33 }
 0x353   : > { %v4098_v27 = vpop.eup %4097  ;;  %v3355_v30 = vor.u32 %v3354_v32, %v3353_v47  ;;  %v3358_v9 = vshll.u32 %v3357_v7, 23  ;;  %v3369_v60 = vsel %vm3281_vm8, 0, %v3367_v16  ;;  %vm3178_vm13 = vcmp.lt.s32.totalorder %v5735_v42, 0 }
 0x354   : > { %v4100_v14 = vpop.eup %4099  ;;  %v3068_v43 = vxor.u32 2147483648, %v4098_v27  ;;  %v3238_v57 = vshrl.u32 %v3237_v34, 30  ;;  %v3373_v62 = vadd.s32 3, %v3369_v60  ;;  %vm3177_vm14 = vcmp.le.f32.partialorder %v3176_v12, 0.7853982 }
 0x355   : > { %v3065_v6 = vxor.u32 2147483648, %v4100_v14  ;;  %v3359_v22 = vor.u32 4788187, %v3358_v9  ;;  %v3362_v11 = vcvt.s32.f32 %v3355_v30 }
 0x356   : > { %v3069_v52 = vsel %vm3067_vm4, %v3068_v43, %v4100_v14  ;;  %v3239_v55 = vshll.u32 %v3238_v57, 30  ;;  %v3374_v48 = vand.u32 3, %v3373_v62  ;;  %v3262_v59 = vsub.s32 4, %v3238_v57 }
 0x357   : > { %v3066_v3 = vsel %vm3064_vm3, %v4098_v27, %v3065_v6  ;;  %v3360_v54 = vand.u32 2147483647, %v3359_v22  ;;  %vm3268_vm4 = vweird.f32 %v5735_v42 }
 0x358   : > { %v3070_v41 = vsel %vm3063_vm5, %v3066_v3, %v3069_v52  ;;  %v3240_v26 = vsub.s32 %v3236_v23, %v3239_v55  ;;  %vm3379_vm10 = vcmp.eq.s32.totalorder %v3374_v48, 2  ;;  %vm3376_vm11 = vcmp.eq.s32.totalorder %v3374_v48, 0 }
 0x359   : > { %v3071_v10 = vsel %vm3060_vm6, nan, %v3070_v41  ;;  %v3363_v1 = vmul.f32 %v3362_v11, %v3360_v54  ;;  %vm3375_vm12 = vcmp.lt.s32.totalorder %v3374_v48, 2  ;;  %v3263_v40 = vsel %vm3178_vm13, %v3262_v59, %v3238_v57 }
 0x35a   : > { %3396 = vst [vmem:[%s4981_s5 + $0x60] sm:$0xff] %v3071_v10  ;;  %v3242_v31 = vsub.s32 0, %v3240_v26 }
 0x35b   : > { %v3364_v56 = vxor.u32 2147483648, %v3363_v1 }
 0x35c   : > { %v3540_v36 = vmin.u32 %v3242_v31, %v3240_v26 }
 0x35d   : > { %v3365_v4 = vsel %vm3282_vm7, %v3364_v56, %v3363_v1 }
 0x35e   : > { %v3368_v20 = vsel %vm3281_vm8, %v5731_v33, %v3365_v4  ;;  %v3244_v18 = vclz %v3540_v36  ;;  %v3265_v33 = vsel %vm3177_vm14, 0, %v3263_v40 }
 0x35f   : > { %4101 = vcosq.f32 %v3368_v20  ;;  %v3269_v47 = vadd.s32 3, %v3265_v33 }
 0x360   : > { %4103 = vsinq.f32 %v3368_v20  ;;  %v3541_v45 = vadd.s32 4294967294, %v3244_v18 }
 0x361   : > { %v3270_v2 = vand.u32 3, %v3269_v47 }
 0x362   : > { %vm3542_vm9 = vcmp.lt.s32.totalorder %v3541_v45, 0 }
 0x363   : > { %v3247_v39 = vsel %vm3542_vm9, 0, %v3541_v45  ;;  %vm3275_vm0 = vcmp.eq.s32.totalorder %v3270_v2, 2  ;;  %vm3272_vm1 = vcmp.eq.s32.totalorder %v3270_v2, 0  ;;  %vm3271_vm2 = vcmp.lt.s32.totalorder %v3270_v2, 2 }
 0x364   : > { %v3248_v28 = vsub.s32 32, %v3247_v39  ;;  %v3252_v46 = vsub.s32 4294967266, %v3247_v39  ;;  %v3249_v24 = vshll.u32 %v3240_v26, %v3247_v39 }
 0x366   : > { %v3250_v25 = vshrl.u32 %v3232_v53, %v3248_v28  ;;  %v3253_v44 = vadd.s32 127, %v3252_v46 }
 0x368   : > { %v3251_v50 = vor.u32 %v3250_v25, %v3249_v24  ;;  %v3254_v8 = vshll.u32 %v3253_v44, 23 }
 0x369   : > { %v4102_v58 = vpop.eup %4101 }
 0x36a   : > { %v4104_v13 = vpop.eup %4103  ;;  %v3380_v5 = vxor.u32 2147483648, %v4102_v58  ;;  %v3255_v37 = vor.u32 4788187, %v3254_v8  ;;  %v3258_v21 = vcvt.s32.f32 %v3251_v50 }
 0x36b   : > { %v3377_v51 = vxor.u32 2147483648, %v4104_v13 }
 0x36c   : > { %v3381_v29 = vsel %vm3379_vm10, %v3380_v5, %v4104_v13  ;;  %v3256_v61 = vand.u32 2147483647, %v3255_v37 }
 0x36d   : > { %v3378_v38 = vsel %vm3376_vm11, %v4102_v58, %v3377_v51 }
 0x36e   : > { %v3382_v15 = vsel %vm3375_vm12, %v3378_v38, %v3381_v29  ;;  %v3259_v0 = vmul.f32 %v3258_v21, %v3256_v61 }
 0x36f   : > { %v3383_v35 = vsel %vm3372_vm15, nan, %v3382_v15 }
 0x370   : > { %3399 = vst [vmem:[%s4981_s5 + $0x78] sm:$0xff] %v3383_v35  ;;  %v3260_v63 = vxor.u32 2147483648, %v3259_v0 }
 0x372   : > { %v3261_v49 = vsel %vm3178_vm13, %v3260_v63, %v3259_v0 }
 0x373   : > { %v3264_v27 = vsel %vm3177_vm14, %v5735_v42, %v3261_v49 }
 0x374   : > { %4105 = vcosq.f32 %v3264_v27 }
 0x375   : > { %4107 = vsinq.f32 %v3264_v27 }
 0x37e   : > { %v4106_v14 = vpop.eup %4105 }
 0x37f   : > { %v4108_v43 = vpop.eup %4107  ;;  %v3276_v32 = vxor.u32 2147483648, %v4106_v14 }
 0x380   : > { %v3273_v7 = vxor.u32 2147483648, %v4108_v43 }
 0x381   : > { %v3277_v12 = vsel %vm3275_vm0, %v3276_v32, %v4108_v43 }
 0x382   : > { %v3274_v19 = vsel %vm3272_vm1, %v4106_v14, %v3273_v7 }
 0x383   : > { %v3278_v6 = vsel %vm3271_vm2, %v3274_v19, %v3277_v12 }
 0x384   : > { %v3279_v23 = vsel %vm3268_vm4, nan, %v3278_v6 }
 0x385   : > { %3398 = vst [vmem:[%s4981_s5 + $0x70] sm:$0xff] %v3279_v23 }
 0x386   : > { %4122 = shalt.err (!%p4119_p3)
}
 0x387   : > { %s4123_s24 = scalar_lea.hbm %s5961_s16, 2048  ;;  %s4127_s27 = scalar_lea.hbm %s6012_s2, 8192 }
 0x388   : > { %p4124_p4 = scmp.ne.s32.totalorder %s5961_s16, %s4123_s24  ;;  %p4128_p9 = scmp.lt.u32.totalorder %s5961_s16, %s6012_s2 }
 0x389   : > { %p4129_p10 = scmp.lt.u32.totalorder %s4127_s27, %s4123_s24  ;;  %p4131_p12 = scmp.lt.u32.totalorder %s4123_s24, %s5961_s16 }
 0x38a   : > { %p4125_p7 = pnand %p4124_p4, %p4236_p5 }
 0x38b   : > { %p4130_p11 = por %p4129_p10, %p4128_p9 }
 0x38c   : > { %p4126_p8 = pneg %p4125_p7 }
 0x38d   : > { %p4132_p13 = por %p4131_p12, %p4130_p11 }
 0x38f   : > { %p4133_p0 = pnand %p4132_p13, %p4126_p8 }
 0x391   : > { %4136 = shalt.err (!%p4133_p0)
}
 0x392   : > { %s4181_s30 = smov 128   ;;  %s4182_s3 = smov 8  }
 0x393   : > { %3997 = dma.vmem_to_hbm [thread:$0]  (%p4236_p5), %s5963_s7, 2048, %s5961_s16, %s5969_s13, %s4181_s30, %s4181_s30, %s4182_s3  }
 0x394 PF: > { %p4003_p1 = scmp.ge.s32.totalorder %s4171_s12, 2  ;;  %s3429_s4 = sand.u32 1, %s4159_s9  }
 0x395   : > { %s3430_s5 = scalar_lea.sflag [#allocation3], %s3429_s4 }
 0x396   : > { %p4000_p2 = pnand %p4003_p1, %p4240_p6 }
 0x398   : > { %4154 = dma.done.wait (!%p4000_p2), %s3430_s5, 2048  }
 0x399   : > { %4156 = vsyncadd (!%p4000_p2), %s3430_s5, 4294965248  ;;  %p12_p3 = scmp.ge.s32.totalorder %s4223_s15, 6   ;;  %s6049_s9 = smov %s4163_s10 }
 0x39a   : > { %s6050_s10 = smov %s4167_s11  ;;  %s6051_s11 = smov %s4234_s18 }
 0x39b   : > { %s6052_s12 = smov %s4223_s15  ;;  %14 = sbr.rel (!%p12_p3) target bundleno = 3 (0x3), region = 63 }
 0x3a2   :  { %3435 = vsyncpa [#allocation3], 1 }
 0x3a3   :  { %3437 = vsyncpa [#allocation3 + $0x1], 1 }

</bundles_post_ra>
